<compile_context>
chip_gen: v7x
topology: tpu7x:2x2x1
jax: 0.10.0
libtpu: 0.0.40
codegen_flags: <defaults>
</compile_context>

<pallas_src>
import functools

import jax
import jax.numpy as jnp
import numpy as np
from jax import lax
from jax.experimental import pallas as pl
from jax.experimental.pallas import tpu as pltpu

LANES = 128


def _round_up(x, m):
    return (x + m - 1) // m * m


# ----------------------------- Pallas kernel --------------------------------

def _fused_conv_layer_kernel(xf_ref, w_ref, b_ref, g_ref, bt_ref, o_ref, acc_ref,
                             *, kh, stride, nw, oh, mode, eps):
    """Fused Conv2d(k=4,pad=1) + bias + [BatchNorm(train)] + LeakyReLU/Sigmoid.

    xf_ref : (PH, Hh*N*OW, KW*Cin) bf16  W-im2col'ed, H-phase-split activation,
                                         rows ordered (h, n, w).
    w_ref  : (KH, KW*Cin, Coutp)   bf16  per-kernel-row weight matrices.
    b_ref  : (1, Coutp) f32 conv bias; g_ref/bt_ref: (1, Coutp) f32 BN affine
             (dummies 1/0 for layers without BN).
    o_ref  : (M, Coutp) f32, M = OH*N*OW, rows ordered (oh, n, ow).
    acc_ref: (M, Coutp) f32 VMEM scratch accumulator.
    """
    m = oh * nw  # number of output rows

    # conv = KH row-grouped shifted-tap matmuls, accumulated in f32 VMEM scratch
    for i in range(kh):
        p = i % stride          # H phase plane (stride handled via phase split)
        oi = i // stride        # row offset inside the phase plane
        slab = xf_ref[p, pl.ds(oi * nw, m), :]                 # (M, KW*Cin) bf16
        part = jnp.dot(slab, w_ref[i],
                       preferred_element_type=jnp.float32)     # (M, Coutp) f32
        if i == 0:
            acc_ref[...] = part
        else:
            acc_ref[...] += part

    y = acc_ref[...] + b_ref[...]                              # f32 epilogue

    if mode == "bn_leaky":
        # training-mode BatchNorm2d: per-channel batch stats, biased variance
        mean = jnp.mean(y, axis=0, keepdims=True)
        var = jnp.mean((y - mean) ** 2, axis=0, keepdims=True)
        y = (y - mean) * (g_ref[...] * lax.rsqrt(var + eps)) + bt_ref[...]
        y = jnp.where(y > 0, y, 0.2 * y)
    elif mode == "leaky":
        y = jnp.where(y > 0, y, 0.2 * y)
    elif mode == "sigmoid":
        y = 1.0 / (1.0 + jnp.exp(-y))

    o_ref[...] = y.astype(o_ref.dtype)


# ------------------------------ JAX glue ------------------------------------

def _prep_activation(a_hnwc, stride, kh=4, kw=4, pad=1):
    """a_hnwc: (H, N, W, C) channels-last activation, rows ordered (h, n, w).

    Returns XF (PH, Hh*N*OW, KW*C) -- W-direction im2col (stride applied along
    W here) + H-phase split so each kernel row is a unit-stride row window.
    """
    h, n, w, c = a_hnwc.shape
    hp, wp = h + 2 * pad, w + 2 * pad
    oh = (hp - kh) // stride + 1
    ow = (wp - kw) // stride + 1
    ap = jnp.pad(a_hnwc, ((pad, pad), (0, 0), (pad, pad), (0, 0)))
    # W-direction im2col: Xw[h, n, ow, j*C + c] = ap[h, n, ow*stride + j, c]
    xw = jnp.concatenate(
        [ap[:, :, j:j + stride * ow:stride, :] for j in range(kw)], axis=-1)
    if stride == 1:
        hh = hp
        xp = xw[None]                                   # (1, Hp, N, OW, KW*C)
    else:
        hh = hp // stride
        xp = xw.reshape(hh, stride, n, ow, kw * c).transpose(1, 0, 2, 3, 4)
    xf = xp.reshape(stride, hh * n * ow, kw * c)
    return xf, oh, ow


def conv_block_pallas(a_hnwc, w, b, gamma=None, beta=None, *,
                      stride, mode, eps=1e-5):
    """One Discriminator layer, fully fused into a single pallas_call.

    a_hnwc: (H, N, W, Cin) channels-last activation.
    w: (Cout, Cin, 4, 4) PyTorch-layout weight; b: (Cout,).
    Returns (OH, N, OW, Cout) channels-last activation.
    """
    cout, cin, kh, kw = w.shape
    _, n, _, _ = a_hnwc.shape

    xf, oh, ow = _prep_activation(a_hnwc, stride, kh, kw, pad=1)
    m = oh * n * ow
    coutp = _round_up(cout, LANES)   # lane-dense output stores (review #3)

    # per-kernel-row weight matrices; K index = j*Cin + c matches the W-im2col
    wmat = w.transpose(2, 3, 1, 0).reshape(kh, kw * cin, cout)
    wmat = jnp.pad(wmat, ((0, 0), (0, 0), (0, coutp - cout)))

    bvec = jnp.pad(b, (0, coutp - cout)).reshape(1, coutp).astype(jnp.float32)
    if gamma is None:
        gvec = jnp.ones((1, coutp), jnp.float32)
        btvec = jnp.zeros((1, coutp), jnp.float32)
    else:
        gvec = jnp.pad(gamma, (0, coutp - cout),
                       constant_values=1.0).reshape(1, coutp).astype(jnp.float32)
        btvec = jnp.pad(beta, (0, coutp - cout)).reshape(1, coutp).astype(jnp.float32)

    # bf16 MXU inputs, f32 accumulation (review #4)
    xf = xf.astype(jnp.bfloat16)
    wmat = wmat.astype(jnp.bfloat16)

    # explicit scoped-VMEM request sized from the (tiny) working set (review #7/#8)
    need = 2 * (xf.size * 2 + wmat.size * 2) + 3 * coutp * 4 + 3 * m * coutp * 4
    vmem_bytes = int(min(max(2 * need, 4 << 20), 32 << 20))

    kernel = functools.partial(
        _fused_conv_layer_kernel,
        kh=kh, stride=stride, nw=n * ow, oh=oh, mode=mode, eps=eps)

    out = pl.pallas_call(
        kernel,
        out_shape=jax.ShapeDtypeStruct((m, coutp), jnp.float32),
        scratch_shapes=[pltpu.VMEM((m, coutp), jnp.float32)],
        compiler_params=pltpu.CompilerParams(vmem_limit_bytes=vmem_bytes),
    )(xf, wmat, bvec, gvec, btvec)

    # stay channels-last between layers (review #2); drop lane padding in JAX
    return out.reshape(oh, n, ow, coutp)[..., :cout]


# -------------------------- Discriminator module ----------------------------

def init_discriminator_params(key, in_ch, out_ch, ndf=64):
    chans = [in_ch + out_ch, ndf, ndf * 2, ndf * 4, ndf * 8, 1]
    params = {}
    keys = jax.random.split(key, 2 * 5 + 3 * 2)
    ki = 0
    for l in range(5):
        cin, cout = chans[l], chans[l + 1]
        params[f"w{l+1}"] = 0.05 * jax.random.normal(keys[ki], (cout, cin, 4, 4), jnp.float32)
        ki += 1
        params[f"b{l+1}"] = 0.05 * jax.random.normal(keys[ki], (cout,), jnp.float32)
        ki += 1
    for l in (2, 3, 4):  # layers with BatchNorm
        cout = chans[l]
        params[f"gamma{l}"] = 1.0 + 0.1 * jax.random.normal(keys[ki], (cout,), jnp.float32)
        ki += 1
        params[f"beta{l}"] = 0.1 * jax.random.normal(keys[ki], (cout,), jnp.float32)
        ki += 1
    return params


def discriminator_forward(params, x_nchw):
    # NCHW -> channels-last (H, N, W, C) only at the model boundary (review #2)
    a = x_nchw.transpose(2, 0, 3, 1)
    # layer1: conv(s=2) + LeakyReLU
    a = conv_block_pallas(a, params["w1"], params["b1"], stride=2, mode="leaky")
    # layer2-4: conv + BatchNorm(train) + LeakyReLU, fully fused per layer
    a = conv_block_pallas(a, params["w2"], params["b2"],
                          params["gamma2"], params["beta2"], stride=2, mode="bn_leaky")
    a = conv_block_pallas(a, params["w3"], params["b3"],
                          params["gamma3"], params["beta3"], stride=2, mode="bn_leaky")
    a = conv_block_pallas(a, params["w4"], params["b4"],
                          params["gamma4"], params["beta4"], stride=1, mode="bn_leaky")
    # layer5: conv(s=1) + Sigmoid
    a = conv_block_pallas(a, params["w5"], params["b5"], stride=1, mode="sigmoid")
    # (OH, N, OW, 1) -> NCHW at the boundary
    return a.transpose(1, 3, 0, 2)


# ------------------------------ reference -----------------------------------

def _ref_conv(x, w, b, stride, pad):
    y = lax.conv_general_dilated(
        x, w, window_strides=(stride, stride),
        padding=((pad, pad), (pad, pad)),
        dimension_numbers=("NCHW", "OIHW", "NCHW"))
    return y + b[None, :, None, None]


def discriminator_ref(params, x, eps=1e-5):
    def bn_leaky(h, g, bt):
        mean = jnp.mean(h, axis=(0, 2, 3), keepdims=True)
        var = jnp.mean((h - mean) ** 2, axis=(0, 2, 3), keepdims=True)
        h = (h - mean) / jnp.sqrt(var + eps) * g[None, :, None, None] + bt[None, :, None, None]
        return jnp.where(h > 0, h, 0.2 * h)

    h = _ref_conv(x, params["w1"], params["b1"], 2, 1)
    h = jnp.where(h > 0, h, 0.2 * h)
    h = bn_leaky(_ref_conv(h, params["w2"], params["b2"], 2, 1), params["gamma2"], params["beta2"])
    h = bn_leaky(_ref_conv(h, params["w3"], params["b3"], 2, 1), params["gamma3"], params["beta3"])
    h = bn_leaky(_ref_conv(h, params["w4"], params["b4"], 1, 1), params["gamma4"], params["beta4"])
    h = _ref_conv(h, params["w5"], params["b5"], 1, 1)
    return jax.nn.sigmoid(h)


# --------------------------------- main --------------------------------------

if __name__ == "__main__":
    key = jax.random.PRNGKey(0)
    k_param, k_x = jax.random.split(key)

    in_ch, out_ch, ndf = 3, 3, 32           # small but structurally faithful
    N, H, W = 2, 32, 32                     # X = concat(real, cond): C = in_ch + out_ch

    params = init_discriminator_params(k_param, in_ch, out_ch, ndf)
    x = jax.random.normal(k_x, (N, in_ch + out_ch, H, W), jnp.float32)

    fwd = jax.jit(discriminator_forward)
    out = jax.block_until_ready(fwd(params, x))

    ref = jax.block_until_ready(discriminator_ref(params, x))
    # bf16 MXU inputs (f32 accumulation) => slightly relaxed tolerance vs f32 ref
    np.testing.assert_allclose(np.asarray(out), np.asarray(ref), rtol=3e-2, atol=3e-2)
    assert out.shape == ref.shape == (N, 1, 2, 2)

    print("KERNEL_OK")
</pallas_src>

<mosaic_0001>
module attributes {stable_mosaic.version = 11 : i64} {
  func.func @_fused_conv_layer_kernel(%arg0: memref<2x544x24xbf16, #tpu.memory_space<vmem>>, %arg1: memref<4x24x128xbf16, #tpu.memory_space<vmem>>, %arg2: memref<1x128xf32, #tpu.memory_space<vmem>>, %arg3: memref<1x128xf32, #tpu.memory_space<vmem>>, %arg4: memref<1x128xf32, #tpu.memory_space<vmem>>, %arg5: memref<512x128xf32, #tpu.memory_space<vmem>>, %arg6: memref<512x128xf32, #tpu.memory_space<vmem>>) attributes {dimension_semantics = [], scalar_prefetch = 0 : i64, scratch_operands = 1 : i64, tpu.core_type = #tpu.core_type<tc>} {
    %c0 = arith.constant 0 : index
    %c0_0 = arith.constant 0 : index
    %c0_1 = arith.constant 0 : index
    %0 = vector.load %arg0[%c0, %c0_0, %c0_1] : memref<2x544x24xbf16, #tpu.memory_space<vmem>>, vector<1x512x24xbf16>
    %1 = vector.shape_cast %0 : vector<1x512x24xbf16> to vector<512x24xbf16>
    %c0_2 = arith.constant 0 : index
    %c0_3 = arith.constant 0 : index
    %c0_4 = arith.constant 0 : index
    %2 = vector.load %arg1[%c0_2, %c0_3, %c0_4] : memref<4x24x128xbf16, #tpu.memory_space<vmem>>, vector<1x24x128xbf16>
    %3 = vector.shape_cast %2 : vector<1x24x128xbf16> to vector<24x128xbf16>
    %cst = arith.constant dense<0.000000e+00> : vector<512x128xf32>
    %4 = tpu.matmul %1, %3, %cst {dimension_numbers = #tpu.dot_dimension_numbers<[1], [0], [0], [1], [0, 0, 1, 1], [], []>} : vector<512x24xbf16>, vector<24x128xbf16>, vector<512x128xf32> -> vector<512x128xf32>
    %c0_5 = arith.constant 0 : index
    %c0_6 = arith.constant 0 : index
    %5 = vector.load %arg6[%c0_5, %c0_6] : memref<512x128xf32, #tpu.memory_space<vmem>>, vector<512x128xf32>
    tpu.vector_store %arg6[%c0_5, %c0_6], %4 {strides = array<i32>} : memref<512x128xf32, #tpu.memory_space<vmem>>, vector<512x128xf32>,
    %c1 = arith.constant 1 : index
    %c0_7 = arith.constant 0 : index
    %c0_8 = arith.constant 0 : index
    %6 = vector.load %arg0[%c1, %c0_7, %c0_8] : memref<2x544x24xbf16, #tpu.memory_space<vmem>>, vector<1x512x24xbf16>
    %7 = vector.shape_cast %6 : vector<1x512x24xbf16> to vector<512x24xbf16>
    %c1_9 = arith.constant 1 : index
    %c0_10 = arith.constant 0 : index
    %c0_11 = arith.constant 0 : index
    %8 = vector.load %arg1[%c1_9, %c0_10, %c0_11] : memref<4x24x128xbf16, #tpu.memory_space<vmem>>, vector<1x24x128xbf16>
    %9 = vector.shape_cast %8 : vector<1x24x128xbf16> to vector<24x128xbf16>
    %cst_12 = arith.constant dense<0.000000e+00> : vector<512x128xf32>
    %10 = tpu.matmul %7, %9, %cst_12 {dimension_numbers = #tpu.dot_dimension_numbers<[1], [0], [0], [1], [0, 0, 1, 1], [], []>} : vector<512x24xbf16>, vector<24x128xbf16>, vector<512x128xf32> -> vector<512x128xf32>
    %c0_13 = arith.constant 0 : index
    %c0_14 = arith.constant 0 : index
    %11 = vector.load %arg6[%c0_13, %c0_14] : memref<512x128xf32, #tpu.memory_space<vmem>>, vector<512x128xf32>
    %12 = arith.addf %11, %10 : vector<512x128xf32>
    %c0_15 = arith.constant 0 : index
    %c0_16 = arith.constant 0 : index
    %13 = vector.load %arg6[%c0_15, %c0_16] : memref<512x128xf32, #tpu.memory_space<vmem>>, vector<512x128xf32>
    tpu.vector_store %arg6[%c0_15, %c0_16], %12 {strides = array<i32>} : memref<512x128xf32, #tpu.memory_space<vmem>>, vector<512x128xf32>,
    %c0_17 = arith.constant 0 : index
    %c32 = arith.constant 32 : index
    %c0_18 = arith.constant 0 : index
    %14 = vector.load %arg0[%c0_17, %c32, %c0_18] : memref<2x544x24xbf16, #tpu.memory_space<vmem>>, vector<1x512x24xbf16>
    %15 = vector.shape_cast %14 : vector<1x512x24xbf16> to vector<512x24xbf16>
    %c2 = arith.constant 2 : index
    %c0_19 = arith.constant 0 : index
    %c0_20 = arith.constant 0 : index
    %16 = vector.load %arg1[%c2, %c0_19, %c0_20] : memref<4x24x128xbf16, #tpu.memory_space<vmem>>, vector<1x24x128xbf16>
    %17 = vector.shape_cast %16 : vector<1x24x128xbf16> to vector<24x128xbf16>
    %cst_21 = arith.constant dense<0.000000e+00> : vector<512x128xf32>
    %18 = tpu.matmul %15, %17, %cst_21 {dimension_numbers = #tpu.dot_dimension_numbers<[1], [0], [0], [1], [0, 0, 1, 1], [], []>} : vector<512x24xbf16>, vector<24x128xbf16>, vector<512x128xf32> -> vector<512x128xf32>
    %c0_22 = arith.constant 0 : index
    %c0_23 = arith.constant 0 : index
    %19 = vector.load %arg6[%c0_22, %c0_23] : memref<512x128xf32, #tpu.memory_space<vmem>>, vector<512x128xf32>
    %20 = arith.addf %19, %18 : vector<512x128xf32>
    %c0_24 = arith.constant 0 : index
    %c0_25 = arith.constant 0 : index
    %21 = vector.load %arg6[%c0_24, %c0_25] : memref<512x128xf32, #tpu.memory_space<vmem>>, vector<512x128xf32>
    tpu.vector_store %arg6[%c0_24, %c0_25], %20 {strides = array<i32>} : memref<512x128xf32, #tpu.memory_space<vmem>>, vector<512x128xf32>,
    %c1_26 = arith.constant 1 : index
    %c32_27 = arith.constant 32 : index
    %c0_28 = arith.constant 0 : index
    %22 = vector.load %arg0[%c1_26, %c32_27, %c0_28] : memref<2x544x24xbf16, #tpu.memory_space<vmem>>, vector<1x512x24xbf16>
    %23 = vector.shape_cast %22 : vector<1x512x24xbf16> to vector<512x24xbf16>
    %c3 = arith.constant 3 : index
    %c0_29 = arith.constant 0 : index
    %c0_30 = arith.constant 0 : index
    %24 = vector.load %arg1[%c3, %c0_29, %c0_30] : memref<4x24x128xbf16, #tpu.memory_space<vmem>>, vector<1x24x128xbf16>
    %25 = vector.shape_cast %24 : vector<1x24x128xbf16> to vector<24x128xbf16>
    %cst_31 = arith.constant dense<0.000000e+00> : vector<512x128xf32>
    %26 = tpu.matmul %23, %25, %cst_31 {dimension_numbers = #tpu.dot_dimension_numbers<[1], [0], [0], [1], [0, 0, 1, 1], [], []>} : vector<512x24xbf16>, vector<24x128xbf16>, vector<512x128xf32> -> vector<512x128xf32>
    %c0_32 = arith.constant 0 : index
    %c0_33 = arith.constant 0 : index
    %27 = vector.load %arg6[%c0_32, %c0_33] : memref<512x128xf32, #tpu.memory_space<vmem>>, vector<512x128xf32>
    %28 = arith.addf %27, %26 : vector<512x128xf32>
    %c0_34 = arith.constant 0 : index
    %c0_35 = arith.constant 0 : index
    %29 = vector.load %arg6[%c0_34, %c0_35] : memref<512x128xf32, #tpu.memory_space<vmem>>, vector<512x128xf32>
    tpu.vector_store %arg6[%c0_34, %c0_35], %28 {strides = array<i32>} : memref<512x128xf32, #tpu.memory_space<vmem>>, vector<512x128xf32>,
    %c0_36 = arith.constant 0 : index
    %c0_37 = arith.constant 0 : index
    %30 = vector.load %arg6[%c0_36, %c0_37] : memref<512x128xf32, #tpu.memory_space<vmem>>, vector<512x128xf32>
    %c0_38 = arith.constant 0 : index
    %c0_39 = arith.constant 0 : index
    %31 = vector.load %arg2[%c0_38, %c0_39] : memref<1x128xf32, #tpu.memory_space<vmem>>, vector<1x128xf32>
    %32 = vector.broadcast %31 : vector<1x128xf32> to vector<512x128xf32>
    %33 = arith.addf %30, %32 : vector<512x128xf32>
    %cst_40 = arith.constant 0.000000e+00 : f32
    %34 = vector.broadcast %cst_40 : f32 to vector<512x128xf32>
    %35 = arith.cmpf ogt, %33, %34 : vector<512x128xf32>
    %cst_41 = arith.constant 2.000000e-01 : f32
    %36 = vector.broadcast %cst_41 : f32 to vector<512x128xf32>
    %37 = arith.mulf %36, %33 : vector<512x128xf32>
    %38 = arith.select %35, %33, %37 : vector<512x128xi1>, vector<512x128xf32>
    %c0_42 = arith.constant 0 : index
    %c0_43 = arith.constant 0 : index
    %39 = vector.load %arg5[%c0_42, %c0_43] : memref<512x128xf32, #tpu.memory_space<vmem>>, vector<512x128xf32>
    tpu.vector_store %arg5[%c0_42, %c0_43], %38 {strides = array<i32>} : memref<512x128xf32, #tpu.memory_space<vmem>>, vector<512x128xf32>,
    return
  }
}

module attributes {stable_mosaic.version = 11 : i64} {
  func.func @_fused_conv_layer_kernel(%arg0: memref<2x144x128xbf16, #tpu.memory_space<vmem>>, %arg1: memref<4x128x128xbf16, #tpu.memory_space<vmem>>, %arg2: memref<1x128xf32, #tpu.memory_space<vmem>>, %arg3: memref<1x128xf32, #tpu.memory_space<vmem>>, %arg4: memref<1x128xf32, #tpu.memory_space<vmem>>, %arg5: memref<128x128xf32, #tpu.memory_space<vmem>>, %arg6: memref<128x128xf32, #tpu.memory_space<vmem>>) attributes {dimension_semantics = [], scalar_prefetch = 0 : i64, scratch_operands = 1 : i64, tpu.core_type = #tpu.core_type<tc>} {
    %c0 = arith.constant 0 : index
    %c0_0 = arith.constant 0 : index
    %c0_1 = arith.constant 0 : index
    %0 = vector.load %arg0[%c0, %c0_0, %c0_1] : memref<2x144x128xbf16, #tpu.memory_space<vmem>>, vector<1x128x128xbf16>
    %1 = vector.shape_cast %0 : vector<1x128x128xbf16> to vector<128x128xbf16>
    %c0_2 = arith.constant 0 : index
    %c0_3 = arith.constant 0 : index
    %c0_4 = arith.constant 0 : index
    %2 = vector.load %arg1[%c0_2, %c0_3, %c0_4] : memref<4x128x128xbf16, #tpu.memory_space<vmem>>, vector<1x128x128xbf16>
    %3 = vector.shape_cast %2 : vector<1x128x128xbf16> to vector<128x128xbf16>
    %cst = arith.constant dense<0.000000e+00> : vector<128x128xf32>
    %4 = tpu.matmul %1, %3, %cst {dimension_numbers = #tpu.dot_dimension_numbers<[1], [0], [0], [1], [0, 0, 1, 1], [], []>} : vector<128x128xbf16>, vector<128x128xbf16>, vector<128x128xf32> -> vector<128x128xf32>
    %c0_5 = arith.constant 0 : index
    %c0_6 = arith.constant 0 : index
    %5 = vector.load %arg6[%c0_5, %c0_6] : memref<128x128xf32, #tpu.memory_space<vmem>>, vector<128x128xf32>
    tpu.vector_store %arg6[%c0_5, %c0_6], %4 {strides = array<i32>} : memref<128x128xf32, #tpu.memory_space<vmem>>, vector<128x128xf32>,
    %c1 = arith.constant 1 : index
    %c0_7 = arith.constant 0 : index
    %c0_8 = arith.constant 0 : index
    %6 = vector.load %arg0[%c1, %c0_7, %c0_8] : memref<2x144x128xbf16, #tpu.memory_space<vmem>>, vector<1x128x128xbf16>
    %7 = vector.shape_cast %6 : vector<1x128x128xbf16> to vector<128x128xbf16>
    %c1_9 = arith.constant 1 : index
    %c0_10 = arith.constant 0 : index
    %c0_11 = arith.constant 0 : index
    %8 = vector.load %arg1[%c1_9, %c0_10, %c0_11] : memref<4x128x128xbf16, #tpu.memory_space<vmem>>, vector<1x128x128xbf16>
    %9 = vector.shape_cast %8 : vector<1x128x128xbf16> to vector<128x128xbf16>
    %cst_12 = arith.constant dense<0.000000e+00> : vector<128x128xf32>
    %10 = tpu.matmul %7, %9, %cst_12 {dimension_numbers = #tpu.dot_dimension_numbers<[1], [0], [0], [1], [0, 0, 1, 1], [], []>} : vector<128x128xbf16>, vector<128x128xbf16>, vector<128x128xf32> -> vector<128x128xf32>
    %c0_13 = arith.constant 0 : index
    %c0_14 = arith.constant 0 : index
    %11 = vector.load %arg6[%c0_13, %c0_14] : memref<128x128xf32, #tpu.memory_space<vmem>>, vector<128x128xf32>
    %12 = arith.addf %11, %10 : vector<128x128xf32>
    %c0_15 = arith.constant 0 : index
    %c0_16 = arith.constant 0 : index
    %13 = vector.load %arg6[%c0_15, %c0_16] : memref<128x128xf32, #tpu.memory_space<vmem>>, vector<128x128xf32>
    tpu.vector_store %arg6[%c0_15, %c0_16], %12 {strides = array<i32>} : memref<128x128xf32, #tpu.memory_space<vmem>>, vector<128x128xf32>,
    %c0_17 = arith.constant 0 : index
    %c16 = arith.constant 16 : index
    %c0_18 = arith.constant 0 : index
    %14 = vector.load %arg0[%c0_17, %c16, %c0_18] : memref<2x144x128xbf16, #tpu.memory_space<vmem>>, vector<1x128x128xbf16>
    %15 = vector.shape_cast %14 : vector<1x128x128xbf16> to vector<128x128xbf16>
    %c2 = arith.constant 2 : index
    %c0_19 = arith.constant 0 : index
    %c0_20 = arith.constant 0 : index
    %16 = vector.load %arg1[%c2, %c0_19, %c0_20] : memref<4x128x128xbf16, #tpu.memory_space<vmem>>, vector<1x128x128xbf16>
    %17 = vector.shape_cast %16 : vector<1x128x128xbf16> to vector<128x128xbf16>
    %cst_21 = arith.constant dense<0.000000e+00> : vector<128x128xf32>
    %18 = tpu.matmul %15, %17, %cst_21 {dimension_numbers = #tpu.dot_dimension_numbers<[1], [0], [0], [1], [0, 0, 1, 1], [], []>} : vector<128x128xbf16>, vector<128x128xbf16>, vector<128x128xf32> -> vector<128x128xf32>
    %c0_22 = arith.constant 0 : index
    %c0_23 = arith.constant 0 : index
    %19 = vector.load %arg6[%c0_22, %c0_23] : memref<128x128xf32, #tpu.memory_space<vmem>>, vector<128x128xf32>
    %20 = arith.addf %19, %18 : vector<128x128xf32>
    %c0_24 = arith.constant 0 : index
    %c0_25 = arith.constant 0 : index
    %21 = vector.load %arg6[%c0_24, %c0_25] : memref<128x128xf32, #tpu.memory_space<vmem>>, vector<128x128xf32>
    tpu.vector_store %arg6[%c0_24, %c0_25], %20 {strides = array<i32>} : memref<128x128xf32, #tpu.memory_space<vmem>>, vector<128x128xf32>,
    %c1_26 = arith.constant 1 : index
    %c16_27 = arith.constant 16 : index
    %c0_28 = arith.constant 0 : index
    %22 = vector.load %arg0[%c1_26, %c16_27, %c0_28] : memref<2x144x128xbf16, #tpu.memory_space<vmem>>, vector<1x128x128xbf16>
    %23 = vector.shape_cast %22 : vector<1x128x128xbf16> to vector<128x128xbf16>
    %c3 = arith.constant 3 : index
    %c0_29 = arith.constant 0 : index
    %c0_30 = arith.constant 0 : index
    %24 = vector.load %arg1[%c3, %c0_29, %c0_30] : memref<4x128x128xbf16, #tpu.memory_space<vmem>>, vector<1x128x128xbf16>
    %25 = vector.shape_cast %24 : vector<1x128x128xbf16> to vector<128x128xbf16>
    %cst_31 = arith.constant dense<0.000000e+00> : vector<128x128xf32>
    %26 = tpu.matmul %23, %25, %cst_31 {dimension_numbers = #tpu.dot_dimension_numbers<[1], [0], [0], [1], [0, 0, 1, 1], [], []>} : vector<128x128xbf16>, vector<128x128xbf16>, vector<128x128xf32> -> vector<128x128xf32>
    %c0_32 = arith.constant 0 : index
    %c0_33 = arith.constant 0 : index
    %27 = vector.load %arg6[%c0_32, %c0_33] : memref<128x128xf32, #tpu.memory_space<vmem>>, vector<128x128xf32>
    %28 = arith.addf %27, %26 : vector<128x128xf32>
    %c0_34 = arith.constant 0 : index
    %c0_35 = arith.constant 0 : index
    %29 = vector.load %arg6[%c0_34, %c0_35] : memref<128x128xf32, #tpu.memory_space<vmem>>, vector<128x128xf32>
    tpu.vector_store %arg6[%c0_34, %c0_35], %28 {strides = array<i32>} : memref<128x128xf32, #tpu.memory_space<vmem>>, vector<128x128xf32>,
    %c0_36 = arith.constant 0 : index
    %c0_37 = arith.constant 0 : index
    %30 = vector.load %arg6[%c0_36, %c0_37] : memref<128x128xf32, #tpu.memory_space<vmem>>, vector<128x128xf32>
    %c0_38 = arith.constant 0 : index
    %c0_39 = arith.constant 0 : index
    %31 = vector.load %arg2[%c0_38, %c0_39] : memref<1x128xf32, #tpu.memory_space<vmem>>, vector<1x128xf32>
    %32 = vector.broadcast %31 : vector<1x128xf32> to vector<128x128xf32>
    %33 = arith.addf %30, %32 : vector<128x128xf32>
    %cst_40 = arith.constant dense<0.000000e+00> : vector<128xf32>
    %34 = vector.multi_reduction <add>, %33, %cst_40 [0] : vector<128x128xf32> to vector<128xf32>
    %35 = vector.shape_cast %34 : vector<128xf32> to vector<1x128xf32>
    %cst_41 = arith.constant 1.280000e+02 : f32
    %36 = vector.broadcast %cst_41 : f32 to vector<1x128xf32>
    %37 = arith.divf %35, %36 : vector<1x128xf32>
    %38 = vector.broadcast %37 : vector<1x128xf32> to vector<128x128xf32>
    %39 = arith.subf %33, %38 : vector<128x128xf32>
    %40 = arith.mulf %39, %39 : vector<128x128xf32>
    %cst_42 = arith.constant dense<0.000000e+00> : vector<128xf32>
    %41 = vector.multi_reduction <add>, %40, %cst_42 [0] : vector<128x128xf32> to vector<128xf32>
    %42 = vector.shape_cast %41 : vector<128xf32> to vector<1x128xf32>
    %cst_43 = arith.constant 1.280000e+02 : f32
    %43 = vector.broadcast %cst_43 : f32 to vector<1x128xf32>
    %44 = arith.divf %42, %43 : vector<1x128xf32>
    %45 = vector.broadcast %37 : vector<1x128xf32> to vector<128x128xf32>
    %46 = arith.subf %33, %45 : vector<128x128xf32>
    %c0_44 = arith.constant 0 : index
    %c0_45 = arith.constant 0 : index
    %47 = vector.load %arg3[%c0_44, %c0_45] : memref<1x128xf32, #tpu.memory_space<vmem>>, vector<1x128xf32>
    %cst_46 = arith.constant 9.99999974E-6 : f32
    %48 = vector.broadcast %cst_46 : f32 to vector<1x128xf32>
    %49 = arith.addf %44, %48 : vector<1x128xf32>
    %50 = math.rsqrt %49 : vector<1x128xf32>
    %51 = arith.mulf %47, %50 : vector<1x128xf32>
    %52 = vector.broadcast %51 : vector<1x128xf32> to vector<128x128xf32>
    %53 = arith.mulf %46, %52 : vector<128x128xf32>
    %c0_47 = arith.constant 0 : index
    %c0_48 = arith.constant 0 : index
    %54 = vector.load %arg4[%c0_47, %c0_48] : memref<1x128xf32, #tpu.memory_space<vmem>>, vector<1x128xf32>
    %55 = vector.broadcast %54 : vector<1x128xf32> to vector<128x128xf32>
    %56 = arith.addf %53, %55 : vector<128x128xf32>
    %cst_49 = arith.constant 0.000000e+00 : f32
    %57 = vector.broadcast %cst_49 : f32 to vector<128x128xf32>
    %58 = arith.cmpf ogt, %56, %57 : vector<128x128xf32>
    %cst_50 = arith.constant 2.000000e-01 : f32
    %59 = vector.broadcast %cst_50 : f32 to vector<128x128xf32>
    %60 = arith.mulf %59, %56 : vector<128x128xf32>
    %61 = arith.select %58, %56, %60 : vector<128x128xi1>, vector<128x128xf32>
    %c0_51 = arith.constant 0 : index
    %c0_52 = arith.constant 0 : index
    %62 = vector.load %arg5[%c0_51, %c0_52] : memref<128x128xf32, #tpu.memory_space<vmem>>, vector<128x128xf32>
    tpu.vector_store %arg5[%c0_51, %c0_52], %61 {strides = array<i32>} : memref<128x128xf32, #tpu.memory_space<vmem>>, vector<128x128xf32>,
    return
  }
}

module attributes {stable_mosaic.version = 11 : i64} {
  func.func @_fused_conv_layer_kernel(%arg0: memref<2x40x256xbf16, #tpu.memory_space<vmem>>, %arg1: memref<4x256x128xbf16, #tpu.memory_space<vmem>>, %arg2: memref<1x128xf32, #tpu.memory_space<vmem>>, %arg3: memref<1x128xf32, #tpu.memory_space<vmem>>, %arg4: memref<1x128xf32, #tpu.memory_space<vmem>>, %arg5: memref<32x128xf32, #tpu.memory_space<vmem>>, %arg6: memref<32x128xf32, #tpu.memory_space<vmem>>) attributes {dimension_semantics = [], scalar_prefetch = 0 : i64, scratch_operands = 1 : i64, tpu.core_type = #tpu.core_type<tc>} {
    %c0 = arith.constant 0 : index
    %c0_0 = arith.constant 0 : index
    %c0_1 = arith.constant 0 : index
    %0 = vector.load %arg0[%c0, %c0_0, %c0_1] : memref<2x40x256xbf16, #tpu.memory_space<vmem>>, vector<1x32x256xbf16>
    %1 = vector.shape_cast %0 : vector<1x32x256xbf16> to vector<32x256xbf16>
    %c0_2 = arith.constant 0 : index
    %c0_3 = arith.constant 0 : index
    %c0_4 = arith.constant 0 : index
    %2 = vector.load %arg1[%c0_2, %c0_3, %c0_4] : memref<4x256x128xbf16, #tpu.memory_space<vmem>>, vector<1x256x128xbf16>
    %3 = vector.shape_cast %2 : vector<1x256x128xbf16> to vector<256x128xbf16>
    %cst = arith.constant dense<0.000000e+00> : vector<32x128xf32>
    %4 = tpu.matmul %1, %3, %cst {dimension_numbers = #tpu.dot_dimension_numbers<[1], [0], [0], [1], [0, 0, 1, 1], [], []>} : vector<32x256xbf16>, vector<256x128xbf16>, vector<32x128xf32> -> vector<32x128xf32>
    %c0_5 = arith.constant 0 : index
    %c0_6 = arith.constant 0 : index
    %5 = vector.load %arg6[%c0_5, %c0_6] : memref<32x128xf32, #tpu.memory_space<vmem>>, vector<32x128xf32>
    tpu.vector_store %arg6[%c0_5, %c0_6], %4 {strides = array<i32>} : memref<32x128xf32, #tpu.memory_space<vmem>>, vector<32x128xf32>,
    %c1 = arith.constant 1 : index
    %c0_7 = arith.constant 0 : index
    %c0_8 = arith.constant 0 : index
    %6 = vector.load %arg0[%c1, %c0_7, %c0_8] : memref<2x40x256xbf16, #tpu.memory_space<vmem>>, vector<1x32x256xbf16>
    %7 = vector.shape_cast %6 : vector<1x32x256xbf16> to vector<32x256xbf16>
    %c1_9 = arith.constant 1 : index
    %c0_10 = arith.constant 0 : index
    %c0_11 = arith.constant 0 : index
    %8 = vector.load %arg1[%c1_9, %c0_10, %c0_11] : memref<4x256x128xbf16, #tpu.memory_space<vmem>>, vector<1x256x128xbf16>
    %9 = vector.shape_cast %8 : vector<1x256x128xbf16> to vector<256x128xbf16>
    %cst_12 = arith.constant dense<0.000000e+00> : vector<32x128xf32>
    %10 = tpu.matmul %7, %9, %cst_12 {dimension_numbers = #tpu.dot_dimension_numbers<[1], [0], [0], [1], [0, 0, 1, 1], [], []>} : vector<32x256xbf16>, vector<256x128xbf16>, vector<32x128xf32> -> vector<32x128xf32>
    %c0_13 = arith.constant 0 : index
    %c0_14 = arith.constant 0 : index
    %11 = vector.load %arg6[%c0_13, %c0_14] : memref<32x128xf32, #tpu.memory_space<vmem>>, vector<32x128xf32>
    %12 = arith.addf %11, %10 : vector<32x128xf32>
    %c0_15 = arith.constant 0 : index
    %c0_16 = arith.constant 0 : index
    %13 = vector.load %arg6[%c0_15, %c0_16] : memref<32x128xf32, #tpu.memory_space<vmem>>, vector<32x128xf32>
    tpu.vector_store %arg6[%c0_15, %c0_16], %12 {strides = array<i32>} : memref<32x128xf32, #tpu.memory_space<vmem>>, vector<32x128xf32>,
    %c0_17 = arith.constant 0 : index
    %c8 = arith.constant 8 : index
    %c0_18 = arith.constant 0 : index
    %14 = vector.load %arg0[%c0_17, %c8, %c0_18] : memref<2x40x256xbf16, #tpu.memory_space<vmem>>, vector<1x32x256xbf16>
    %15 = vector.shape_cast %14 : vector<1x32x256xbf16> to vector<32x256xbf16>
    %c2 = arith.constant 2 : index
    %c0_19 = arith.constant 0 : index
    %c0_20 = arith.constant 0 : index
    %16 = vector.load %arg1[%c2, %c0_19, %c0_20] : memref<4x256x128xbf16, #tpu.memory_space<vmem>>, vector<1x256x128xbf16>
    %17 = vector.shape_cast %16 : vector<1x256x128xbf16> to vector<256x128xbf16>
    %cst_21 = arith.constant dense<0.000000e+00> : vector<32x128xf32>
    %18 = tpu.matmul %15, %17, %cst_21 {dimension_numbers = #tpu.dot_dimension_numbers<[1], [0], [0], [1], [0, 0, 1, 1], [], []>} : vector<32x256xbf16>, vector<256x128xbf16>, vector<32x128xf32> -> vector<32x128xf32>
    %c0_22 = arith.constant 0 : index
    %c0_23 = arith.constant 0 : index
    %19 = vector.load %arg6[%c0_22, %c0_23] : memref<32x128xf32, #tpu.memory_space<vmem>>, vector<32x128xf32>
    %20 = arith.addf %19, %18 : vector<32x128xf32>
    %c0_24 = arith.constant 0 : index
    %c0_25 = arith.constant 0 : index
    %21 = vector.load %arg6[%c0_24, %c0_25] : memref<32x128xf32, #tpu.memory_space<vmem>>, vector<32x128xf32>
    tpu.vector_store %arg6[%c0_24, %c0_25], %20 {strides = array<i32>} : memref<32x128xf32, #tpu.memory_space<vmem>>, vector<32x128xf32>,
    %c1_26 = arith.constant 1 : index
    %c8_27 = arith.constant 8 : index
    %c0_28 = arith.constant 0 : index
    %22 = vector.load %arg0[%c1_26, %c8_27, %c0_28] : memref<2x40x256xbf16, #tpu.memory_space<vmem>>, vector<1x32x256xbf16>
    %23 = vector.shape_cast %22 : vector<1x32x256xbf16> to vector<32x256xbf16>
    %c3 = arith.constant 3 : index
    %c0_29 = arith.constant 0 : index
    %c0_30 = arith.constant 0 : index
    %24 = vector.load %arg1[%c3, %c0_29, %c0_30] : memref<4x256x128xbf16, #tpu.memory_space<vmem>>, vector<1x256x128xbf16>
    %25 = vector.shape_cast %24 : vector<1x256x128xbf16> to vector<256x128xbf16>
    %cst_31 = arith.constant dense<0.000000e+00> : vector<32x128xf32>
    %26 = tpu.matmul %23, %25, %cst_31 {dimension_numbers = #tpu.dot_dimension_numbers<[1], [0], [0], [1], [0, 0, 1, 1], [], []>} : vector<32x256xbf16>, vector<256x128xbf16>, vector<32x128xf32> -> vector<32x128xf32>
    %c0_32 = arith.constant 0 : index
    %c0_33 = arith.constant 0 : index
    %27 = vector.load %arg6[%c0_32, %c0_33] : memref<32x128xf32, #tpu.memory_space<vmem>>, vector<32x128xf32>
    %28 = arith.addf %27, %26 : vector<32x128xf32>
    %c0_34 = arith.constant 0 : index
    %c0_35 = arith.constant 0 : index
    %29 = vector.load %arg6[%c0_34, %c0_35] : memref<32x128xf32, #tpu.memory_space<vmem>>, vector<32x128xf32>
    tpu.vector_store %arg6[%c0_34, %c0_35], %28 {strides = array<i32>} : memref<32x128xf32, #tpu.memory_space<vmem>>, vector<32x128xf32>,
    %c0_36 = arith.constant 0 : index
    %c0_37 = arith.constant 0 : index
    %30 = vector.load %arg6[%c0_36, %c0_37] : memref<32x128xf32, #tpu.memory_space<vmem>>, vector<32x128xf32>
    %c0_38 = arith.constant 0 : index
    %c0_39 = arith.constant 0 : index
    %31 = vector.load %arg2[%c0_38, %c0_39] : memref<1x128xf32, #tpu.memory_space<vmem>>, vector<1x128xf32>
    %32 = vector.broadcast %31 : vector<1x128xf32> to vector<32x128xf32>
    %33 = arith.addf %30, %32 : vector<32x128xf32>
    %cst_40 = arith.constant dense<0.000000e+00> : vector<128xf32>
    %34 = vector.multi_reduction <add>, %33, %cst_40 [0] : vector<32x128xf32> to vector<128xf32>
    %35 = vector.shape_cast %34 : vector<128xf32> to vector<1x128xf32>
    %cst_41 = arith.constant 3.200000e+01 : f32
    %36 = vector.broadcast %cst_41 : f32 to vector<1x128xf32>
    %37 = arith.divf %35, %36 : vector<1x128xf32>
    %38 = vector.broadcast %37 : vector<1x128xf32> to vector<32x128xf32>
    %39 = arith.subf %33, %38 : vector<32x128xf32>
    %40 = arith.mulf %39, %39 : vector<32x128xf32>
    %cst_42 = arith.constant dense<0.000000e+00> : vector<128xf32>
    %41 = vector.multi_reduction <add>, %40, %cst_42 [0] : vector<32x128xf32> to vector<128xf32>
    %42 = vector.shape_cast %41 : vector<128xf32> to vector<1x128xf32>
    %cst_43 = arith.constant 3.200000e+01 : f32
    %43 = vector.broadcast %cst_43 : f32 to vector<1x128xf32>
    %44 = arith.divf %42, %43 : vector<1x128xf32>
    %45 = vector.broadcast %37 : vector<1x128xf32> to vector<32x128xf32>
    %46 = arith.subf %33, %45 : vector<32x128xf32>
    %c0_44 = arith.constant 0 : index
    %c0_45 = arith.constant 0 : index
    %47 = vector.load %arg3[%c0_44, %c0_45] : memref<1x128xf32, #tpu.memory_space<vmem>>, vector<1x128xf32>
    %cst_46 = arith.constant 9.99999974E-6 : f32
    %48 = vector.broadcast %cst_46 : f32 to vector<1x128xf32>
    %49 = arith.addf %44, %48 : vector<1x128xf32>
    %50 = math.rsqrt %49 : vector<1x128xf32>
    %51 = arith.mulf %47, %50 : vector<1x128xf32>
    %52 = vector.broadcast %51 : vector<1x128xf32> to vector<32x128xf32>
    %53 = arith.mulf %46, %52 : vector<32x128xf32>
    %c0_47 = arith.constant 0 : index
    %c0_48 = arith.constant 0 : index
    %54 = vector.load %arg4[%c0_47, %c0_48] : memref<1x128xf32, #tpu.memory_space<vmem>>, vector<1x128xf32>
    %55 = vector.broadcast %54 : vector<1x128xf32> to vector<32x128xf32>
    %56 = arith.addf %53, %55 : vector<32x128xf32>
    %cst_49 = arith.constant 0.000000e+00 : f32
    %57 = vector.broadcast %cst_49 : f32 to vector<32x128xf32>
    %58 = arith.cmpf ogt, %56, %57 : vector<32x128xf32>
    %cst_50 = arith.constant 2.000000e-01 : f32
    %59 = vector.broadcast %cst_50 : f32 to vector<32x128xf32>
    %60 = arith.mulf %59, %56 : vector<32x128xf32>
    %61 = arith.select %58, %56, %60 : vector<32x128xi1>, vector<32x128xf32>
    %c0_51 = arith.constant 0 : index
    %c0_52 = arith.constant 0 : index
    %62 = vector.load %arg5[%c0_51, %c0_52] : memref<32x128xf32, #tpu.memory_space<vmem>>, vector<32x128xf32>
    tpu.vector_store %arg5[%c0_51, %c0_52], %61 {strides = array<i32>} : memref<32x128xf32, #tpu.memory_space<vmem>>, vector<32x128xf32>,
    return
  }
}

module attributes {stable_mosaic.version = 11 : i64} {
  func.func @_fused_conv_layer_kernel(%arg0: memref<1x36x512xbf16, #tpu.memory_space<vmem>>, %arg1: memref<4x512x256xbf16, #tpu.memory_space<vmem>>, %arg2: memref<1x256xf32, #tpu.memory_space<vmem>>, %arg3: memref<1x256xf32, #tpu.memory_space<vmem>>, %arg4: memref<1x256xf32, #tpu.memory_space<vmem>>, %arg5: memref<18x256xf32, #tpu.memory_space<vmem>>, %arg6: memref<18x256xf32, #tpu.memory_space<vmem>>) attributes {dimension_semantics = [], scalar_prefetch = 0 : i64, scratch_operands = 1 : i64, tpu.core_type = #tpu.core_type<tc>} {
    %c0 = arith.constant 0 : index
    %c0_0 = arith.constant 0 : index
    %c0_1 = arith.constant 0 : index
    %0 = vector.load %arg0[%c0, %c0_0, %c0_1] : memref<1x36x512xbf16, #tpu.memory_space<vmem>>, vector<1x18x512xbf16>
    %1 = vector.shape_cast %0 : vector<1x18x512xbf16> to vector<18x512xbf16>
    %c0_2 = arith.constant 0 : index
    %c0_3 = arith.constant 0 : index
    %c0_4 = arith.constant 0 : index
    %2 = vector.load %arg1[%c0_2, %c0_3, %c0_4] : memref<4x512x256xbf16, #tpu.memory_space<vmem>>, vector<1x512x256xbf16>
    %3 = vector.shape_cast %2 : vector<1x512x256xbf16> to vector<512x256xbf16>
    %cst = arith.constant dense<0.000000e+00> : vector<18x256xf32>
    %4 = tpu.matmul %1, %3, %cst {dimension_numbers = #tpu.dot_dimension_numbers<[1], [0], [0], [1], [0, 0, 1, 1], [], []>} : vector<18x512xbf16>, vector<512x256xbf16>, vector<18x256xf32> -> vector<18x256xf32>
    %c0_5 = arith.constant 0 : index
    %c0_6 = arith.constant 0 : index
    %5 = vector.load %arg6[%c0_5, %c0_6] : memref<18x256xf32, #tpu.memory_space<vmem>>, vector<18x256xf32>
    tpu.vector_store %arg6[%c0_5, %c0_6], %4 {strides = array<i32>} : memref<18x256xf32, #tpu.memory_space<vmem>>, vector<18x256xf32>,
    %c0_7 = arith.constant 0 : index
    %c6 = arith.constant 6 : index
    %c0_8 = arith.constant 0 : index
    %6 = vector.load %arg0[%c0_7, %c6, %c0_8] : memref<1x36x512xbf16, #tpu.memory_space<vmem>>, vector<1x18x512xbf16>
    %7 = vector.shape_cast %6 : vector<1x18x512xbf16> to vector<18x512xbf16>
    %c1 = arith.constant 1 : index
    %c0_9 = arith.constant 0 : index
    %c0_10 = arith.constant 0 : index
    %8 = vector.load %arg1[%c1, %c0_9, %c0_10] : memref<4x512x256xbf16, #tpu.memory_space<vmem>>, vector<1x512x256xbf16>
    %9 = vector.shape_cast %8 : vector<1x512x256xbf16> to vector<512x256xbf16>
    %cst_11 = arith.constant dense<0.000000e+00> : vector<18x256xf32>
    %10 = tpu.matmul %7, %9, %cst_11 {dimension_numbers = #tpu.dot_dimension_numbers<[1], [0], [0], [1], [0, 0, 1, 1], [], []>} : vector<18x512xbf16>, vector<512x256xbf16>, vector<18x256xf32> -> vector<18x256xf32>
    %c0_12 = arith.constant 0 : index
    %c0_13 = arith.constant 0 : index
    %11 = vector.load %arg6[%c0_12, %c0_13] : memref<18x256xf32, #tpu.memory_space<vmem>>, vector<18x256xf32>
    %12 = arith.addf %11, %10 : vector<18x256xf32>
    %c0_14 = arith.constant 0 : index
    %c0_15 = arith.constant 0 : index
    %13 = vector.load %arg6[%c0_14, %c0_15] : memref<18x256xf32, #tpu.memory_space<vmem>>, vector<18x256xf32>
    tpu.vector_store %arg6[%c0_14, %c0_15], %12 {strides = array<i32>} : memref<18x256xf32, #tpu.memory_space<vmem>>, vector<18x256xf32>,
    %c0_16 = arith.constant 0 : index
    %c12 = arith.constant 12 : index
    %c0_17 = arith.constant 0 : index
    %14 = vector.load %arg0[%c0_16, %c12, %c0_17] : memref<1x36x512xbf16, #tpu.memory_space<vmem>>, vector<1x18x512xbf16>
    %15 = vector.shape_cast %14 : vector<1x18x512xbf16> to vector<18x512xbf16>
    %c2 = arith.constant 2 : index
    %c0_18 = arith.constant 0 : index
    %c0_19 = arith.constant 0 : index
    %16 = vector.load %arg1[%c2, %c0_18, %c0_19] : memref<4x512x256xbf16, #tpu.memory_space<vmem>>, vector<1x512x256xbf16>
    %17 = vector.shape_cast %16 : vector<1x512x256xbf16> to vector<512x256xbf16>
    %cst_20 = arith.constant dense<0.000000e+00> : vector<18x256xf32>
    %18 = tpu.matmul %15, %17, %cst_20 {dimension_numbers = #tpu.dot_dimension_numbers<[1], [0], [0], [1], [0, 0, 1, 1], [], []>} : vector<18x512xbf16>, vector<512x256xbf16>, vector<18x256xf32> -> vector<18x256xf32>
    %c0_21 = arith.constant 0 : index
    %c0_22 = arith.constant 0 : index
    %19 = vector.load %arg6[%c0_21, %c0_22] : memref<18x256xf32, #tpu.memory_space<vmem>>, vector<18x256xf32>
    %20 = arith.addf %19, %18 : vector<18x256xf32>
    %c0_23 = arith.constant 0 : index
    %c0_24 = arith.constant 0 : index
    %21 = vector.load %arg6[%c0_23, %c0_24] : memref<18x256xf32, #tpu.memory_space<vmem>>, vector<18x256xf32>
    tpu.vector_store %arg6[%c0_23, %c0_24], %20 {strides = array<i32>} : memref<18x256xf32, #tpu.memory_space<vmem>>, vector<18x256xf32>,
    %c0_25 = arith.constant 0 : index
    %c18 = arith.constant 18 : index
    %c0_26 = arith.constant 0 : index
    %22 = vector.load %arg0[%c0_25, %c18, %c0_26] : memref<1x36x512xbf16, #tpu.memory_space<vmem>>, vector<1x18x512xbf16>
    %23 = vector.shape_cast %22 : vector<1x18x512xbf16> to vector<18x512xbf16>
    %c3 = arith.constant 3 : index
    %c0_27 = arith.constant 0 : index
    %c0_28 = arith.constant 0 : index
    %24 = vector.load %arg1[%c3, %c0_27, %c0_28] : memref<4x512x256xbf16, #tpu.memory_space<vmem>>, vector<1x512x256xbf16>
    %25 = vector.shape_cast %24 : vector<1x512x256xbf16> to vector<512x256xbf16>
    %cst_29 = arith.constant dense<0.000000e+00> : vector<18x256xf32>
    %26 = tpu.matmul %23, %25, %cst_29 {dimension_numbers = #tpu.dot_dimension_numbers<[1], [0], [0], [1], [0, 0, 1, 1], [], []>} : vector<18x512xbf16>, vector<512x256xbf16>, vector<18x256xf32> -> vector<18x256xf32>
    %c0_30 = arith.constant 0 : index
    %c0_31 = arith.constant 0 : index
    %27 = vector.load %arg6[%c0_30, %c0_31] : memref<18x256xf32, #tpu.memory_space<vmem>>, vector<18x256xf32>
    %28 = arith.addf %27, %26 : vector<18x256xf32>
    %c0_32 = arith.constant 0 : index
    %c0_33 = arith.constant 0 : index
    %29 = vector.load %arg6[%c0_32, %c0_33] : memref<18x256xf32, #tpu.memory_space<vmem>>, vector<18x256xf32>
    tpu.vector_store %arg6[%c0_32, %c0_33], %28 {strides = array<i32>} : memref<18x256xf32, #tpu.memory_space<vmem>>, vector<18x256xf32>,
    %c0_34 = arith.constant 0 : index
    %c0_35 = arith.constant 0 : index
    %30 = vector.load %arg6[%c0_34, %c0_35] : memref<18x256xf32, #tpu.memory_space<vmem>>, vector<18x256xf32>
    %c0_36 = arith.constant 0 : index
    %c0_37 = arith.constant 0 : index
    %31 = vector.load %arg2[%c0_36, %c0_37] : memref<1x256xf32, #tpu.memory_space<vmem>>, vector<1x256xf32>
    %32 = vector.broadcast %31 : vector<1x256xf32> to vector<18x256xf32>
    %33 = arith.addf %30, %32 : vector<18x256xf32>
    %cst_38 = arith.constant dense<0.000000e+00> : vector<256xf32>
    %34 = vector.multi_reduction <add>, %33, %cst_38 [0] : vector<18x256xf32> to vector<256xf32>
    %35 = vector.shape_cast %34 : vector<256xf32> to vector<1x256xf32>
    %cst_39 = arith.constant 1.800000e+01 : f32
    %36 = vector.broadcast %cst_39 : f32 to vector<1x256xf32>
    %37 = arith.divf %35, %36 : vector<1x256xf32>
    %38 = vector.broadcast %37 : vector<1x256xf32> to vector<18x256xf32>
    %39 = arith.subf %33, %38 : vector<18x256xf32>
    %40 = arith.mulf %39, %39 : vector<18x256xf32>
    %cst_40 = arith.constant dense<0.000000e+00> : vector<256xf32>
    %41 = vector.multi_reduction <add>, %40, %cst_40 [0] : vector<18x256xf32> to vector<256xf32>
    %42 = vector.shape_cast %41 : vector<256xf32> to vector<1x256xf32>
    %cst_41 = arith.constant 1.800000e+01 : f32
    %43 = vector.broadcast %cst_41 : f32 to vector<1x256xf32>
    %44 = arith.divf %42, %43 : vector<1x256xf32>
    %45 = vector.broadcast %37 : vector<1x256xf32> to vector<18x256xf32>
    %46 = arith.subf %33, %45 : vector<18x256xf32>
    %c0_42 = arith.constant 0 : index
    %c0_43 = arith.constant 0 : index
    %47 = vector.load %arg3[%c0_42, %c0_43] : memref<1x256xf32, #tpu.memory_space<vmem>>, vector<1x256xf32>
    %cst_44 = arith.constant 9.99999974E-6 : f32
    %48 = vector.broadcast %cst_44 : f32 to vector<1x256xf32>
    %49 = arith.addf %44, %48 : vector<1x256xf32>
    %50 = math.rsqrt %49 : vector<1x256xf32>
    %51 = arith.mulf %47, %50 : vector<1x256xf32>
    %52 = vector.broadcast %51 : vector<1x256xf32> to vector<18x256xf32>
    %53 = arith.mulf %46, %52 : vector<18x256xf32>
    %c0_45 = arith.constant 0 : index
    %c0_46 = arith.constant 0 : index
    %54 = vector.load %arg4[%c0_45, %c0_46] : memref<1x256xf32, #tpu.memory_space<vmem>>, vector<1x256xf32>
    %55 = vector.broadcast %54 : vector<1x256xf32> to vector<18x256xf32>
    %56 = arith.addf %53, %55 : vector<18x256xf32>
    %cst_47 = arith.constant 0.000000e+00 : f32
    %57 = vector.broadcast %cst_47 : f32 to vector<18x256xf32>
    %58 = arith.cmpf ogt, %56, %57 : vector<18x256xf32>
    %cst_48 = arith.constant 2.000000e-01 : f32
    %59 = vector.broadcast %cst_48 : f32 to vector<18x256xf32>
    %60 = arith.mulf %59, %56 : vector<18x256xf32>
    %61 = arith.select %58, %56, %60 : vector<18x256xi1>, vector<18x256xf32>
    %c0_49 = arith.constant 0 : index
    %c0_50 = arith.constant 0 : index
    %62 = vector.load %arg5[%c0_49, %c0_50] : memref<18x256xf32, #tpu.memory_space<vmem>>, vector<18x256xf32>
    tpu.vector_store %arg5[%c0_49, %c0_50], %61 {strides = array<i32>} : memref<18x256xf32, #tpu.memory_space<vmem>>, vector<18x256xf32>,
    return
  }
}

module attributes {stable_mosaic.version = 11 : i64} {
  func.func @_fused_conv_layer_kernel(%arg0: memref<1x20x1024xbf16, #tpu.memory_space<vmem>>, %arg1: memref<4x1024x128xbf16, #tpu.memory_space<vmem>>, %arg2: memref<1x128xf32, #tpu.memory_space<vmem>>, %arg3: memref<1x128xf32, #tpu.memory_space<vmem>>, %arg4: memref<1x128xf32, #tpu.memory_space<vmem>>, %arg5: memref<8x128xf32, #tpu.memory_space<vmem>>, %arg6: memref<8x128xf32, #tpu.memory_space<vmem>>) attributes {dimension_semantics = [], scalar_prefetch = 0 : i64, scratch_operands = 1 : i64, tpu.core_type = #tpu.core_type<tc>} {
    %c0 = arith.constant 0 : index
    %c0_0 = arith.constant 0 : index
    %c0_1 = arith.constant 0 : index
    %0 = vector.load %arg0[%c0, %c0_0, %c0_1] : memref<1x20x1024xbf16, #tpu.memory_space<vmem>>, vector<1x8x1024xbf16>
    %1 = vector.shape_cast %0 : vector<1x8x1024xbf16> to vector<8x1024xbf16>
    %c0_2 = arith.constant 0 : index
    %c0_3 = arith.constant 0 : index
    %c0_4 = arith.constant 0 : index
    %2 = vector.load %arg1[%c0_2, %c0_3, %c0_4] : memref<4x1024x128xbf16, #tpu.memory_space<vmem>>, vector<1x1024x128xbf16>
    %3 = vector.shape_cast %2 : vector<1x1024x128xbf16> to vector<1024x128xbf16>
    %cst = arith.constant dense<0.000000e+00> : vector<8x128xf32>
    %4 = tpu.matmul %1, %3, %cst {dimension_numbers = #tpu.dot_dimension_numbers<[1], [0], [0], [1], [0, 0, 1, 1], [], []>} : vector<8x1024xbf16>, vector<1024x128xbf16>, vector<8x128xf32> -> vector<8x128xf32>
    %c0_5 = arith.constant 0 : index
    %c0_6 = arith.constant 0 : index
    %5 = vector.load %arg6[%c0_5, %c0_6] : memref<8x128xf32, #tpu.memory_space<vmem>>, vector<8x128xf32>
    tpu.vector_store %arg6[%c0_5, %c0_6], %4 {strides = array<i32>} : memref<8x128xf32, #tpu.memory_space<vmem>>, vector<8x128xf32>,
    %c0_7 = arith.constant 0 : index
    %c4 = arith.constant 4 : index
    %c0_8 = arith.constant 0 : index
    %6 = vector.load %arg0[%c0_7, %c4, %c0_8] : memref<1x20x1024xbf16, #tpu.memory_space<vmem>>, vector<1x8x1024xbf16>
    %7 = vector.shape_cast %6 : vector<1x8x1024xbf16> to vector<8x1024xbf16>
    %c1 = arith.constant 1 : index
    %c0_9 = arith.constant 0 : index
    %c0_10 = arith.constant 0 : index
    %8 = vector.load %arg1[%c1, %c0_9, %c0_10] : memref<4x1024x128xbf16, #tpu.memory_space<vmem>>, vector<1x1024x128xbf16>
    %9 = vector.shape_cast %8 : vector<1x1024x128xbf16> to vector<1024x128xbf16>
    %cst_11 = arith.constant dense<0.000000e+00> : vector<8x128xf32>
    %10 = tpu.matmul %7, %9, %cst_11 {dimension_numbers = #tpu.dot_dimension_numbers<[1], [0], [0], [1], [0, 0, 1, 1], [], []>} : vector<8x1024xbf16>, vector<1024x128xbf16>, vector<8x128xf32> -> vector<8x128xf32>
    %c0_12 = arith.constant 0 : index
    %c0_13 = arith.constant 0 : index
    %11 = vector.load %arg6[%c0_12, %c0_13] : memref<8x128xf32, #tpu.memory_space<vmem>>, vector<8x128xf32>
    %12 = arith.addf %11, %10 : vector<8x128xf32>
    %c0_14 = arith.constant 0 : index
    %c0_15 = arith.constant 0 : index
    %13 = vector.load %arg6[%c0_14, %c0_15] : memref<8x128xf32, #tpu.memory_space<vmem>>, vector<8x128xf32>
    tpu.vector_store %arg6[%c0_14, %c0_15], %12 {strides = array<i32>} : memref<8x128xf32, #tpu.memory_space<vmem>>, vector<8x128xf32>,
    %c0_16 = arith.constant 0 : index
    %c8 = arith.constant 8 : index
    %c0_17 = arith.constant 0 : index
    %14 = vector.load %arg0[%c0_16, %c8, %c0_17] : memref<1x20x1024xbf16, #tpu.memory_space<vmem>>, vector<1x8x1024xbf16>
    %15 = vector.shape_cast %14 : vector<1x8x1024xbf16> to vector<8x1024xbf16>
    %c2 = arith.constant 2 : index
    %c0_18 = arith.constant 0 : index
    %c0_19 = arith.constant 0 : index
    %16 = vector.load %arg1[%c2, %c0_18, %c0_19] : memref<4x1024x128xbf16, #tpu.memory_space<vmem>>, vector<1x1024x128xbf16>
    %17 = vector.shape_cast %16 : vector<1x1024x128xbf16> to vector<1024x128xbf16>
    %cst_20 = arith.constant dense<0.000000e+00> : vector<8x128xf32>
    %18 = tpu.matmul %15, %17, %cst_20 {dimension_numbers = #tpu.dot_dimension_numbers<[1], [0], [0], [1], [0, 0, 1, 1], [], []>} : vector<8x1024xbf16>, vector<1024x128xbf16>, vector<8x128xf32> -> vector<8x128xf32>
    %c0_21 = arith.constant 0 : index
    %c0_22 = arith.constant 0 : index
    %19 = vector.load %arg6[%c0_21, %c0_22] : memref<8x128xf32, #tpu.memory_space<vmem>>, vector<8x128xf32>
    %20 = arith.addf %19, %18 : vector<8x128xf32>
    %c0_23 = arith.constant 0 : index
    %c0_24 = arith.constant 0 : index
    %21 = vector.load %arg6[%c0_23, %c0_24] : memref<8x128xf32, #tpu.memory_space<vmem>>, vector<8x128xf32>
    tpu.vector_store %arg6[%c0_23, %c0_24], %20 {strides = array<i32>} : memref<8x128xf32, #tpu.memory_space<vmem>>, vector<8x128xf32>,
    %c0_25 = arith.constant 0 : index
    %c12 = arith.constant 12 : index
    %c0_26 = arith.constant 0 : index
    %22 = vector.load %arg0[%c0_25, %c12, %c0_26] : memref<1x20x1024xbf16, #tpu.memory_space<vmem>>, vector<1x8x1024xbf16>
    %23 = vector.shape_cast %22 : vector<1x8x1024xbf16> to vector<8x1024xbf16>
    %c3 = arith.constant 3 : index
    %c0_27 = arith.constant 0 : index
    %c0_28 = arith.constant 0 : index
    %24 = vector.load %arg1[%c3, %c0_27, %c0_28] : memref<4x1024x128xbf16, #tpu.memory_space<vmem>>, vector<1x1024x128xbf16>
    %25 = vector.shape_cast %24 : vector<1x1024x128xbf16> to vector<1024x128xbf16>
    %cst_29 = arith.constant dense<0.000000e+00> : vector<8x128xf32>
    %26 = tpu.matmul %23, %25, %cst_29 {dimension_numbers = #tpu.dot_dimension_numbers<[1], [0], [0], [1], [0, 0, 1, 1], [], []>} : vector<8x1024xbf16>, vector<1024x128xbf16>, vector<8x128xf32> -> vector<8x128xf32>
    %c0_30 = arith.constant 0 : index
    %c0_31 = arith.constant 0 : index
    %27 = vector.load %arg6[%c0_30, %c0_31] : memref<8x128xf32, #tpu.memory_space<vmem>>, vector<8x128xf32>
    %28 = arith.addf %27, %26 : vector<8x128xf32>
    %c0_32 = arith.constant 0 : index
    %c0_33 = arith.constant 0 : index
    %29 = vector.load %arg6[%c0_32, %c0_33] : memref<8x128xf32, #tpu.memory_space<vmem>>, vector<8x128xf32>
    tpu.vector_store %arg6[%c0_32, %c0_33], %28 {strides = array<i32>} : memref<8x128xf32, #tpu.memory_space<vmem>>, vector<8x128xf32>,
    %c0_34 = arith.constant 0 : index
    %c0_35 = arith.constant 0 : index
    %30 = vector.load %arg6[%c0_34, %c0_35] : memref<8x128xf32, #tpu.memory_space<vmem>>, vector<8x128xf32>
    %c0_36 = arith.constant 0 : index
    %c0_37 = arith.constant 0 : index
    %31 = vector.load %arg2[%c0_36, %c0_37] : memref<1x128xf32, #tpu.memory_space<vmem>>, vector<1x128xf32>
    %32 = vector.broadcast %31 : vector<1x128xf32> to vector<8x128xf32>
    %33 = arith.addf %30, %32 : vector<8x128xf32>
    %cst_38 = arith.constant 0.000000e+00 : f32
    %34 = vector.broadcast %cst_38 : f32 to vector<8x128xf32>
    %35 = arith.subf %34, %33 : vector<8x128xf32>
    %36 = math.exp %35 : vector<8x128xf32>
    %cst_39 = arith.constant 1.000000e+00 : f32
    %37 = vector.broadcast %cst_39 : f32 to vector<8x128xf32>
    %38 = arith.addf %37, %36 : vector<8x128xf32>
    %cst_40 = arith.constant 1.000000e+00 : f32
    %39 = vector.broadcast %cst_40 : f32 to vector<8x128xf32>
    %40 = arith.divf %39, %38 : vector<8x128xf32>
    %c0_41 = arith.constant 0 : index
    %c0_42 = arith.constant 0 : index
    %41 = vector.load %arg5[%c0_41, %c0_42] : memref<8x128xf32, #tpu.memory_space<vmem>>, vector<8x128xf32>
    tpu.vector_store %arg5[%c0_41, %c0_42], %40 {strides = array<i32>} : memref<8x128xf32, #tpu.memory_space<vmem>>, vector<8x128xf32>,
    return
  }
}

</mosaic_0001>

<bundles_post_ra>
// kernel: discriminator_forward.5
= control target key start
LH: loop header
LB: loop body
LE: loop exit
PB: predicated region body
PF: predicated region fallthrough
CT: control target
= control target key end

     0   :  { %vm354_vm0 = vcmask 1043456   ;;  %vm257_vm1 = vcmask 195584   ;;  %s5535_s1 = inlined_call_operand.vmem [shape: bf16[4,24,128], index: 1, kind: input, shape index: {}]   ;;  %s5536_s3 = inlined_call_operand.vmem [shape: f32[1,128], index: 3, kind: input, shape index: {}]   ;;  %s5537_s4 = inlined_call_operand.vmem [shape: f32[1,128], index: 4, kind: input, shape index: {}]   ;;  %s5538_s0 = inlined_call_operand.vmem [shape: bf16[2,544,24], index: 0, kind: input, shape index: {}]   ;;  %s5539_s2 = inlined_call_operand.vmem [shape: f32[1,128], index: 2, kind: input, shape index: {}]   ;;  %s5540_s5 = inlined_call_operand.vmem [shape: f32[512,128], index: 5, kind: output, shape index: {}]  }
   0x1   :  { %v4564_v0 = vld [vmem:[%s5535_s1] sm:$0xff]   ;;  %v4565_v1 = vld [vmem:[%s5535_s1 + $0x18] sm:$0xff]   ;;  %v4566_v2 = vld [vmem:[%s5535_s1 + $0x8] ss:$0 sps:$4 sm:$0xff]  }
   0x2   :  { %4096 = vmatprep.subr.bf16.mxu1 %v4564_v0  ;;  %4232 = vmatprep.subr.bf16.mxu0 %v4565_v1  ;;  %v4567_v3 = vld [vmem:[%s5535_s1 + $0x20] ss:$0 sps:$4 sm:$0xff]   ;;  %v356_v4 = vsel %vm354_vm0, %v4566_v2, 0  ;;  %v4569_v7 = vld [vmem:[%s5538_s0 + $0x10] sm:$0xff]   ;;  %v4570_v8 = vld [vmem:[%s5538_s0 + $0x8] sm:$0xff]  }
   0x3   :  { %4097 = vmatpush3.bf16.msra.mxu1 %v4564_v0  ;;  %4233 = vmatpush3.bf16.msra.mxu0 %v4565_v1  ;;  %v4568_v5 = vld [vmem:[%s5538_s0] sm:$0xff]   ;;  %v1863_v6 = vsel %vm354_vm0, %v4567_v3, 0  ;;  %v4571_v9 = vld [vmem:[%s5535_s1 + $0xc] sm:$0xff]   ;;  %v4572_v10 = vld [vmem:[%s5538_s0 + $0x18] sm:$0xff]  }
   0x4   :  { %4560 = vmatprep.subr.msk.bf16.mxu1 %vm354_vm0, %v4566_v2  ;;  %4562 = vmatprep.subr.msk.bf16.mxu0 %vm354_vm0, %v4567_v3  ;;  %v4573_v11 = vld [vmem:[%s5535_s1 + $0x24] sm:$0xff]   ;;  %v4574_v12 = vld [vmem:[%s5538_s0 + $0x10] sm:$0xff]   ;;  %v4576_v14 = vld [vmem:[%s5538_s0 + $0x18] sm:$0xff]  }
   0x5   :  { %4100 = vmatprep.mubr.msk.bf16.mxu1 %vm257_vm1, %v4568_v5  ;;  %4236 = vmatprep.mubr.msk.bf16.mxu0 %vm257_vm1, %v4569_v7  ;;  %v4575_v13 = vld [vmem:[%s5538_s0 + $0x20] sm:$0xff]   ;;  %v4577_v15 = vld [vmem:[%s5538_s0 + $0x28] sm:$0xff]   ;;  %v4579_v17 = vld [vmem:[%s5538_s0 + $0x30] sm:$0xff]  }
   0x6   :  { %v4578_v16 = vld [vmem:[%s5538_s0 + $0x20] sm:$0xff]   ;;  %v4580_v18 = vld [vmem:[%s5538_s0 + $0x28] sm:$0xff]   ;;  %v4581_v19 = vld [vmem:[%s5538_s0 + $0x38] sm:$0xff]  }
   0x7   :  { %4099 = vmatpush3.bf16.msra.mxu1 %v356_v4  ;;  %4235 = vmatpush3.bf16.msra.mxu0 %v1863_v6  ;;  %v4582_v20 = vld [vmem:[%s5538_s0 + $0x30] sm:$0xff]   ;;  %v4583_v21 = vld [vmem:[%s5538_s0 + $0x40] sm:$0xff]   ;;  %v4584_v22 = vld [vmem:[%s5538_s0 + $0x38] sm:$0xff]  }
   0x8   :  { %4164 = vmatprep.subr.bf16.mxu1 %v4571_v9  ;;  %4300 = vmatprep.subr.bf16.mxu0 %v4573_v11  ;;  %v4585_v23 = vld [vmem:[%s5538_s0 + $0x48] sm:$0xff]   ;;  %v4586_v24 = vld [vmem:[%s5538_s0 + $0x40] sm:$0xff]   ;;  %v4587_v25 = vld [vmem:[%s5538_s0 + $0x50] sm:$0xff]  }
   0x9   :  { %v4588_v26 = vld [vmem:[%s5538_s0 + $0x48] sm:$0xff]   ;;  %v4589_v27 = vld [vmem:[%s5538_s0 + $0x58] sm:$0xff]   ;;  %v4590_v28 = vld [vmem:[%s5538_s0 + $0x50] sm:$0xff]  }
   0xa   :  { %4101 = vmatmul.mubr.msk.bf16.vlgmr.msra.gmra.mrb[0].mxu1 %vm257_vm1, %v4570_v8  ;;  %4237 = vmatmul.mubr.msk.bf16.vlgmr.msra.gmra.mrb[0].mxu0 %vm257_vm1, %v4572_v10  ;;  %v4591_v29 = vld [vmem:[%s5538_s0 + $0x60] sm:$0xff]   ;;  %v4605_v30 = vld [vmem:[%s5535_s1 + $0x14] ss:$0 sps:$4 sm:$0xff]   ;;  %v4607_v31 = vld [vmem:[%s5535_s1 + $0x2c] ss:$0 sps:$4 sm:$0xff]  }
   0xb   :  { %4165 = vmatpush3.bf16.msra.mxu1 %v4571_v9  ;;  %4301 = vmatpush3.bf16.msra.mxu0 %v4573_v11  ;;  %v1046_v32 = vsel %vm354_vm0, %v4605_v30, 0  ;;  %v2680_v33 = vsel %vm354_vm0, %v4607_v31, 0  ;;  %v4592_v34 = vld [vmem:[%s5538_s0 + $0x58] sm:$0xff]   ;;  %v4593_v35 = vld [vmem:[%s5538_s0 + $0x68] sm:$0xff]   ;;  %v4594_v36 = vld [vmem:[%s5538_s0 + $0x60] sm:$0xff]  }
   0xc   :  { %4104 = vmatprep.mubr.msk.bf16.mxu1 %vm257_vm1, %v4574_v12  ;;  %4240 = vmatprep.mubr.msk.bf16.mxu0 %vm257_vm1, %v4575_v13  ;;  %v4595_v37 = vld [vmem:[%s5538_s0 + $0x70] sm:$0xff]   ;;  %v4596_v38 = vld [vmem:[%s5538_s0 + $0x68] sm:$0xff]   ;;  %v4597_v39 = vld [vmem:[%s5538_s0 + $0x78] sm:$0xff]  }
   0xd   :  { %4561 = vmatprep.subr.msk.bf16.mxu1 %vm354_vm0, %v4605_v30  ;;  %4563 = vmatprep.subr.msk.bf16.mxu0 %vm354_vm0, %v4607_v31  ;;  %v4598_v40 = vld [vmem:[%s5538_s0 + $0x70] sm:$0xff]   ;;  %v4599_v41 = vld [vmem:[%s5538_s0 + $0x80] sm:$0xff]   ;;  %v4600_v42 = vld [vmem:[%s5538_s0 + $0x78] sm:$0xff]  }
   0xe   :  { %v4601_v43 = vld [vmem:[%s5538_s0 + $0x88] sm:$0xff]   ;;  %v4602_v44 = vld [vmem:[%s5538_s0 + $0x80] sm:$0xff]   ;;  %v4603_v45 = vld [vmem:[%s5538_s0 + $0x90] sm:$0xff]  }
   0xf   :  { %4167 = vmatpush3.bf16.msra.mxu1 %v1046_v32  ;;  %4303 = vmatpush3.bf16.msra.mxu0 %v2680_v33  ;;  %v4604_v46 = vld [vmem:[%s5538_s0 + $0x88] sm:$0xff]   ;;  %v4606_v47 = vld [vmem:[%s5538_s0 + $0x98] sm:$0xff]   ;;  %v4608_v48 = vld [vmem:[%s5538_s0 + $0x90] sm:$0xff]  }
  0x10   :  { %v4609_v49 = vld [vmem:[%s5538_s0 + $0xa0] sm:$0xff]   ;;  %v4610_v50 = vld [vmem:[%s5538_s0 + $0x98] sm:$0xff]   ;;  %v4611_v51 = vld [vmem:[%s5538_s0 + $0xa8] sm:$0xff]  }
  0x11   :  { %v4612_v52 = vld [vmem:[%s5538_s0 + $0xa0] sm:$0xff]   ;;  %v4613_v53 = vld [vmem:[%s5538_s0 + $0xb0] sm:$0xff]   ;;  %v4614_v54 = vld [vmem:[%s5538_s0 + $0xa8] sm:$0xff]  }
  0x12   :  { %4105 = vmatmul.mubr.msk.bf16.gmra.mrb[4].mxu1 %vm257_vm1, %v4576_v14  ;;  %4241 = vmatmul.mubr.msk.bf16.gmra.mrb[4].mxu0 %vm257_vm1, %v4577_v15  ;;  %v4615_v55 = vld [vmem:[%s5538_s0 + $0xb8] sm:$0xff]   ;;  %v4616_v56 = vld [vmem:[%s5538_s0 + $0xb0] sm:$0xff]   ;;  %v4617_v57 = vld [vmem:[%s5538_s0 + $0xc0] sm:$0xff]  }
  0x13   :  { %4108 = vmatprep.mubr.msk.bf16.mxu1 %vm257_vm1, %v4578_v16  ;;  %4244 = vmatprep.mubr.msk.bf16.mxu0 %vm257_vm1, %v4579_v17  ;;  %v4618_v58 = vld [vmem:[%s5538_s0 + $0xb8] sm:$0xff]   ;;  %v4619_v59 = vld [vmem:[%s5538_s0 + $0xc8] sm:$0xff]   ;;  %v4620_v60 = vld [vmem:[%s5538_s0 + $0xc0] sm:$0xff]  }
  0x14   :  { %v4621_v61 = vld [vmem:[%s5538_s0 + $0xd0] sm:$0xff]   ;;  %v4622_v62 = vld [vmem:[%s5538_s0 + $0xc8] sm:$0xff]   ;;  %v4623_v63 = vld [vmem:[%s5538_s0 + $0xd8] sm:$0xff]  }
  0x15   :  { %v4624_v0 = vld [vmem:[%s5538_s0 + $0xd0] sm:$0xff]   ;;  %v4625_v1 = vld [vmem:[%s5538_s0 + $0xe0] sm:$0xff]   ;;  %v4626_v2 = vld [vmem:[%s5538_s0 + $0xd8] sm:$0xff]  }
  0x16   :  { %v4627_v3 = vld [vmem:[%s5538_s0 + $0xe8] sm:$0xff]   ;;  %v4628_v4 = vld [vmem:[%s5538_s0 + $0xe0] sm:$0xff]   ;;  %v4629_v5 = vld [vmem:[%s5538_s0 + $0xf0] sm:$0xff]  }
  0x17   :  { %v4630_v6 = vld [vmem:[%s5538_s0 + $0xe8] sm:$0xff]   ;;  %v4631_v7 = vld [vmem:[%s5538_s0 + $0xf8] sm:$0xff]   ;;  %v4632_v8 = vld [vmem:[%s5538_s0 + $0xf0] sm:$0xff]  }
  0x18   :  { %v4633_v9 = vld [vmem:[%s5538_s0 + $0x100] sm:$0xff]   ;;  %v4634_v10 = vld [vmem:[%s5538_s0 + $0xf8] sm:$0xff]   ;;  %v4635_v11 = vld [vmem:[%s5538_s0 + $0x108] sm:$0xff]  }
  0x19   :  { %v4636_v12 = vld [vmem:[%s5538_s0 + $0x110] sm:$0xff]   ;;  %v4637_v13 = vld [vmem:[%s5538_s0 + $0x120] sm:$0xff]   ;;  %v4638_v14 = vld [vmem:[%s5538_s0 + $0x118] sm:$0xff]  }
  0x1a   :  { %4109 = vmatmul.mubr.msk.bf16.gmra.mrb[8].mxu1 %vm257_vm1, %v4580_v18  ;;  %4245 = vmatmul.mubr.msk.bf16.gmra.mrb[8].mxu0 %vm257_vm1, %v4581_v19  ;;  %v4639_v15 = vld [vmem:[%s5538_s0 + $0x128] sm:$0xff]   ;;  %v4640_v16 = vld [vmem:[%s5538_s0 + $0x120] sm:$0xff]   ;;  %v4641_v17 = vld [vmem:[%s5538_s0 + $0x130] sm:$0xff]  }
  0x1b   :  { %4112 = vmatprep.mubr.msk.bf16.mxu1 %vm257_vm1, %v4582_v20  ;;  %4248 = vmatprep.mubr.msk.bf16.mxu0 %vm257_vm1, %v4583_v21  ;;  %v4642_v18 = vld [vmem:[%s5538_s0 + $0x128] sm:$0xff]   ;;  %v4643_v19 = vld [vmem:[%s5538_s0 + $0x138] sm:$0xff]   ;;  %v4644_v20 = vld [vmem:[%s5538_s0 + $0x130] sm:$0xff]  }
  0x1c   :  { %v4645_v21 = vld [vmem:[%s5538_s0 + $0x140] sm:$0xff]   ;;  %v4654_v30 = vld [vmem:[%s5538_s0 + $0x158] sm:$0xff]   ;;  %v4655_v31 = vld [vmem:[%s5538_s0 + $0x168] sm:$0xff]  }
  0x1d   :  { %v4656_v32 = vld [vmem:[%s5538_s0 + $0x160] sm:$0xff]   ;;  %v4657_v33 = vld [vmem:[%s5538_s0 + $0x170] sm:$0xff]  }
  0x22   :  { %4113 = vmatmul.mubr.msk.bf16.gmra.mrb[12].mxu1 %vm257_vm1, %v4584_v22  ;;  %4249 = vmatmul.mubr.msk.bf16.gmra.mrb[12].mxu0 %vm257_vm1, %v4585_v23  ;;  %v4646_v22 = vld [vmem:[%s5538_s0 + $0x138] sm:$0xff]   ;;  %v4647_v23 = vld [vmem:[%s5538_s0 + $0x148] sm:$0xff]  }
  0x23   :  { %4116 = vmatprep.mubr.msk.bf16.mxu1 %vm257_vm1, %v4586_v24  ;;  %4252 = vmatprep.mubr.msk.bf16.mxu0 %vm257_vm1, %v4587_v25  ;;  %v4648_v24 = vld [vmem:[%s5538_s0 + $0x140] sm:$0xff]   ;;  %v4649_v25 = vld [vmem:[%s5538_s0 + $0x150] sm:$0xff]  }
  0x2a   :  { %4117 = vmatmul.mubr.msk.bf16.gmra.mrb[16].mxu1 %vm257_vm1, %v4588_v26  ;;  %4253 = vmatmul.mubr.msk.bf16.gmra.mrb[16].mxu0 %vm257_vm1, %v4589_v27  ;;  %v4650_v26 = vld [vmem:[%s5538_s0 + $0x148] sm:$0xff]   ;;  %v4651_v27 = vld [vmem:[%s5538_s0 + $0x158] sm:$0xff]  }
  0x2b   :  { %4120 = vmatprep.mubr.msk.bf16.mxu1 %vm257_vm1, %v4590_v28  ;;  %4256 = vmatprep.mubr.msk.bf16.mxu0 %vm257_vm1, %v4591_v29  ;;  %v4652_v28 = vld [vmem:[%s5538_s0 + $0x150] sm:$0xff]   ;;  %v4653_v29 = vld [vmem:[%s5538_s0 + $0x160] sm:$0xff]  }
  0x32   :  { %4121 = vmatmul.mubr.msk.bf16.gmra.mrb[20].mxu1 %vm257_vm1, %v4592_v34  ;;  %4257 = vmatmul.mubr.msk.bf16.gmra.mrb[20].mxu0 %vm257_vm1, %v4593_v35  ;;  %v4658_v34 = vld [vmem:[%s5538_s0 + $0x168] sm:$0xff]   ;;  %v4659_v35 = vld [vmem:[%s5538_s0 + $0x178] sm:$0xff]  }
  0x33   :  { %4124 = vmatprep.mubr.msk.bf16.mxu1 %vm257_vm1, %v4594_v36  ;;  %4260 = vmatprep.mubr.msk.bf16.mxu0 %vm257_vm1, %v4595_v37  ;;  %v4660_v36 = vld [vmem:[%s5538_s0 + $0x170] sm:$0xff]   ;;  %v4661_v37 = vld [vmem:[%s5538_s0 + $0x180] sm:$0xff]  }
  0x3a   :  { %4125 = vmatmul.mubr.msk.bf16.gmra.mrb[24].mxu1 %vm257_vm1, %v4596_v38  ;;  %4261 = vmatmul.mubr.msk.bf16.gmra.mrb[24].mxu0 %vm257_vm1, %v4597_v39  ;;  %v4662_v38 = vld [vmem:[%s5538_s0 + $0x178] sm:$0xff]   ;;  %v4663_v39 = vld [vmem:[%s5538_s0 + $0x188] sm:$0xff]  }
  0x3b   :  { %4128 = vmatprep.mubr.msk.bf16.mxu1 %vm257_vm1, %v4598_v40  ;;  %4264 = vmatprep.mubr.msk.bf16.mxu0 %vm257_vm1, %v4599_v41  ;;  %v4664_v40 = vld [vmem:[%s5538_s0 + $0x180] sm:$0xff]   ;;  %v4665_v41 = vld [vmem:[%s5538_s0 + $0x190] sm:$0xff]  }
  0x42   :  { %4129 = vmatmul.mubr.msk.bf16.gmra.mrb[28].mxu1 %vm257_vm1, %v4600_v42  ;;  %4265 = vmatmul.mubr.msk.bf16.gmra.mrb[28].mxu0 %vm257_vm1, %v4601_v43  ;;  %v4666_v42 = vld [vmem:[%s5538_s0 + $0x188] sm:$0xff]   ;;  %v4667_v43 = vld [vmem:[%s5538_s0 + $0x198] sm:$0xff]  }
  0x43   :  { %4132 = vmatprep.mubr.msk.bf16.mxu1 %vm257_vm1, %v4602_v44  ;;  %4268 = vmatprep.mubr.msk.bf16.mxu0 %vm257_vm1, %v4603_v45  ;;  %v4668_v44 = vld [vmem:[%s5538_s0 + $0x190] sm:$0xff]   ;;  %v4669_v45 = vld [vmem:[%s5538_s0 + $0x1a0] sm:$0xff]  }
  0x4a   :  { %4133 = vmatmul.mubr.msk.bf16.gmra.mrb[32].mxu1 %vm257_vm1, %v4604_v46  ;;  %4269 = vmatmul.mubr.msk.bf16.gmra.mrb[32].mxu0 %vm257_vm1, %v4606_v47  ;;  %v4670_v46 = vld [vmem:[%s5538_s0 + $0x198] sm:$0xff]   ;;  %v4671_v47 = vld [vmem:[%s5538_s0 + $0x1a8] sm:$0xff]  }
  0x4b   :  { %4136 = vmatprep.mubr.msk.bf16.mxu1 %vm257_vm1, %v4608_v48  ;;  %4272 = vmatprep.mubr.msk.bf16.mxu0 %vm257_vm1, %v4609_v49  ;;  %v4672_v48 = vld [vmem:[%s5538_s0 + $0x1a0] sm:$0xff]   ;;  %v4673_v49 = vld [vmem:[%s5538_s0 + $0x1b0] sm:$0xff]  }
  0x52   :  { %4137 = vmatmul.mubr.msk.bf16.gmra.mrb[36].mxu1 %vm257_vm1, %v4610_v50  ;;  %4273 = vmatmul.mubr.msk.bf16.gmra.mrb[36].mxu0 %vm257_vm1, %v4611_v51  ;;  %v4674_v50 = vld [vmem:[%s5538_s0 + $0x1a8] sm:$0xff]   ;;  %v4675_v51 = vld [vmem:[%s5538_s0 + $0x1b8] sm:$0xff]  }
  0x53   :  { %4140 = vmatprep.mubr.msk.bf16.mxu1 %vm257_vm1, %v4612_v52  ;;  %4276 = vmatprep.mubr.msk.bf16.mxu0 %vm257_vm1, %v4613_v53  ;;  %v4676_v52 = vld [vmem:[%s5538_s0 + $0x1b0] sm:$0xff]   ;;  %v4677_v53 = vld [vmem:[%s5538_s0 + $0x1c0] sm:$0xff]  }
  0x5a   :  { %4141 = vmatmul.mubr.msk.bf16.gmra.mrb[40].mxu1 %vm257_vm1, %v4614_v54  ;;  %4277 = vmatmul.mubr.msk.bf16.gmra.mrb[40].mxu0 %vm257_vm1, %v4615_v55  ;;  %v4678_v54 = vld [vmem:[%s5538_s0 + $0x1b8] sm:$0xff]   ;;  %v4679_v55 = vld [vmem:[%s5538_s0 + $0x1c8] sm:$0xff]  }
  0x5b   :  { %4144 = vmatprep.mubr.msk.bf16.mxu1 %vm257_vm1, %v4616_v56  ;;  %4280 = vmatprep.mubr.msk.bf16.mxu0 %vm257_vm1, %v4617_v57  ;;  %v4680_v56 = vld [vmem:[%s5538_s0 + $0x1c0] sm:$0xff]   ;;  %v4681_v57 = vld [vmem:[%s5538_s0 + $0x1d0] sm:$0xff]  }
  0x62   :  { %4145 = vmatmul.mubr.msk.bf16.gmra.mrb[44].mxu1 %vm257_vm1, %v4618_v58  ;;  %4281 = vmatmul.mubr.msk.bf16.gmra.mrb[44].mxu0 %vm257_vm1, %v4619_v59  ;;  %v4682_v58 = vld [vmem:[%s5538_s0 + $0x1c8] sm:$0xff]   ;;  %v4683_v59 = vld [vmem:[%s5538_s0 + $0x1d8] sm:$0xff]  }
  0x63   :  { %4148 = vmatprep.mubr.msk.bf16.mxu1 %vm257_vm1, %v4620_v60  ;;  %4284 = vmatprep.mubr.msk.bf16.mxu0 %vm257_vm1, %v4621_v61  ;;  %v4684_v60 = vld [vmem:[%s5538_s0 + $0x1d0] sm:$0xff]   ;;  %v4685_v61 = vld [vmem:[%s5538_s0 + $0x1e0] sm:$0xff]  }
  0x6a   :  { %4149 = vmatmul.mubr.msk.bf16.gmra.mrb[48].mxu1 %vm257_vm1, %v4622_v62  ;;  %4285 = vmatmul.mubr.msk.bf16.gmra.mrb[48].mxu0 %vm257_vm1, %v4623_v63  ;;  %v4686_v62 = vld [vmem:[%s5538_s0 + $0x1d8] sm:$0xff]   ;;  %v4687_v63 = vld [vmem:[%s5538_s0 + $0x1e8] sm:$0xff]  }
  0x6b   :  { %4152 = vmatprep.mubr.msk.bf16.mxu1 %vm257_vm1, %v4624_v0  ;;  %4288 = vmatprep.mubr.msk.bf16.mxu0 %vm257_vm1, %v4625_v1  ;;  %v4688_v0 = vld [vmem:[%s5538_s0 + $0x1e0] sm:$0xff]   ;;  %v4689_v1 = vld [vmem:[%s5538_s0 + $0x1f0] sm:$0xff]  }
  0x72   :  { %4153 = vmatmul.mubr.msk.bf16.gmra.mrb[52].mxu1 %vm257_vm1, %v4626_v2  ;;  %4289 = vmatmul.mubr.msk.bf16.gmra.mrb[52].mxu0 %vm257_vm1, %v4627_v3  ;;  %v4690_v2 = vld [vmem:[%s5538_s0 + $0x1e8] sm:$0xff]   ;;  %v4691_v3 = vld [vmem:[%s5538_s0 + $0x1f8] sm:$0xff]  }
  0x73   :  { %4156 = vmatprep.mubr.msk.bf16.mxu1 %vm257_vm1, %v4628_v4  ;;  %4292 = vmatprep.mubr.msk.bf16.mxu0 %vm257_vm1, %v4629_v5  ;;  %v4692_v4 = vld [vmem:[%s5538_s0 + $0x1f0] sm:$0xff]   ;;  %v4693_v5 = vld [vmem:[%s5538_s0 + $0x200] sm:$0xff]  }
  0x7a   :  { %4157 = vmatmul.mubr.msk.bf16.gmra.mrb[56].mxu1 %vm257_vm1, %v4630_v6  ;;  %4293 = vmatmul.mubr.msk.bf16.gmra.mrb[56].mxu0 %vm257_vm1, %v4631_v7  ;;  %v4694_v6 = vld [vmem:[%s5538_s0 + $0x1f8] sm:$0xff]   ;;  %v4695_v7 = vld [vmem:[%s5538_s0 + $0x208] sm:$0xff]  }
  0x7b   :  { %4160 = vmatprep.mubr.msk.bf16.mxu1 %vm257_vm1, %v4632_v8  ;;  %4296 = vmatprep.mubr.msk.bf16.mxu0 %vm257_vm1, %v4633_v9  ;;  %v4696_v8 = vld [vmem:[%s5538_s0 + $0x200] sm:$0xff]   ;;  %v4697_v9 = vld [vmem:[%s5538_s0 + $0x210] sm:$0xff]  }
  0x82   :  { %4161 = vmatmul.mubr.msk.bf16.gmra.mrb[60].mxu1 %vm257_vm1, %v4634_v10  ;;  %4297 = vmatmul.mubr.msk.bf16.gmra.mrb[60].mxu0 %vm257_vm1, %v4635_v11  ;;  %v4698_v10 = vld [vmem:[%s5538_s0 + $0x208] sm:$0xff]   ;;  %v4699_v11 = vld [vmem:[%s5538_s0 + $0x218] sm:$0xff]  }
  0x83   :  { %4168 = vmatprep.mubr.msk.bf16.mxu1 %vm257_vm1, %v4636_v12  ;;  %4304 = vmatprep.mubr.msk.bf16.mxu0 %vm257_vm1, %v4637_v13 }
  0x8a   :  { %4169 = vmatmul.mubr.msk.bf16.vlgmr.msra.gmra.mrb[0].mxu1 %vm257_vm1, %v4638_v14  ;;  %4305 = vmatmul.mubr.msk.bf16.vlgmr.msra.gmra.mrb[0].mxu0 %vm257_vm1, %v4639_v15  ;;  %v5277_v14 = vld [vmem:[%s5539_s2] ss:$0 sm:$0xff] }
  0x8b   :  { %4172 = vmatprep.mubr.msk.bf16.mxu1 %vm257_vm1, %v4640_v16  ;;  %4308 = vmatprep.mubr.msk.bf16.mxu0 %vm257_vm1, %v4641_v17 }
  0x92   :  { %4173 = vmatmul.mubr.msk.bf16.gmra.mrb[4].mxu1 %vm257_vm1, %v4642_v18  ;;  %4309 = vmatmul.mubr.msk.bf16.gmra.mrb[4].mxu0 %vm257_vm1, %v4643_v19 }
  0x93   :  { %4176 = vmatprep.mubr.msk.bf16.mxu1 %vm257_vm1, %v4644_v20  ;;  %4312 = vmatprep.mubr.msk.bf16.mxu0 %vm257_vm1, %v4645_v21 }
  0x9a   :  { %4177 = vmatmul.mubr.msk.bf16.gmra.mrb[8].mxu1 %vm257_vm1, %v4646_v22  ;;  %4313 = vmatmul.mubr.msk.bf16.gmra.mrb[8].mxu0 %vm257_vm1, %v4647_v23 }
  0x9b   :  { %4180 = vmatprep.mubr.msk.bf16.mxu1 %vm257_vm1, %v4648_v24  ;;  %4316 = vmatprep.mubr.msk.bf16.mxu0 %vm257_vm1, %v4649_v25 }
  0xa2   :  { %4181 = vmatmul.mubr.msk.bf16.gmra.mrb[12].mxu1 %vm257_vm1, %v4650_v26  ;;  %4317 = vmatmul.mubr.msk.bf16.gmra.mrb[12].mxu0 %vm257_vm1, %v4651_v27 }
  0xa3   :  { %4184 = vmatprep.mubr.msk.bf16.mxu1 %vm257_vm1, %v4652_v28  ;;  %4320 = vmatprep.mubr.msk.bf16.mxu0 %vm257_vm1, %v4653_v29 }
  0xaa   :  { %4185 = vmatmul.mubr.msk.bf16.gmra.mrb[16].mxu1 %vm257_vm1, %v4654_v30  ;;  %4321 = vmatmul.mubr.msk.bf16.gmra.mrb[16].mxu0 %vm257_vm1, %v4655_v31 }
  0xab   :  { %4188 = vmatprep.mubr.msk.bf16.mxu1 %vm257_vm1, %v4656_v32  ;;  %4324 = vmatprep.mubr.msk.bf16.mxu0 %vm257_vm1, %v4657_v33 }
  0xb2   :  { %4189 = vmatmul.mubr.msk.bf16.gmra.mrb[20].mxu1 %vm257_vm1, %v4658_v34  ;;  %4325 = vmatmul.mubr.msk.bf16.gmra.mrb[20].mxu0 %vm257_vm1, %v4659_v35 }
  0xb3   :  { %4192 = vmatprep.mubr.msk.bf16.mxu1 %vm257_vm1, %v4660_v36  ;;  %4328 = vmatprep.mubr.msk.bf16.mxu0 %vm257_vm1, %v4661_v37 }
  0xba   :  { %4193 = vmatmul.mubr.msk.bf16.gmra.mrb[24].mxu1 %vm257_vm1, %v4662_v38  ;;  %4329 = vmatmul.mubr.msk.bf16.gmra.mrb[24].mxu0 %vm257_vm1, %v4663_v39 }
  0xbb   :  { %4196 = vmatprep.mubr.msk.bf16.mxu1 %vm257_vm1, %v4664_v40  ;;  %4332 = vmatprep.mubr.msk.bf16.mxu0 %vm257_vm1, %v4665_v41 }
  0xc2   :  { %4197 = vmatmul.mubr.msk.bf16.gmra.mrb[28].mxu1 %vm257_vm1, %v4666_v42  ;;  %4333 = vmatmul.mubr.msk.bf16.gmra.mrb[28].mxu0 %vm257_vm1, %v4667_v43 }
  0xc3   :  { %4200 = vmatprep.mubr.msk.bf16.mxu1 %vm257_vm1, %v4668_v44  ;;  %4336 = vmatprep.mubr.msk.bf16.mxu0 %vm257_vm1, %v4669_v45 }
  0xca   :  { %4201 = vmatmul.mubr.msk.bf16.gmra.mrb[32].mxu1 %vm257_vm1, %v4670_v46  ;;  %4337 = vmatmul.mubr.msk.bf16.gmra.mrb[32].mxu0 %vm257_vm1, %v4671_v47 }
  0xcb   :  { %4204 = vmatprep.mubr.msk.bf16.mxu1 %vm257_vm1, %v4672_v48  ;;  %4340 = vmatprep.mubr.msk.bf16.mxu0 %vm257_vm1, %v4673_v49 }
  0xd2   :  { %4205 = vmatmul.mubr.msk.bf16.gmra.mrb[36].mxu1 %vm257_vm1, %v4674_v50  ;;  %4341 = vmatmul.mubr.msk.bf16.gmra.mrb[36].mxu0 %vm257_vm1, %v4675_v51 }
  0xd3   :  { %4208 = vmatprep.mubr.msk.bf16.mxu1 %vm257_vm1, %v4676_v52  ;;  %4344 = vmatprep.mubr.msk.bf16.mxu0 %vm257_vm1, %v4677_v53 }
  0xda   :  { %4209 = vmatmul.mubr.msk.bf16.gmra.mrb[40].mxu1 %vm257_vm1, %v4678_v54  ;;  %4345 = vmatmul.mubr.msk.bf16.gmra.mrb[40].mxu0 %vm257_vm1, %v4679_v55 }
  0xdb   :  { %4212 = vmatprep.mubr.msk.bf16.mxu1 %vm257_vm1, %v4680_v56  ;;  %4348 = vmatprep.mubr.msk.bf16.mxu0 %vm257_vm1, %v4681_v57 }
  0xe2   :  { %4213 = vmatmul.mubr.msk.bf16.gmra.mrb[44].mxu1 %vm257_vm1, %v4682_v58  ;;  %4349 = vmatmul.mubr.msk.bf16.gmra.mrb[44].mxu0 %vm257_vm1, %v4683_v59 }
  0xe3   :  { %4216 = vmatprep.mubr.msk.bf16.mxu1 %vm257_vm1, %v4684_v60  ;;  %4352 = vmatprep.mubr.msk.bf16.mxu0 %vm257_vm1, %v4685_v61 }
  0xea   :  { %4217 = vmatmul.mubr.msk.bf16.gmra.mrb[48].mxu1 %vm257_vm1, %v4686_v62  ;;  %4353 = vmatmul.mubr.msk.bf16.gmra.mrb[48].mxu0 %vm257_vm1, %v4687_v63 }
  0xeb   :  { %4220 = vmatprep.mubr.msk.bf16.mxu1 %vm257_vm1, %v4688_v0  ;;  %4356 = vmatprep.mubr.msk.bf16.mxu0 %vm257_vm1, %v4689_v1 }
  0xf2   :  { %4221 = vmatmul.mubr.msk.bf16.gmra.mrb[52].mxu1 %vm257_vm1, %v4690_v2  ;;  %4357 = vmatmul.mubr.msk.bf16.gmra.mrb[52].mxu0 %vm257_vm1, %v4691_v3 }
  0xf3   :  { %4224 = vmatprep.mubr.msk.bf16.mxu1 %vm257_vm1, %v4692_v4  ;;  %4360 = vmatprep.mubr.msk.bf16.mxu0 %vm257_vm1, %v4693_v5 }
  0xfa   :  { %4225 = vmatmul.mubr.msk.bf16.gmra.mrb[56].mxu1 %vm257_vm1, %v4694_v6  ;;  %4361 = vmatmul.mubr.msk.bf16.gmra.mrb[56].mxu0 %vm257_vm1, %v4695_v7 }
  0xfb   :  { %4228 = vmatprep.mubr.msk.bf16.mxu1 %vm257_vm1, %v4696_v8  ;;  %4364 = vmatprep.mubr.msk.bf16.mxu0 %vm257_vm1, %v4697_v9 }
 0x102   :  { %4229 = vmatmul.mubr.msk.bf16.gmra.mrb[60].mxu1 %vm257_vm1, %v4698_v10  ;;  %4365 = vmatmul.mubr.msk.bf16.gmra.mrb[60].mxu0 %vm257_vm1, %v4699_v11 }
 0x15d   :  { %v4170_v12 = vpop.f32.mrb[0].mxu1  ;;  %v4306_v13 = vpop.f32.mrb[0].mxu0 }
 0x15e   :  { %v1082_v15 = vpop.f32.mrb[1].mxu1  ;;  %v4368_v16 = vadd.f32 %v4306_v13, %v4170_v12  ;;  %v2716_v17 = vpop.f32.mrb[1].mxu0 }
 0x15f   :  { %v4171_v18 = vpop.f32.mrb[2].mxu1  ;;  %v4369_v19 = vadd.f32 %v2716_v17, %v1082_v15  ;;  %v4307_v20 = vpop.f32.mrb[2].mxu0 }
 0x160   :  { %v1085_v21 = vpop.f32.mrb[3].mxu1  ;;  %v3236_v22 = vadd.f32 %v4368_v16, %v5277_v14  ;;  %v4370_v23 = vadd.f32 %v4307_v20, %v4171_v18  ;;  %v2719_v24 = vpop.f32.mrb[3].mxu0 }
 0x161   :  { %v3234_v25 = vadd.f32 %v4369_v19, %v5277_v14  ;;  %v4371_v26 = vadd.f32 %v2719_v24, %v1085_v21 }
 0x162   :  { %vm3300_vm2 = vcmp.gt.f32.partialorder %v3236_v22, 0.0  ;;  %v3364_v27 = vmul.f32 0.2, %v3236_v22  ;;  %v3237_v28 = vadd.f32 %v4370_v23, %v5277_v14 }
 0x163   :  { %vm3298_vm3 = vcmp.gt.f32.partialorder %v3234_v25, 0.0  ;;  %v3362_v29 = vmul.f32 0.2, %v3234_v25  ;;  %v3235_v30 = vadd.f32 %v4371_v26, %v5277_v14 }
 0x164   :  { %v3428_v31 = vsel %vm3300_vm2, %v3236_v22, %v3364_v27  ;;  %vm3301_vm4 = vcmp.gt.f32.partialorder %v3237_v28, 0.0  ;;  %v3365_v32 = vmul.f32 0.2, %v3237_v28 }
 0x165   :  { %v4174_v33 = vpop.f32.mrb[4].mxu1  ;;  %3492 = vst [vmem:[%s5540_s5 + $0x10] sm:$0xff] %v3428_v31  ;;  %v3426_v34 = vsel %vm3298_vm3, %v3234_v25, %v3362_v29  ;;  %vm3299_vm5 = vcmp.gt.f32.partialorder %v3235_v30, 0.0  ;;  %v3363_v35 = vmul.f32 0.2, %v3235_v30  ;;  %v4310_v36 = vpop.f32.mrb[4].mxu0 }
 0x166   :  { %v1098_v37 = vpop.f32.mrb[5].mxu1  ;;  %3490 = vst [vmem:[%s5540_s5] sm:$0xff] %v3426_v34  ;;  %v3429_v38 = vsel %vm3301_vm4, %v3237_v28, %v3365_v32  ;;  %v4372_v39 = vadd.f32 %v4310_v36, %v4174_v33  ;;  %v2732_v40 = vpop.f32.mrb[5].mxu0 }
 0x167   :  { %v4175_v41 = vpop.f32.mrb[6].mxu1  ;;  %3493 = vst [vmem:[%s5540_s5 + $0x18] sm:$0xff] %v3429_v38  ;;  %v3427_v42 = vsel %vm3299_vm5, %v3235_v30, %v3363_v35  ;;  %v4373_v43 = vadd.f32 %v2732_v40, %v1098_v37  ;;  %v4311_v44 = vpop.f32.mrb[6].mxu0 }
 0x168   :  { %v1101_v45 = vpop.f32.mrb[7].mxu1  ;;  %3491 = vst [vmem:[%s5540_s5 + $0x8] sm:$0xff] %v3427_v42  ;;  %v3240_v46 = vadd.f32 %v4372_v39, %v5277_v14  ;;  %v4374_v47 = vadd.f32 %v4311_v44, %v4175_v41  ;;  %v2735_v48 = vpop.f32.mrb[7].mxu0 }
 0x169   :  { %v3238_v49 = vadd.f32 %v4373_v43, %v5277_v14  ;;  %v4375_v50 = vadd.f32 %v2735_v48, %v1101_v45 }
 0x16a   :  { %vm3304_vm6 = vcmp.gt.f32.partialorder %v3240_v46, 0.0  ;;  %v3368_v51 = vmul.f32 0.2, %v3240_v46  ;;  %v3241_v52 = vadd.f32 %v4374_v47, %v5277_v14 }
 0x16b   :  { %vm3302_vm7 = vcmp.gt.f32.partialorder %v3238_v49, 0.0  ;;  %v3366_v53 = vmul.f32 0.2, %v3238_v49  ;;  %v3239_v54 = vadd.f32 %v4375_v50, %v5277_v14 }
 0x16c   :  { %v3432_v55 = vsel %vm3304_vm6, %v3240_v46, %v3368_v51  ;;  %vm3305_vm8 = vcmp.gt.f32.partialorder %v3241_v52, 0.0  ;;  %v3369_v56 = vmul.f32 0.2, %v3241_v52 }
 0x16d   :  { %v4178_v57 = vpop.f32.mrb[8].mxu1  ;;  %3496 = vst [vmem:[%s5540_s5 + $0x30] sm:$0xff] %v3432_v55  ;;  %v3430_v58 = vsel %vm3302_vm7, %v3238_v49, %v3366_v53  ;;  %vm3303_vm9 = vcmp.gt.f32.partialorder %v3239_v54, 0.0  ;;  %v3367_v59 = vmul.f32 0.2, %v3239_v54  ;;  %v4314_v60 = vpop.f32.mrb[8].mxu0 }
 0x16e   :  { %v1114_v61 = vpop.f32.mrb[9].mxu1  ;;  %3494 = vst [vmem:[%s5540_s5 + $0x20] sm:$0xff] %v3430_v58  ;;  %v3433_v62 = vsel %vm3305_vm8, %v3241_v52, %v3369_v56  ;;  %v4376_v63 = vadd.f32 %v4314_v60, %v4178_v57  ;;  %v2748_v0 = vpop.f32.mrb[9].mxu0 }
 0x16f   :  { %v4179_v1 = vpop.f32.mrb[10].mxu1  ;;  %3497 = vst [vmem:[%s5540_s5 + $0x38] sm:$0xff] %v3433_v62  ;;  %v3431_v2 = vsel %vm3303_vm9, %v3239_v54, %v3367_v59  ;;  %v4377_v3 = vadd.f32 %v2748_v0, %v1114_v61  ;;  %v4315_v4 = vpop.f32.mrb[10].mxu0 }
 0x170   :  { %v1117_v5 = vpop.f32.mrb[11].mxu1  ;;  %3495 = vst [vmem:[%s5540_s5 + $0x28] sm:$0xff] %v3431_v2  ;;  %v3244_v6 = vadd.f32 %v4376_v63, %v5277_v14  ;;  %v4378_v7 = vadd.f32 %v4315_v4, %v4179_v1  ;;  %v2751_v8 = vpop.f32.mrb[11].mxu0 }
 0x171   :  { %v3242_v9 = vadd.f32 %v4377_v3, %v5277_v14  ;;  %v4379_v10 = vadd.f32 %v2751_v8, %v1117_v5 }
 0x172   :  { %vm3308_vm10 = vcmp.gt.f32.partialorder %v3244_v6, 0.0  ;;  %v3372_v11 = vmul.f32 0.2, %v3244_v6  ;;  %v3245_v12 = vadd.f32 %v4378_v7, %v5277_v14 }
 0x173   :  { %vm3306_vm11 = vcmp.gt.f32.partialorder %v3242_v9, 0.0  ;;  %v3370_v13 = vmul.f32 0.2, %v3242_v9  ;;  %v3243_v15 = vadd.f32 %v4379_v10, %v5277_v14 }
 0x174   :  { %v3436_v16 = vsel %vm3308_vm10, %v3244_v6, %v3372_v11  ;;  %vm3309_vm12 = vcmp.gt.f32.partialorder %v3245_v12, 0.0  ;;  %v3373_v17 = vmul.f32 0.2, %v3245_v12 }
 0x175   :  { %v4182_v18 = vpop.f32.mrb[12].mxu1  ;;  %3500 = vst [vmem:[%s5540_s5 + $0x50] sm:$0xff] %v3436_v16  ;;  %v3434_v19 = vsel %vm3306_vm11, %v3242_v9, %v3370_v13  ;;  %vm3307_vm13 = vcmp.gt.f32.partialorder %v3243_v15, 0.0  ;;  %v3371_v20 = vmul.f32 0.2, %v3243_v15  ;;  %v4318_v21 = vpop.f32.mrb[12].mxu0 }
 0x176   :  { %v1130_v22 = vpop.f32.mrb[13].mxu1  ;;  %3498 = vst [vmem:[%s5540_s5 + $0x40] sm:$0xff] %v3434_v19  ;;  %v3437_v23 = vsel %vm3309_vm12, %v3245_v12, %v3373_v17  ;;  %v4380_v24 = vadd.f32 %v4318_v21, %v4182_v18  ;;  %v2764_v25 = vpop.f32.mrb[13].mxu0 }
 0x177   :  { %v4183_v26 = vpop.f32.mrb[14].mxu1  ;;  %3501 = vst [vmem:[%s5540_s5 + $0x58] sm:$0xff] %v3437_v23  ;;  %v3435_v27 = vsel %vm3307_vm13, %v3243_v15, %v3371_v20  ;;  %v4381_v28 = vadd.f32 %v2764_v25, %v1130_v22  ;;  %v4319_v29 = vpop.f32.mrb[14].mxu0 }
 0x178   :  { %v1133_v30 = vpop.f32.mrb[15].mxu1  ;;  %3499 = vst [vmem:[%s5540_s5 + $0x48] sm:$0xff] %v3435_v27  ;;  %v3248_v31 = vadd.f32 %v4380_v24, %v5277_v14  ;;  %v4382_v32 = vadd.f32 %v4319_v29, %v4183_v26  ;;  %v2767_v33 = vpop.f32.mrb[15].mxu0 }
 0x179   :  { %v3246_v34 = vadd.f32 %v4381_v28, %v5277_v14  ;;  %v4383_v35 = vadd.f32 %v2767_v33, %v1133_v30 }
 0x17a   :  { %vm3312_vm14 = vcmp.gt.f32.partialorder %v3248_v31, 0.0  ;;  %v3376_v36 = vmul.f32 0.2, %v3248_v31  ;;  %v3249_v37 = vadd.f32 %v4382_v32, %v5277_v14 }
 0x17b   :  { %vm3310_vm15 = vcmp.gt.f32.partialorder %v3246_v34, 0.0  ;;  %v3374_v38 = vmul.f32 0.2, %v3246_v34  ;;  %v3247_v39 = vadd.f32 %v4383_v35, %v5277_v14 }
 0x17c   :  { %v3440_v40 = vsel %vm3312_vm14, %v3248_v31, %v3376_v36  ;;  %vm3313_vm0 = vcmp.gt.f32.partialorder %v3249_v37, 0.0  ;;  %v3377_v41 = vmul.f32 0.2, %v3249_v37 }
 0x17d   :  { %v4186_v42 = vpop.f32.mrb[16].mxu1  ;;  %3504 = vst [vmem:[%s5540_s5 + $0x70] sm:$0xff] %v3440_v40  ;;  %v3438_v43 = vsel %vm3310_vm15, %v3246_v34, %v3374_v38  ;;  %vm3311_vm1 = vcmp.gt.f32.partialorder %v3247_v39, 0.0  ;;  %v3375_v44 = vmul.f32 0.2, %v3247_v39  ;;  %v4322_v45 = vpop.f32.mrb[16].mxu0 }
 0x17e   :  { %v1146_v46 = vpop.f32.mrb[17].mxu1  ;;  %3502 = vst [vmem:[%s5540_s5 + $0x60] sm:$0xff] %v3438_v43  ;;  %v3441_v47 = vsel %vm3313_vm0, %v3249_v37, %v3377_v41  ;;  %v4384_v48 = vadd.f32 %v4322_v45, %v4186_v42  ;;  %v2780_v49 = vpop.f32.mrb[17].mxu0 }
 0x17f   :  { %v4187_v50 = vpop.f32.mrb[18].mxu1  ;;  %3505 = vst [vmem:[%s5540_s5 + $0x78] sm:$0xff] %v3441_v47  ;;  %v3439_v51 = vsel %vm3311_vm1, %v3247_v39, %v3375_v44  ;;  %v4385_v52 = vadd.f32 %v2780_v49, %v1146_v46  ;;  %v4323_v53 = vpop.f32.mrb[18].mxu0 }
 0x180   :  { %v1149_v54 = vpop.f32.mrb[19].mxu1  ;;  %3503 = vst [vmem:[%s5540_s5 + $0x68] sm:$0xff] %v3439_v51  ;;  %v3252_v55 = vadd.f32 %v4384_v48, %v5277_v14  ;;  %v4386_v56 = vadd.f32 %v4323_v53, %v4187_v50  ;;  %v2783_v57 = vpop.f32.mrb[19].mxu0 }
 0x181   :  { %v3250_v58 = vadd.f32 %v4385_v52, %v5277_v14  ;;  %v4387_v59 = vadd.f32 %v2783_v57, %v1149_v54 }
 0x182   :  { %vm3316_vm2 = vcmp.gt.f32.partialorder %v3252_v55, 0.0  ;;  %v3380_v60 = vmul.f32 0.2, %v3252_v55  ;;  %v3253_v61 = vadd.f32 %v4386_v56, %v5277_v14 }
 0x183   :  { %vm3314_vm3 = vcmp.gt.f32.partialorder %v3250_v58, 0.0  ;;  %v3378_v62 = vmul.f32 0.2, %v3250_v58  ;;  %v3251_v63 = vadd.f32 %v4387_v59, %v5277_v14 }
 0x184   :  { %v3444_v0 = vsel %vm3316_vm2, %v3252_v55, %v3380_v60  ;;  %vm3317_vm4 = vcmp.gt.f32.partialorder %v3253_v61, 0.0  ;;  %v3381_v1 = vmul.f32 0.2, %v3253_v61 }
 0x185   :  { %v4190_v2 = vpop.f32.mrb[20].mxu1  ;;  %3508 = vst [vmem:[%s5540_s5 + $0x90] sm:$0xff] %v3444_v0  ;;  %v3442_v3 = vsel %vm3314_vm3, %v3250_v58, %v3378_v62  ;;  %vm3315_vm5 = vcmp.gt.f32.partialorder %v3251_v63, 0.0  ;;  %v3379_v4 = vmul.f32 0.2, %v3251_v63  ;;  %v4326_v5 = vpop.f32.mrb[20].mxu0 }
 0x186   :  { %v1162_v6 = vpop.f32.mrb[21].mxu1  ;;  %3506 = vst [vmem:[%s5540_s5 + $0x80] sm:$0xff] %v3442_v3  ;;  %v3445_v7 = vsel %vm3317_vm4, %v3253_v61, %v3381_v1  ;;  %v4388_v8 = vadd.f32 %v4326_v5, %v4190_v2  ;;  %v2796_v9 = vpop.f32.mrb[21].mxu0 }
 0x187   :  { %v4191_v10 = vpop.f32.mrb[22].mxu1  ;;  %3509 = vst [vmem:[%s5540_s5 + $0x98] sm:$0xff] %v3445_v7  ;;  %v3443_v11 = vsel %vm3315_vm5, %v3251_v63, %v3379_v4  ;;  %v4389_v12 = vadd.f32 %v2796_v9, %v1162_v6  ;;  %v4327_v13 = vpop.f32.mrb[22].mxu0 }
 0x188   :  { %v1165_v15 = vpop.f32.mrb[23].mxu1  ;;  %3507 = vst [vmem:[%s5540_s5 + $0x88] sm:$0xff] %v3443_v11  ;;  %v3256_v16 = vadd.f32 %v4388_v8, %v5277_v14  ;;  %v4390_v17 = vadd.f32 %v4327_v13, %v4191_v10  ;;  %v2799_v18 = vpop.f32.mrb[23].mxu0 }
 0x189   :  { %v3254_v19 = vadd.f32 %v4389_v12, %v5277_v14  ;;  %v4391_v20 = vadd.f32 %v2799_v18, %v1165_v15 }
 0x18a   :  { %vm3320_vm6 = vcmp.gt.f32.partialorder %v3256_v16, 0.0  ;;  %v3384_v21 = vmul.f32 0.2, %v3256_v16  ;;  %v3257_v22 = vadd.f32 %v4390_v17, %v5277_v14 }
 0x18b   :  { %vm3318_vm7 = vcmp.gt.f32.partialorder %v3254_v19, 0.0  ;;  %v3382_v23 = vmul.f32 0.2, %v3254_v19  ;;  %v3255_v24 = vadd.f32 %v4391_v20, %v5277_v14 }
 0x18c   :  { %v3448_v25 = vsel %vm3320_vm6, %v3256_v16, %v3384_v21  ;;  %vm3321_vm8 = vcmp.gt.f32.partialorder %v3257_v22, 0.0  ;;  %v3385_v26 = vmul.f32 0.2, %v3257_v22 }
 0x18d   :  { %v4194_v27 = vpop.f32.mrb[24].mxu1  ;;  %3512 = vst [vmem:[%s5540_s5 + $0xb0] sm:$0xff] %v3448_v25  ;;  %v3446_v28 = vsel %vm3318_vm7, %v3254_v19, %v3382_v23  ;;  %vm3319_vm9 = vcmp.gt.f32.partialorder %v3255_v24, 0.0  ;;  %v3383_v29 = vmul.f32 0.2, %v3255_v24  ;;  %v4330_v30 = vpop.f32.mrb[24].mxu0 }
 0x18e   :  { %v1178_v31 = vpop.f32.mrb[25].mxu1  ;;  %3510 = vst [vmem:[%s5540_s5 + $0xa0] sm:$0xff] %v3446_v28  ;;  %v3449_v32 = vsel %vm3321_vm8, %v3257_v22, %v3385_v26  ;;  %v4392_v33 = vadd.f32 %v4330_v30, %v4194_v27  ;;  %v2812_v34 = vpop.f32.mrb[25].mxu0 }
 0x18f   :  { %v4195_v35 = vpop.f32.mrb[26].mxu1  ;;  %3513 = vst [vmem:[%s5540_s5 + $0xb8] sm:$0xff] %v3449_v32  ;;  %v3447_v36 = vsel %vm3319_vm9, %v3255_v24, %v3383_v29  ;;  %v4393_v37 = vadd.f32 %v2812_v34, %v1178_v31  ;;  %v4331_v38 = vpop.f32.mrb[26].mxu0 }
 0x190   :  { %v1181_v39 = vpop.f32.mrb[27].mxu1  ;;  %3511 = vst [vmem:[%s5540_s5 + $0xa8] sm:$0xff] %v3447_v36  ;;  %v3260_v40 = vadd.f32 %v4392_v33, %v5277_v14  ;;  %v4394_v41 = vadd.f32 %v4331_v38, %v4195_v35  ;;  %v2815_v42 = vpop.f32.mrb[27].mxu0 }
 0x191   :  { %v3258_v43 = vadd.f32 %v4393_v37, %v5277_v14  ;;  %v4395_v44 = vadd.f32 %v2815_v42, %v1181_v39 }
 0x192   :  { %vm3324_vm10 = vcmp.gt.f32.partialorder %v3260_v40, 0.0  ;;  %v3388_v45 = vmul.f32 0.2, %v3260_v40  ;;  %v3261_v46 = vadd.f32 %v4394_v41, %v5277_v14 }
 0x193   :  { %vm3322_vm11 = vcmp.gt.f32.partialorder %v3258_v43, 0.0  ;;  %v3386_v47 = vmul.f32 0.2, %v3258_v43  ;;  %v3259_v48 = vadd.f32 %v4395_v44, %v5277_v14 }
 0x194   :  { %v3452_v49 = vsel %vm3324_vm10, %v3260_v40, %v3388_v45  ;;  %vm3325_vm12 = vcmp.gt.f32.partialorder %v3261_v46, 0.0  ;;  %v3389_v50 = vmul.f32 0.2, %v3261_v46 }
 0x195   :  { %v4198_v51 = vpop.f32.mrb[28].mxu1  ;;  %3516 = vst [vmem:[%s5540_s5 + $0xd0] sm:$0xff] %v3452_v49  ;;  %v3450_v52 = vsel %vm3322_vm11, %v3258_v43, %v3386_v47  ;;  %vm3323_vm13 = vcmp.gt.f32.partialorder %v3259_v48, 0.0  ;;  %v3387_v53 = vmul.f32 0.2, %v3259_v48  ;;  %v4334_v54 = vpop.f32.mrb[28].mxu0 }
 0x196   :  { %v1194_v55 = vpop.f32.mrb[29].mxu1  ;;  %3514 = vst [vmem:[%s5540_s5 + $0xc0] sm:$0xff] %v3450_v52  ;;  %v3453_v56 = vsel %vm3325_vm12, %v3261_v46, %v3389_v50  ;;  %v4396_v57 = vadd.f32 %v4334_v54, %v4198_v51  ;;  %v2828_v58 = vpop.f32.mrb[29].mxu0 }
 0x197   :  { %v4199_v59 = vpop.f32.mrb[30].mxu1  ;;  %3517 = vst [vmem:[%s5540_s5 + $0xd8] sm:$0xff] %v3453_v56  ;;  %v3451_v60 = vsel %vm3323_vm13, %v3259_v48, %v3387_v53  ;;  %v4397_v61 = vadd.f32 %v2828_v58, %v1194_v55  ;;  %v4335_v62 = vpop.f32.mrb[30].mxu0 }
 0x198   :  { %v1197_v63 = vpop.f32.mrb[31].mxu1  ;;  %3515 = vst [vmem:[%s5540_s5 + $0xc8] sm:$0xff] %v3451_v60  ;;  %v3264_v0 = vadd.f32 %v4396_v57, %v5277_v14  ;;  %v4398_v1 = vadd.f32 %v4335_v62, %v4199_v59  ;;  %v2831_v2 = vpop.f32.mrb[31].mxu0 }
 0x199   :  { %v3262_v3 = vadd.f32 %v4397_v61, %v5277_v14  ;;  %v4399_v4 = vadd.f32 %v2831_v2, %v1197_v63 }
 0x19a   :  { %vm3328_vm14 = vcmp.gt.f32.partialorder %v3264_v0, 0.0  ;;  %v3392_v5 = vmul.f32 0.2, %v3264_v0  ;;  %v3265_v6 = vadd.f32 %v4398_v1, %v5277_v14 }
 0x19b   :  { %vm3326_vm15 = vcmp.gt.f32.partialorder %v3262_v3, 0.0  ;;  %v3390_v7 = vmul.f32 0.2, %v3262_v3  ;;  %v3263_v8 = vadd.f32 %v4399_v4, %v5277_v14 }
 0x19c   :  { %v3456_v9 = vsel %vm3328_vm14, %v3264_v0, %v3392_v5  ;;  %vm3329_vm0 = vcmp.gt.f32.partialorder %v3265_v6, 0.0  ;;  %v3393_v10 = vmul.f32 0.2, %v3265_v6 }
 0x19d   :  { %v4202_v11 = vpop.f32.mrb[32].mxu1  ;;  %3520 = vst [vmem:[%s5540_s5 + $0xf0] sm:$0xff] %v3456_v9  ;;  %v3454_v12 = vsel %vm3326_vm15, %v3262_v3, %v3390_v7  ;;  %vm3327_vm1 = vcmp.gt.f32.partialorder %v3263_v8, 0.0  ;;  %v3391_v13 = vmul.f32 0.2, %v3263_v8  ;;  %v4338_v15 = vpop.f32.mrb[32].mxu0 }
 0x19e   :  { %v1210_v16 = vpop.f32.mrb[33].mxu1  ;;  %3518 = vst [vmem:[%s5540_s5 + $0xe0] sm:$0xff] %v3454_v12  ;;  %v3457_v17 = vsel %vm3329_vm0, %v3265_v6, %v3393_v10  ;;  %v4400_v18 = vadd.f32 %v4338_v15, %v4202_v11  ;;  %v2844_v19 = vpop.f32.mrb[33].mxu0 }
 0x19f   :  { %v4203_v20 = vpop.f32.mrb[34].mxu1  ;;  %3521 = vst [vmem:[%s5540_s5 + $0xf8] sm:$0xff] %v3457_v17  ;;  %v3455_v21 = vsel %vm3327_vm1, %v3263_v8, %v3391_v13  ;;  %v4401_v22 = vadd.f32 %v2844_v19, %v1210_v16  ;;  %v4339_v23 = vpop.f32.mrb[34].mxu0 }
 0x1a0   :  { %v1213_v24 = vpop.f32.mrb[35].mxu1  ;;  %3519 = vst [vmem:[%s5540_s5 + $0xe8] sm:$0xff] %v3455_v21  ;;  %v3268_v25 = vadd.f32 %v4400_v18, %v5277_v14  ;;  %v4402_v26 = vadd.f32 %v4339_v23, %v4203_v20  ;;  %v2847_v27 = vpop.f32.mrb[35].mxu0 }
 0x1a1   :  { %v3266_v28 = vadd.f32 %v4401_v22, %v5277_v14  ;;  %v4403_v29 = vadd.f32 %v2847_v27, %v1213_v24 }
 0x1a2   :  { %vm3332_vm2 = vcmp.gt.f32.partialorder %v3268_v25, 0.0  ;;  %v3396_v30 = vmul.f32 0.2, %v3268_v25  ;;  %v3269_v31 = vadd.f32 %v4402_v26, %v5277_v14 }
 0x1a3   :  { %vm3330_vm3 = vcmp.gt.f32.partialorder %v3266_v28, 0.0  ;;  %v3394_v32 = vmul.f32 0.2, %v3266_v28  ;;  %v3267_v33 = vadd.f32 %v4403_v29, %v5277_v14 }
 0x1a4   :  { %v3460_v34 = vsel %vm3332_vm2, %v3268_v25, %v3396_v30  ;;  %vm3333_vm4 = vcmp.gt.f32.partialorder %v3269_v31, 0.0  ;;  %v3397_v35 = vmul.f32 0.2, %v3269_v31 }
 0x1a5   :  { %v4206_v36 = vpop.f32.mrb[36].mxu1  ;;  %3524 = vst [vmem:[%s5540_s5 + $0x110] sm:$0xff] %v3460_v34  ;;  %v3458_v37 = vsel %vm3330_vm3, %v3266_v28, %v3394_v32  ;;  %vm3331_vm5 = vcmp.gt.f32.partialorder %v3267_v33, 0.0  ;;  %v3395_v38 = vmul.f32 0.2, %v3267_v33  ;;  %v4342_v39 = vpop.f32.mrb[36].mxu0 }
 0x1a6   :  { %v1226_v40 = vpop.f32.mrb[37].mxu1  ;;  %3522 = vst [vmem:[%s5540_s5 + $0x100] sm:$0xff] %v3458_v37  ;;  %v3461_v41 = vsel %vm3333_vm4, %v3269_v31, %v3397_v35  ;;  %v4404_v42 = vadd.f32 %v4342_v39, %v4206_v36  ;;  %v2860_v43 = vpop.f32.mrb[37].mxu0 }
 0x1a7   :  { %v4207_v44 = vpop.f32.mrb[38].mxu1  ;;  %3525 = vst [vmem:[%s5540_s5 + $0x118] sm:$0xff] %v3461_v41  ;;  %v3459_v45 = vsel %vm3331_vm5, %v3267_v33, %v3395_v38  ;;  %v4405_v46 = vadd.f32 %v2860_v43, %v1226_v40  ;;  %v4343_v47 = vpop.f32.mrb[38].mxu0 }
 0x1a8   :  { %v1229_v48 = vpop.f32.mrb[39].mxu1  ;;  %3523 = vst [vmem:[%s5540_s5 + $0x108] sm:$0xff] %v3459_v45  ;;  %v3272_v49 = vadd.f32 %v4404_v42, %v5277_v14  ;;  %v4406_v50 = vadd.f32 %v4343_v47, %v4207_v44  ;;  %v2863_v51 = vpop.f32.mrb[39].mxu0 }
 0x1a9   :  { %v3270_v52 = vadd.f32 %v4405_v46, %v5277_v14  ;;  %v4407_v53 = vadd.f32 %v2863_v51, %v1229_v48 }
 0x1aa   :  { %vm3336_vm6 = vcmp.gt.f32.partialorder %v3272_v49, 0.0  ;;  %v3400_v54 = vmul.f32 0.2, %v3272_v49  ;;  %v3273_v55 = vadd.f32 %v4406_v50, %v5277_v14 }
 0x1ab   :  { %vm3334_vm7 = vcmp.gt.f32.partialorder %v3270_v52, 0.0  ;;  %v3398_v56 = vmul.f32 0.2, %v3270_v52  ;;  %v3271_v57 = vadd.f32 %v4407_v53, %v5277_v14 }
 0x1ac   :  { %v3464_v58 = vsel %vm3336_vm6, %v3272_v49, %v3400_v54  ;;  %vm3337_vm8 = vcmp.gt.f32.partialorder %v3273_v55, 0.0  ;;  %v3401_v59 = vmul.f32 0.2, %v3273_v55 }
 0x1ad   :  { %v4210_v60 = vpop.f32.mrb[40].mxu1  ;;  %3528 = vst [vmem:[%s5540_s5 + $0x130] sm:$0xff] %v3464_v58  ;;  %v3462_v61 = vsel %vm3334_vm7, %v3270_v52, %v3398_v56  ;;  %vm3335_vm9 = vcmp.gt.f32.partialorder %v3271_v57, 0.0  ;;  %v3399_v62 = vmul.f32 0.2, %v3271_v57  ;;  %v4346_v63 = vpop.f32.mrb[40].mxu0 }
 0x1ae   :  { %v1242_v0 = vpop.f32.mrb[41].mxu1  ;;  %3526 = vst [vmem:[%s5540_s5 + $0x120] sm:$0xff] %v3462_v61  ;;  %v3465_v1 = vsel %vm3337_vm8, %v3273_v55, %v3401_v59  ;;  %v4408_v2 = vadd.f32 %v4346_v63, %v4210_v60  ;;  %v2876_v3 = vpop.f32.mrb[41].mxu0 }
 0x1af   :  { %v4211_v4 = vpop.f32.mrb[42].mxu1  ;;  %3529 = vst [vmem:[%s5540_s5 + $0x138] sm:$0xff] %v3465_v1  ;;  %v3463_v5 = vsel %vm3335_vm9, %v3271_v57, %v3399_v62  ;;  %v4409_v6 = vadd.f32 %v2876_v3, %v1242_v0  ;;  %v4347_v7 = vpop.f32.mrb[42].mxu0 }
 0x1b0   :  { %v1245_v8 = vpop.f32.mrb[43].mxu1  ;;  %3527 = vst [vmem:[%s5540_s5 + $0x128] sm:$0xff] %v3463_v5  ;;  %v3276_v9 = vadd.f32 %v4408_v2, %v5277_v14  ;;  %v4410_v10 = vadd.f32 %v4347_v7, %v4211_v4  ;;  %v2879_v11 = vpop.f32.mrb[43].mxu0 }
 0x1b1   :  { %v3274_v12 = vadd.f32 %v4409_v6, %v5277_v14  ;;  %v4411_v13 = vadd.f32 %v2879_v11, %v1245_v8 }
 0x1b2   :  { %vm3340_vm10 = vcmp.gt.f32.partialorder %v3276_v9, 0.0  ;;  %v3404_v15 = vmul.f32 0.2, %v3276_v9  ;;  %v3277_v16 = vadd.f32 %v4410_v10, %v5277_v14 }
 0x1b3   :  { %vm3338_vm11 = vcmp.gt.f32.partialorder %v3274_v12, 0.0  ;;  %v3402_v17 = vmul.f32 0.2, %v3274_v12  ;;  %v3275_v18 = vadd.f32 %v4411_v13, %v5277_v14 }
 0x1b4   :  { %v3468_v19 = vsel %vm3340_vm10, %v3276_v9, %v3404_v15  ;;  %vm3341_vm12 = vcmp.gt.f32.partialorder %v3277_v16, 0.0  ;;  %v3405_v20 = vmul.f32 0.2, %v3277_v16 }
 0x1b5   :  { %v4214_v21 = vpop.f32.mrb[44].mxu1  ;;  %3532 = vst [vmem:[%s5540_s5 + $0x150] sm:$0xff] %v3468_v19  ;;  %v3466_v22 = vsel %vm3338_vm11, %v3274_v12, %v3402_v17  ;;  %vm3339_vm13 = vcmp.gt.f32.partialorder %v3275_v18, 0.0  ;;  %v3403_v23 = vmul.f32 0.2, %v3275_v18  ;;  %v4350_v24 = vpop.f32.mrb[44].mxu0 }
 0x1b6   :  { %v1258_v25 = vpop.f32.mrb[45].mxu1  ;;  %3530 = vst [vmem:[%s5540_s5 + $0x140] sm:$0xff] %v3466_v22  ;;  %v3469_v26 = vsel %vm3341_vm12, %v3277_v16, %v3405_v20  ;;  %v4412_v27 = vadd.f32 %v4350_v24, %v4214_v21  ;;  %v2892_v28 = vpop.f32.mrb[45].mxu0 }
 0x1b7   :  { %v4215_v29 = vpop.f32.mrb[46].mxu1  ;;  %3533 = vst [vmem:[%s5540_s5 + $0x158] sm:$0xff] %v3469_v26  ;;  %v3467_v30 = vsel %vm3339_vm13, %v3275_v18, %v3403_v23  ;;  %v4413_v31 = vadd.f32 %v2892_v28, %v1258_v25  ;;  %v4351_v32 = vpop.f32.mrb[46].mxu0 }
 0x1b8   :  { %v1261_v33 = vpop.f32.mrb[47].mxu1  ;;  %3531 = vst [vmem:[%s5540_s5 + $0x148] sm:$0xff] %v3467_v30  ;;  %v3280_v34 = vadd.f32 %v4412_v27, %v5277_v14  ;;  %v4414_v35 = vadd.f32 %v4351_v32, %v4215_v29  ;;  %v2895_v36 = vpop.f32.mrb[47].mxu0 }
 0x1b9   :  { %v3278_v37 = vadd.f32 %v4413_v31, %v5277_v14  ;;  %v4415_v38 = vadd.f32 %v2895_v36, %v1261_v33 }
 0x1ba   :  { %vm3344_vm14 = vcmp.gt.f32.partialorder %v3280_v34, 0.0  ;;  %v3408_v39 = vmul.f32 0.2, %v3280_v34  ;;  %v3281_v40 = vadd.f32 %v4414_v35, %v5277_v14 }
 0x1bb   :  { %vm3342_vm15 = vcmp.gt.f32.partialorder %v3278_v37, 0.0  ;;  %v3406_v41 = vmul.f32 0.2, %v3278_v37  ;;  %v3279_v42 = vadd.f32 %v4415_v38, %v5277_v14 }
 0x1bc   :  { %v3472_v43 = vsel %vm3344_vm14, %v3280_v34, %v3408_v39  ;;  %vm3345_vm0 = vcmp.gt.f32.partialorder %v3281_v40, 0.0  ;;  %v3409_v44 = vmul.f32 0.2, %v3281_v40 }
 0x1bd   :  { %v4218_v45 = vpop.f32.mrb[48].mxu1  ;;  %3536 = vst [vmem:[%s5540_s5 + $0x170] sm:$0xff] %v3472_v43  ;;  %v3470_v46 = vsel %vm3342_vm15, %v3278_v37, %v3406_v41  ;;  %vm3343_vm1 = vcmp.gt.f32.partialorder %v3279_v42, 0.0  ;;  %v3407_v47 = vmul.f32 0.2, %v3279_v42  ;;  %v4354_v48 = vpop.f32.mrb[48].mxu0 }
 0x1be   :  { %v1274_v49 = vpop.f32.mrb[49].mxu1  ;;  %3534 = vst [vmem:[%s5540_s5 + $0x160] sm:$0xff] %v3470_v46  ;;  %v3473_v50 = vsel %vm3345_vm0, %v3281_v40, %v3409_v44  ;;  %v4416_v51 = vadd.f32 %v4354_v48, %v4218_v45  ;;  %v2908_v52 = vpop.f32.mrb[49].mxu0 }
 0x1bf   :  { %v4219_v53 = vpop.f32.mrb[50].mxu1  ;;  %3537 = vst [vmem:[%s5540_s5 + $0x178] sm:$0xff] %v3473_v50  ;;  %v3471_v54 = vsel %vm3343_vm1, %v3279_v42, %v3407_v47  ;;  %v4417_v55 = vadd.f32 %v2908_v52, %v1274_v49  ;;  %v4355_v56 = vpop.f32.mrb[50].mxu0 }
 0x1c0   :  { %v1277_v57 = vpop.f32.mrb[51].mxu1  ;;  %3535 = vst [vmem:[%s5540_s5 + $0x168] sm:$0xff] %v3471_v54  ;;  %v3284_v58 = vadd.f32 %v4416_v51, %v5277_v14  ;;  %v4418_v59 = vadd.f32 %v4355_v56, %v4219_v53  ;;  %v2911_v60 = vpop.f32.mrb[51].mxu0 }
 0x1c1   :  { %v3282_v61 = vadd.f32 %v4417_v55, %v5277_v14  ;;  %v4419_v62 = vadd.f32 %v2911_v60, %v1277_v57 }
 0x1c2   :  { %vm3348_vm2 = vcmp.gt.f32.partialorder %v3284_v58, 0.0  ;;  %v3412_v63 = vmul.f32 0.2, %v3284_v58  ;;  %v3285_v0 = vadd.f32 %v4418_v59, %v5277_v14 }
 0x1c3   :  { %vm3346_vm3 = vcmp.gt.f32.partialorder %v3282_v61, 0.0  ;;  %v3410_v1 = vmul.f32 0.2, %v3282_v61  ;;  %v3283_v2 = vadd.f32 %v4419_v62, %v5277_v14 }
 0x1c4   :  { %v3476_v3 = vsel %vm3348_vm2, %v3284_v58, %v3412_v63  ;;  %vm3349_vm4 = vcmp.gt.f32.partialorder %v3285_v0, 0.0  ;;  %v3413_v4 = vmul.f32 0.2, %v3285_v0 }
 0x1c5   :  { %v4222_v5 = vpop.f32.mrb[52].mxu1  ;;  %3540 = vst [vmem:[%s5540_s5 + $0x190] sm:$0xff] %v3476_v3  ;;  %v3474_v6 = vsel %vm3346_vm3, %v3282_v61, %v3410_v1  ;;  %vm3347_vm5 = vcmp.gt.f32.partialorder %v3283_v2, 0.0  ;;  %v3411_v7 = vmul.f32 0.2, %v3283_v2  ;;  %v4358_v8 = vpop.f32.mrb[52].mxu0 }
 0x1c6   :  { %v1290_v9 = vpop.f32.mrb[53].mxu1  ;;  %3538 = vst [vmem:[%s5540_s5 + $0x180] sm:$0xff] %v3474_v6  ;;  %v3477_v10 = vsel %vm3349_vm4, %v3285_v0, %v3413_v4  ;;  %v4420_v11 = vadd.f32 %v4358_v8, %v4222_v5  ;;  %v2924_v12 = vpop.f32.mrb[53].mxu0 }
 0x1c7   :  { %v4223_v13 = vpop.f32.mrb[54].mxu1  ;;  %3541 = vst [vmem:[%s5540_s5 + $0x198] sm:$0xff] %v3477_v10  ;;  %v3475_v15 = vsel %vm3347_vm5, %v3283_v2, %v3411_v7  ;;  %v4421_v16 = vadd.f32 %v2924_v12, %v1290_v9  ;;  %v4359_v17 = vpop.f32.mrb[54].mxu0 }
 0x1c8   :  { %v1293_v18 = vpop.f32.mrb[55].mxu1  ;;  %3539 = vst [vmem:[%s5540_s5 + $0x188] sm:$0xff] %v3475_v15  ;;  %v3288_v19 = vadd.f32 %v4420_v11, %v5277_v14  ;;  %v4422_v20 = vadd.f32 %v4359_v17, %v4223_v13  ;;  %v2927_v21 = vpop.f32.mrb[55].mxu0 }
 0x1c9   :  { %v3286_v22 = vadd.f32 %v4421_v16, %v5277_v14  ;;  %v4423_v23 = vadd.f32 %v2927_v21, %v1293_v18 }
 0x1ca   :  { %vm3352_vm6 = vcmp.gt.f32.partialorder %v3288_v19, 0.0  ;;  %v3416_v24 = vmul.f32 0.2, %v3288_v19  ;;  %v3289_v25 = vadd.f32 %v4422_v20, %v5277_v14 }
 0x1cb   :  { %vm3350_vm7 = vcmp.gt.f32.partialorder %v3286_v22, 0.0  ;;  %v3414_v26 = vmul.f32 0.2, %v3286_v22  ;;  %v3287_v27 = vadd.f32 %v4423_v23, %v5277_v14 }
 0x1cc   :  { %v3480_v28 = vsel %vm3352_vm6, %v3288_v19, %v3416_v24  ;;  %vm3353_vm8 = vcmp.gt.f32.partialorder %v3289_v25, 0.0  ;;  %v3417_v29 = vmul.f32 0.2, %v3289_v25 }
 0x1cd   :  { %v4226_v30 = vpop.f32.mrb[56].mxu1  ;;  %3544 = vst [vmem:[%s5540_s5 + $0x1b0] sm:$0xff] %v3480_v28  ;;  %v3478_v31 = vsel %vm3350_vm7, %v3286_v22, %v3414_v26  ;;  %vm3351_vm9 = vcmp.gt.f32.partialorder %v3287_v27, 0.0  ;;  %v3415_v32 = vmul.f32 0.2, %v3287_v27  ;;  %v4362_v33 = vpop.f32.mrb[56].mxu0 }
 0x1ce   :  { %v1306_v34 = vpop.f32.mrb[57].mxu1  ;;  %3542 = vst [vmem:[%s5540_s5 + $0x1a0] sm:$0xff] %v3478_v31  ;;  %v3481_v35 = vsel %vm3353_vm8, %v3289_v25, %v3417_v29  ;;  %v4424_v36 = vadd.f32 %v4362_v33, %v4226_v30  ;;  %v2940_v37 = vpop.f32.mrb[57].mxu0 }
 0x1cf   :  { %v4227_v38 = vpop.f32.mrb[58].mxu1  ;;  %3545 = vst [vmem:[%s5540_s5 + $0x1b8] sm:$0xff] %v3481_v35  ;;  %v3479_v39 = vsel %vm3351_vm9, %v3287_v27, %v3415_v32  ;;  %v4425_v40 = vadd.f32 %v2940_v37, %v1306_v34  ;;  %v4363_v41 = vpop.f32.mrb[58].mxu0 }
 0x1d0   :  { %v1309_v42 = vpop.f32.mrb[59].mxu1  ;;  %3543 = vst [vmem:[%s5540_s5 + $0x1a8] sm:$0xff] %v3479_v39  ;;  %v3292_v43 = vadd.f32 %v4424_v36, %v5277_v14  ;;  %v4426_v44 = vadd.f32 %v4363_v41, %v4227_v38  ;;  %v2943_v45 = vpop.f32.mrb[59].mxu0 }
 0x1d1   :  { %v3290_v46 = vadd.f32 %v4425_v40, %v5277_v14  ;;  %v4427_v47 = vadd.f32 %v2943_v45, %v1309_v42 }
 0x1d2   :  { %vm3356_vm10 = vcmp.gt.f32.partialorder %v3292_v43, 0.0  ;;  %v3420_v48 = vmul.f32 0.2, %v3292_v43  ;;  %v3293_v49 = vadd.f32 %v4426_v44, %v5277_v14 }
 0x1d3   :  { %vm3354_vm11 = vcmp.gt.f32.partialorder %v3290_v46, 0.0  ;;  %v3418_v50 = vmul.f32 0.2, %v3290_v46  ;;  %v3291_v51 = vadd.f32 %v4427_v47, %v5277_v14 }
 0x1d4   :  { %v3484_v52 = vsel %vm3356_vm10, %v3292_v43, %v3420_v48  ;;  %vm3357_vm12 = vcmp.gt.f32.partialorder %v3293_v49, 0.0  ;;  %v3421_v53 = vmul.f32 0.2, %v3293_v49 }
 0x1d5   :  { %v4230_v54 = vpop.f32.mrb[60].mxu1  ;;  %3548 = vst [vmem:[%s5540_s5 + $0x1d0] sm:$0xff] %v3484_v52  ;;  %v3482_v55 = vsel %vm3354_vm11, %v3290_v46, %v3418_v50  ;;  %vm3355_vm13 = vcmp.gt.f32.partialorder %v3291_v51, 0.0  ;;  %v3419_v56 = vmul.f32 0.2, %v3291_v51  ;;  %v4366_v57 = vpop.f32.mrb[60].mxu0 }
 0x1d6   :  { %v1322_v58 = vpop.f32.mrb[61].mxu1  ;;  %3546 = vst [vmem:[%s5540_s5 + $0x1c0] sm:$0xff] %v3482_v55  ;;  %v3485_v59 = vsel %vm3357_vm12, %v3293_v49, %v3421_v53  ;;  %v4428_v60 = vadd.f32 %v4366_v57, %v4230_v54  ;;  %v2956_v61 = vpop.f32.mrb[61].mxu0 }
 0x1d7   :  { %v4231_v62 = vpop.f32.mrb[62].mxu1  ;;  %3549 = vst [vmem:[%s5540_s5 + $0x1d8] sm:$0xff] %v3485_v59  ;;  %v3483_v63 = vsel %vm3355_vm13, %v3291_v51, %v3419_v56  ;;  %v4429_v0 = vadd.f32 %v2956_v61, %v1322_v58  ;;  %v4367_v1 = vpop.f32.mrb[62].mxu0 }
 0x1d8   :  { %v1325_v2 = vpop.f32.mrb[63].mxu1  ;;  %3547 = vst [vmem:[%s5540_s5 + $0x1c8] sm:$0xff] %v3483_v63  ;;  %v3296_v3 = vadd.f32 %v4428_v60, %v5277_v14  ;;  %v4430_v4 = vadd.f32 %v4367_v1, %v4231_v62  ;;  %v2959_v5 = vpop.f32.mrb[63].mxu0 }
 0x1d9   :  { %v3294_v6 = vadd.f32 %v4429_v0, %v5277_v14  ;;  %v4431_v7 = vadd.f32 %v2959_v5, %v1325_v2 }
 0x1da   :  { %vm3360_vm14 = vcmp.gt.f32.partialorder %v3296_v3, 0.0  ;;  %v3424_v8 = vmul.f32 0.2, %v3296_v3  ;;  %v3297_v9 = vadd.f32 %v4430_v4, %v5277_v14 }
 0x1db   :  { %vm3358_vm15 = vcmp.gt.f32.partialorder %v3294_v6, 0.0  ;;  %v3422_v10 = vmul.f32 0.2, %v3294_v6  ;;  %v3295_v11 = vadd.f32 %v4431_v7, %v5277_v14 }
 0x1dc   :  { %v3488_v12 = vsel %vm3360_vm14, %v3296_v3, %v3424_v8  ;;  %vm3361_vm0 = vcmp.gt.f32.partialorder %v3297_v9, 0.0  ;;  %v3425_v13 = vmul.f32 0.2, %v3297_v9 }
 0x1dd   :  { %3552 = vst [vmem:[%s5540_s5 + $0x1f0] sm:$0xff] %v3488_v12  ;;  %v3486_v15 = vsel %vm3358_vm15, %v3294_v6, %v3422_v10  ;;  %vm3359_vm1 = vcmp.gt.f32.partialorder %v3295_v11, 0.0  ;;  %v3423_v16 = vmul.f32 0.2, %v3295_v11 }
 0x1de   :  { %3550 = vst [vmem:[%s5540_s5 + $0x1e0] sm:$0xff] %v3486_v15  ;;  %v3489_v17 = vsel %vm3361_vm0, %v3297_v9, %v3425_v13 }
 0x1df   :  { %3553 = vst [vmem:[%s5540_s5 + $0x1f8] sm:$0xff] %v3489_v17  ;;  %v3487_v14 = vsel %vm3359_vm1, %v3295_v11, %v3423_v16 }
 0x1e0   :  { %3551 = vst [vmem:[%s5540_s5 + $0x1e8] sm:$0xff] %v3487_v14 }

// kernel: discriminator_forward.6
= control target key start
LH: loop header
LB: loop body
LE: loop exit
PB: predicated region body
PF: predicated region fallthrough
CT: control target
= control target key end

     0   :  { %s2179_s1 = inlined_call_operand.vmem [shape: bf16[4,128,128], index: 1, kind: input, shape index: {}]   ;;  %s2180_s0 = inlined_call_operand.vmem [shape: bf16[2,144,128], index: 0, kind: input, shape index: {}]   ;;  %s2181_s2 = inlined_call_operand.vmem [shape: f32[1,128], index: 2, kind: input, shape index: {}]   ;;  %s2182_s3 = inlined_call_operand.vmem [shape: f32[1,128], index: 3, kind: input, shape index: {}]   ;;  %s2183_s4 = inlined_call_operand.vmem [shape: f32[1,128], index: 4, kind: input, shape index: {}]   ;;  %s2184_s5 = inlined_call_operand.vmem [shape: f32[128,128], index: 5, kind: output, shape index: {}]  }
   0x1   :  { %v1704_v0 = vld [vmem:[%s2179_s1] sm:$0xff]   ;;  %v1706_v2 = vld [vmem:[%s2179_s1 + $0x8] sm:$0xff]   ;;  %v1708_v4 = vld [vmem:[%s2179_s1 + $0x10] sm:$0xff]  }
   0x2   :  { %v1705_v1 = vld [vmem:[%s2179_s1 + $0x80] sm:$0xff]   ;;  %1528 = vmatprep.subr.bf16.mxu1 %v1704_v0  ;;  %v1707_v3 = vld [vmem:[%s2179_s1 + $0x88] sm:$0xff]   ;;  %v1709_v5 = vld [vmem:[%s2179_s1 + $0x90] sm:$0xff]  }
   0x3   :  { %1592 = vmatprep.subr.bf16.mxu0 %v1705_v1  ;;  %1529 = vmatpush3.bf16.msra.mxu1 %v1704_v0  ;;  %v1710_v6 = vld [vmem:[%s2179_s1 + $0x18] sm:$0xff]   ;;  %v1712_v8 = vld [vmem:[%s2179_s1 + $0x20] sm:$0xff]   ;;  %v1714_v10 = vld [vmem:[%s2179_s1 + $0x28] sm:$0xff]  }
   0x4   :  { %1593 = vmatpush3.bf16.msra.mxu0 %v1705_v1  ;;  %1530 = vmatprep.subr.bf16.mxu1 %v1706_v2  ;;  %v1711_v7 = vld [vmem:[%s2179_s1 + $0x98] sm:$0xff]   ;;  %v1713_v9 = vld [vmem:[%s2179_s1 + $0xa0] sm:$0xff]   ;;  %v1715_v11 = vld [vmem:[%s2179_s1 + $0xa8] sm:$0xff]  }
   0x5   :  { %1594 = vmatprep.subr.bf16.mxu0 %v1707_v3  ;;  %v1720_v12 = vld [vmem:[%s2180_s0] sm:$0xff]   ;;  %v1721_v13 = vld [vmem:[%s2180_s0 + $0x8] sm:$0xff]   ;;  %v1716_v14 = vld [vmem:[%s2179_s1 + $0x30] sm:$0xff]  }
   0x6   :  { %1544 = vmatprep.mubr.bf16.mxu1 %v1720_v12  ;;  %1608 = vmatprep.mubr.bf16.mxu0 %v1721_v13  ;;  %v1717_v15 = vld [vmem:[%s2179_s1 + $0xb0] sm:$0xff]   ;;  %v1718_v16 = vld [vmem:[%s2179_s1 + $0x38] sm:$0xff]   ;;  %v1722_v18 = vld [vmem:[%s2180_s0 + $0x8] sm:$0xff]  }
   0x7   :  { %1531 = vmatpush3.bf16.msra.mxu1 %v1706_v2  ;;  %v1719_v17 = vld [vmem:[%s2179_s1 + $0xb8] sm:$0xff]   ;;  %v1723_v19 = vld [vmem:[%s2179_s1 + $0x40] sm:$0xff]   ;;  %v1724_v21 = vld [vmem:[%s2180_s0 + $0x10] sm:$0xff]  }
   0x8   :  { %1595 = vmatpush3.bf16.msra.mxu0 %v1707_v3  ;;  %1532 = vmatprep.subr.bf16.mxu1 %v1708_v4  ;;  %v1725_v20 = vld [vmem:[%s2179_s1 + $0xc0] sm:$0xff]   ;;  %v1726_v22 = vld [vmem:[%s2179_s1 + $0x48] sm:$0xff]   ;;  %v1728_v24 = vld [vmem:[%s2180_s0 + $0x10] sm:$0xff]  }
   0x9   :  { %1596 = vmatprep.subr.bf16.mxu0 %v1709_v5  ;;  %v1727_v23 = vld [vmem:[%s2179_s1 + $0xc8] sm:$0xff]   ;;  %v1729_v25 = vld [vmem:[%s2180_s0 + $0x18] sm:$0xff]   ;;  %v1731_v27 = vld [vmem:[%s2179_s1 + $0x50] sm:$0xff]  }
   0xa   :  { %v1730_v26 = vld [vmem:[%s2180_s0 + $0x18] sm:$0xff]   ;;  %v1733_v28 = vld [vmem:[%s2179_s1 + $0xd0] sm:$0xff]   ;;  %v1732_v29 = vld [vmem:[%s2180_s0 + $0x20] sm:$0xff]  }
   0xb   :  { %1533 = vmatpush3.bf16.msra.mxu1 %v1708_v4  ;;  %v1734_v30 = vld [vmem:[%s2179_s1 + $0x58] sm:$0xff]   ;;  %v1736_v32 = vld [vmem:[%s2180_s0 + $0x20] sm:$0xff]   ;;  %v1737_v33 = vld [vmem:[%s2180_s0 + $0x28] sm:$0xff]  }
   0xc   :  { %1597 = vmatpush3.bf16.msra.mxu0 %v1709_v5  ;;  %1534 = vmatprep.subr.bf16.mxu1 %v1710_v6  ;;  %v1735_v31 = vld [vmem:[%s2179_s1 + $0xd8] sm:$0xff]   ;;  %v1738_v34 = vld [vmem:[%s2180_s0 + $0x28] sm:$0xff]   ;;  %v1739_v35 = vld [vmem:[%s2179_s1 + $0x60] sm:$0xff]  }
   0xd   :  { %1598 = vmatprep.subr.bf16.mxu0 %v1711_v7  ;;  %v1741_v36 = vld [vmem:[%s2179_s1 + $0xe0] sm:$0xff]   ;;  %v1740_v37 = vld [vmem:[%s2180_s0 + $0x30] sm:$0xff]   ;;  %v1742_v38 = vld [vmem:[%s2179_s1 + $0x68] sm:$0xff]  }
   0xe   :  { %v1743_v39 = vld [vmem:[%s2179_s1 + $0xe8] sm:$0xff]   ;;  %v1744_v40 = vld [vmem:[%s2180_s0 + $0x30] sm:$0xff]   ;;  %v1745_v41 = vld [vmem:[%s2180_s0 + $0x38] sm:$0xff]  }
   0xf   :  { %1535 = vmatpush3.bf16.msra.mxu1 %v1710_v6  ;;  %v1746_v42 = vld [vmem:[%s2180_s0 + $0x38] sm:$0xff]   ;;  %v1747_v43 = vld [vmem:[%s2179_s1 + $0x70] sm:$0xff]   ;;  %v1748_v45 = vld [vmem:[%s2180_s0 + $0x40] sm:$0xff]  }
  0x10   :  { %1599 = vmatpush3.bf16.msra.mxu0 %v1711_v7  ;;  %1536 = vmatprep.subr.bf16.mxu1 %v1712_v8  ;;  %v1749_v44 = vld [vmem:[%s2179_s1 + $0xf0] sm:$0xff]   ;;  %v1750_v46 = vld [vmem:[%s2179_s1 + $0x78] sm:$0xff]   ;;  %v1752_v48 = vld [vmem:[%s2180_s0 + $0x48] sm:$0xff]  }
  0x11   :  { %1600 = vmatprep.subr.bf16.mxu0 %v1713_v9  ;;  %v1751_v47 = vld [vmem:[%s2179_s1 + $0xf8] sm:$0xff]   ;;  %v1753_v49 = vld [vmem:[%s2180_s0 + $0x50] sm:$0xff]   ;;  %v1757_v53 = vld [vmem:[%s2180_s0 + $0x60] sm:$0xff]  }
  0x12   :  { %v1754_v50 = vld [vmem:[%s2180_s0 + $0x50] sm:$0xff]   ;;  %v1755_v51 = vld [vmem:[%s2180_s0 + $0x58] sm:$0xff]   ;;  %v1758_v54 = vld [vmem:[%s2180_s0 + $0x60] sm:$0xff]  }
  0x13   :  { %1537 = vmatpush3.bf16.msra.mxu1 %v1712_v8  ;;  %v1756_v52 = vld [vmem:[%s2180_s0 + $0x58] sm:$0xff]   ;;  %v1759_v55 = vld [vmem:[%s2180_s0 + $0x68] sm:$0xff]   ;;  %v1761_v57 = vld [vmem:[%s2180_s0 + $0x70] sm:$0xff]  }
  0x14   :  { %1601 = vmatpush3.bf16.msra.mxu0 %v1713_v9  ;;  %1538 = vmatprep.subr.bf16.mxu1 %v1714_v10  ;;  %v1760_v56 = vld [vmem:[%s2180_s0 + $0x68] sm:$0xff]   ;;  %v1762_v58 = vld [vmem:[%s2180_s0 + $0x70] sm:$0xff]   ;;  %v1763_v59 = vld [vmem:[%s2180_s0 + $0x78] sm:$0xff]  }
  0x15   :  { %1602 = vmatprep.subr.bf16.mxu0 %v1715_v11  ;;  %v1764_v60 = vld [vmem:[%s2180_s0 + $0x78] sm:$0xff]   ;;  %v1765_v61 = vld [vmem:[%s2180_s0 + $0x80] sm:$0xff]   ;;  %v1767_v63 = vld [vmem:[%s2180_s0 + $0x88] sm:$0xff]  }
  0x16   :  { %v1766_v62 = vld [vmem:[%s2180_s0 + $0x80] sm:$0xff]  }
  0x17   :  { %1539 = vmatpush3.bf16.msra.mxu1 %v1714_v10  ;;  %v1995_v9 = vld [vmem:[%s2181_s2] ss:$0 sm:$0xff] }
  0x18   :  { %1603 = vmatpush3.bf16.msra.mxu0 %v1715_v11  ;;  %1540 = vmatprep.subr.bf16.mxu1 %v1716_v14 }
  0x19   :  { %1604 = vmatprep.subr.bf16.mxu0 %v1717_v15 }
  0x1b   :  { %1541 = vmatpush3.bf16.msra.mxu1 %v1716_v14 }
  0x1c   :  { %1605 = vmatpush3.bf16.msra.mxu0 %v1717_v15  ;;  %1542 = vmatprep.subr.bf16.mxu1 %v1718_v16 }
  0x1d   :  { %1606 = vmatprep.subr.bf16.mxu0 %v1719_v17 }
  0x1f   :  { %1543 = vmatpush3.bf16.msra.mxu1 %v1718_v16 }
  0x20   :  { %1607 = vmatpush3.bf16.msra.mxu0 %v1719_v17  ;;  %1560 = vmatprep.subr.bf16.mxu1 %v1723_v19 }
  0x21   :  { %1624 = vmatprep.subr.bf16.mxu0 %v1725_v20 }
  0x22   :  { %1545 = vmatmul.mubr.bf16.vlgmr.msra.gmra.mrb[0].mxu1 %v1722_v18 }
  0x23   :  { %1609 = vmatmul.mubr.bf16.vlgmr.msra.gmra.mrb[0].mxu0 %v1724_v21  ;;  %1561 = vmatpush3.bf16.msra.mxu1 %v1723_v19 }
  0x24   :  { %1625 = vmatpush3.bf16.msra.mxu0 %v1725_v20  ;;  %1562 = vmatprep.subr.bf16.mxu1 %v1726_v22 }
  0x25   :  { %1626 = vmatprep.subr.bf16.mxu0 %v1727_v23  ;;  %1548 = vmatprep.mubr.bf16.mxu1 %v1728_v24 }
  0x26   :  { %1612 = vmatprep.mubr.bf16.mxu0 %v1729_v25 }
  0x27   :  { %1563 = vmatpush3.bf16.msra.mxu1 %v1726_v22 }
  0x28   :  { %1627 = vmatpush3.bf16.msra.mxu0 %v1727_v23  ;;  %1564 = vmatprep.subr.bf16.mxu1 %v1731_v27 }
  0x29   :  { %1628 = vmatprep.subr.bf16.mxu0 %v1733_v28 }
  0x2a   :  { %1549 = vmatmul.mubr.bf16.gmra.mrb[4].mxu1 %v1730_v26 }
  0x2b   :  { %1613 = vmatmul.mubr.bf16.gmra.mrb[4].mxu0 %v1732_v29  ;;  %1565 = vmatpush3.bf16.msra.mxu1 %v1731_v27 }
  0x2c   :  { %1629 = vmatpush3.bf16.msra.mxu0 %v1733_v28  ;;  %1566 = vmatprep.subr.bf16.mxu1 %v1734_v30 }
  0x2d   :  { %1630 = vmatprep.subr.bf16.mxu0 %v1735_v31  ;;  %1552 = vmatprep.mubr.bf16.mxu1 %v1736_v32 }
  0x2e   :  { %1616 = vmatprep.mubr.bf16.mxu0 %v1737_v33 }
  0x2f   :  { %1567 = vmatpush3.bf16.msra.mxu1 %v1734_v30 }
  0x30   :  { %1631 = vmatpush3.bf16.msra.mxu0 %v1735_v31  ;;  %1568 = vmatprep.subr.bf16.mxu1 %v1739_v35 }
  0x31   :  { %1632 = vmatprep.subr.bf16.mxu0 %v1741_v36 }
  0x32   :  { %1553 = vmatmul.mubr.bf16.gmra.mrb[8].mxu1 %v1738_v34 }
  0x33   :  { %1617 = vmatmul.mubr.bf16.gmra.mrb[8].mxu0 %v1740_v37  ;;  %1569 = vmatpush3.bf16.msra.mxu1 %v1739_v35 }
  0x34   :  { %1633 = vmatpush3.bf16.msra.mxu0 %v1741_v36  ;;  %1570 = vmatprep.subr.bf16.mxu1 %v1742_v38 }
  0x35   :  { %1634 = vmatprep.subr.bf16.mxu0 %v1743_v39  ;;  %1556 = vmatprep.mubr.bf16.mxu1 %v1744_v40 }
  0x36   :  { %1620 = vmatprep.mubr.bf16.mxu0 %v1745_v41 }
  0x37   :  { %1571 = vmatpush3.bf16.msra.mxu1 %v1742_v38 }
  0x38   :  { %1635 = vmatpush3.bf16.msra.mxu0 %v1743_v39  ;;  %1572 = vmatprep.subr.bf16.mxu1 %v1747_v43 }
  0x39   :  { %1636 = vmatprep.subr.bf16.mxu0 %v1749_v44 }
  0x3a   :  { %1557 = vmatmul.mubr.bf16.gmra.mrb[12].mxu1 %v1746_v42 }
  0x3b   :  { %1621 = vmatmul.mubr.bf16.gmra.mrb[12].mxu0 %v1748_v45  ;;  %1573 = vmatpush3.bf16.msra.mxu1 %v1747_v43 }
  0x3c   :  { %1637 = vmatpush3.bf16.msra.mxu0 %v1749_v44  ;;  %1574 = vmatprep.subr.bf16.mxu1 %v1750_v46 }
  0x3d   :  { %1638 = vmatprep.subr.bf16.mxu0 %v1751_v47  ;;  %1576 = vmatprep.mubr.bf16.mxu1 %v1752_v48 }
  0x3e   :  { %1640 = vmatprep.mubr.bf16.mxu0 %v1753_v49 }
  0x3f   :  { %1575 = vmatpush3.bf16.msra.mxu1 %v1750_v46 }
  0x40   :  { %1639 = vmatpush3.bf16.msra.mxu0 %v1751_v47 }
  0x42   :  { %1577 = vmatmul.mubr.bf16.vlgmr.msra.gmra.mrb[0].mxu1 %v1754_v50 }
  0x43   :  { %1641 = vmatmul.mubr.bf16.vlgmr.msra.gmra.mrb[0].mxu0 %v1755_v51  ;;  %1580 = vmatprep.mubr.bf16.mxu1 %v1756_v52 }
  0x44   :  { %1644 = vmatprep.mubr.bf16.mxu0 %v1757_v53 }
  0x4a   :  { %1581 = vmatmul.mubr.bf16.gmra.mrb[4].mxu1 %v1758_v54 }
  0x4b   :  { %1645 = vmatmul.mubr.bf16.gmra.mrb[4].mxu0 %v1759_v55  ;;  %1584 = vmatprep.mubr.bf16.mxu1 %v1760_v56 }
  0x4c   :  { %1648 = vmatprep.mubr.bf16.mxu0 %v1761_v57 }
  0x52   :  { %1585 = vmatmul.mubr.bf16.gmra.mrb[8].mxu1 %v1762_v58 }
  0x53   :  { %1649 = vmatmul.mubr.bf16.gmra.mrb[8].mxu0 %v1763_v59  ;;  %1588 = vmatprep.mubr.bf16.mxu1 %v1764_v60 }
  0x54   :  { %1652 = vmatprep.mubr.bf16.mxu0 %v1765_v61 }
  0x5a   :  { %1589 = vmatmul.mubr.bf16.gmra.mrb[12].mxu1 %v1766_v62 }
  0x5b   :  { %1653 = vmatmul.mubr.bf16.gmra.mrb[12].mxu0 %v1767_v63 }
 0x115   :  { %v1578_v0 = vpop.f32.mrb[0].mxu1 }
 0x116   :  { %v1642_v1 = vpop.f32.mrb[0].mxu0  ;;  %v426_v2 = vpop.f32.mrb[1].mxu1 }
 0x117   :  { %v1656_v3 = vadd.f32 %v1642_v1, %v1578_v0  ;;  %v974_v4 = vpop.f32.mrb[1].mxu0  ;;  %v1579_v5 = vpop.f32.mrb[2].mxu1 }
 0x118   :  { %v1657_v6 = vadd.f32 %v974_v4, %v426_v2  ;;  %v1643_v7 = vpop.f32.mrb[2].mxu0  ;;  %v429_v8 = vpop.f32.mrb[3].mxu1 }
 0x119   :  { %v1658_v10 = vadd.f32 %v1643_v7, %v1579_v5  ;;  %v977_v11 = vpop.f32.mrb[3].mxu0  ;;  %v2004_v16 = vadd.f32 %v1656_v3, %v1995_v9 }
 0x11a   :  { %v1659_v12 = vadd.f32 %v977_v11, %v429_v8  ;;  %v1998_v13 = vadd.f32 %v1657_v6, %v1995_v9 }
 0x11b   :  { %v2009_v23 = vadd.f32 %v1658_v10, %v1995_v9 }
 0x11c   :  { %v2001_v14 = vadd.f32 %v1659_v12, %v1995_v9 }
 0x11d   :  { %v1582_v15 = vpop.f32.mrb[4].mxu1 }
 0x11e   :  { %v1124_v17 = vadd.f32 %v2001_v14, %v1998_v13  ;;  %v1646_v18 = vpop.f32.mrb[4].mxu0  ;;  %v442_v19 = vpop.f32.mrb[5].mxu1 }
 0x11f   :  { %v1660_v20 = vadd.f32 %v1646_v18, %v1582_v15  ;;  %v990_v21 = vpop.f32.mrb[5].mxu0  ;;  %v1583_v22 = vpop.f32.mrb[6].mxu1 }
 0x120   :  { %v1125_v24 = vadd.f32 %v1124_v17, %v2004_v16  ;;  %v1661_v25 = vadd.f32 %v990_v21, %v442_v19  ;;  %v1647_v26 = vpop.f32.mrb[6].mxu0  ;;  %v445_v27 = vpop.f32.mrb[7].mxu1 }
 0x121   :  { %v1662_v28 = vadd.f32 %v1647_v26, %v1583_v22  ;;  %v993_v29 = vpop.f32.mrb[7].mxu0  ;;  %v1114_v36 = vadd.f32 %v1660_v20, %v1995_v9 }
 0x122   :  { %v1112_v30 = vadd.f32 %v1661_v25, %v1995_v9  ;;  %v1126_v31 = vadd.f32 %v1125_v24, %v2009_v23  ;;  %v1663_v32 = vadd.f32 %v993_v29, %v445_v27 }
 0x123   :  { %v1115_v43 = vadd.f32 %v1662_v28, %v1995_v9 }
 0x124   :  { %v1127_v33 = vadd.f32 %v1126_v31, %v1112_v30  ;;  %v1113_v34 = vadd.f32 %v1663_v32, %v1995_v9 }
 0x125   :  { %v1586_v35 = vpop.f32.mrb[8].mxu1 }
 0x126   :  { %v1128_v37 = vadd.f32 %v1127_v33, %v1113_v34  ;;  %v1650_v38 = vpop.f32.mrb[8].mxu0  ;;  %v458_v39 = vpop.f32.mrb[9].mxu1 }
 0x127   :  { %v1664_v40 = vadd.f32 %v1650_v38, %v1586_v35  ;;  %v1006_v41 = vpop.f32.mrb[9].mxu0  ;;  %v1587_v42 = vpop.f32.mrb[10].mxu1 }
 0x128   :  { %v1129_v44 = vadd.f32 %v1128_v37, %v1114_v36  ;;  %v1665_v45 = vadd.f32 %v1006_v41, %v458_v39  ;;  %v1651_v46 = vpop.f32.mrb[10].mxu0  ;;  %v461_v47 = vpop.f32.mrb[11].mxu1 }
 0x129   :  { %v1666_v48 = vadd.f32 %v1651_v46, %v1587_v42  ;;  %v1009_v49 = vpop.f32.mrb[11].mxu0  ;;  %v1118_v56 = vadd.f32 %v1664_v40, %v1995_v9 }
 0x12a   :  { %v1116_v50 = vadd.f32 %v1665_v45, %v1995_v9  ;;  %v1130_v51 = vadd.f32 %v1129_v44, %v1115_v43  ;;  %v1667_v52 = vadd.f32 %v1009_v49, %v461_v47 }
 0x12b   :  { %v1119_v63 = vadd.f32 %v1666_v48, %v1995_v9 }
 0x12c   :  { %v1131_v53 = vadd.f32 %v1130_v51, %v1116_v50  ;;  %v1117_v54 = vadd.f32 %v1667_v52, %v1995_v9 }
 0x12d   :  { %v1590_v55 = vpop.f32.mrb[12].mxu1 }
 0x12e   :  { %v1132_v57 = vadd.f32 %v1131_v53, %v1117_v54  ;;  %v1654_v58 = vpop.f32.mrb[12].mxu0  ;;  %v474_v59 = vpop.f32.mrb[13].mxu1 }
 0x12f   :  { %v1668_v60 = vadd.f32 %v1654_v58, %v1590_v55  ;;  %v1022_v61 = vpop.f32.mrb[13].mxu0  ;;  %v1591_v62 = vpop.f32.mrb[14].mxu1 }
 0x130   :  { %v1133_v0 = vadd.f32 %v1132_v57, %v1118_v56  ;;  %v1669_v1 = vadd.f32 %v1022_v61, %v474_v59  ;;  %v1655_v2 = vpop.f32.mrb[14].mxu0  ;;  %v477_v3 = vpop.f32.mrb[15].mxu1 }
 0x131   :  { %v1670_v4 = vadd.f32 %v1655_v2, %v1591_v62  ;;  %v1025_v5 = vpop.f32.mrb[15].mxu0  ;;  %v1122_v12 = vadd.f32 %v1668_v60, %v1995_v9 }
 0x132   :  { %v1120_v6 = vadd.f32 %v1669_v1, %v1995_v9  ;;  %v1134_v7 = vadd.f32 %v1133_v0, %v1119_v63  ;;  %v1671_v8 = vadd.f32 %v1025_v5, %v477_v3 }
 0x133   :  { %v1123_v17 = vadd.f32 %v1670_v4, %v1995_v9 }
 0x134   :  { %v1135_v10 = vadd.f32 %v1134_v7, %v1120_v6  ;;  %v1121_v11 = vadd.f32 %v1671_v8, %v1995_v9 }
 0x136   :  { %v1136_v15 = vadd.f32 %v1135_v10, %v1121_v11 }
 0x138   :  { %v1137_v18 = vadd.f32 %v1136_v15, %v1122_v12 }
 0x13a   :  { %v1138_v19 = vadd.f32 %v1137_v18, %v1123_v17  ;;  %v1206_v18 = vlaneseq }
 0x13c   :  { %v1139_v20 = vrot.slane %v1138_v19, 4 }
 0x13e   :  { %v1140_v21 = vadd.f32 %v1139_v20, %v1138_v19  ;;  %v1207_v19 = vshrl.u32 %v1206_v18, 7  ;;  %v1201_v20 = vld [vmem:[%s2182_s3] sm:$0x1] }
 0x140   :  { %v1141_v22 = vrot.slane %v1140_v21, 2 }
 0x142   :  { %v1142_v24 = vadd.f32 %v1141_v22, %v1140_v21  ;;  %v1208_v21 = vsub.s32 0, %v1207_v19 }
 0x144   :  { %v1143_v25 = vrot.slane %v1142_v24, 1 }
 0x146   :  { %v1144_v26 = vadd.f32 %v1143_v25, %v1142_v24 }
 0x148   :  { %v1146_v27 = vmul.f32 0.0078125, %v1144_v26 }
 0x14a   :  { %v2026_v28 = vsub.f32 %v1998_v13, %v1146_v27  ;;  %v2029_v29 = vsub.f32 %v2001_v14, %v1146_v27  ;;  %v2032_v31 = vsub.f32 %v2004_v16, %v1146_v27  ;;  %v2035_v9 = vsub.f32 %v2009_v23, %v1146_v27 }
 0x14b   :  { %v2037_v32 = vsub.f32 %v1112_v30, %v1146_v27  ;;  %v2039_v33 = vsub.f32 %v1113_v34, %v1146_v27  ;;  %v2041_v35 = vsub.f32 %v1114_v36, %v1146_v27  ;;  %v2043_v37 = vsub.f32 %v1115_v43, %v1146_v27 }
 0x14c   :  { %v2045_v38 = vsub.f32 %v1116_v50, %v1146_v27  ;;  %v2047_v13 = vsub.f32 %v1117_v54, %v1146_v27  ;;  %v2049_v14 = vsub.f32 %v1118_v56, %v1146_v27  ;;  %v2051_v39 = vsub.f32 %v1119_v63, %v1146_v27 }
 0x14d   :  { %v2053_v16 = vsub.f32 %v1120_v6, %v1146_v27  ;;  %v2055_v23 = vsub.f32 %v1121_v11, %v1146_v27  ;;  %v2057_v30 = vsub.f32 %v1122_v12, %v1146_v27  ;;  %v2059_v34 = vsub.f32 %v1123_v17, %v1146_v27 }
 0x14e   :  { %v1163_v36 = vmul.f32 %v2026_v28, %v2026_v28  ;;  %v1164_v40 = vmul.f32 %v2029_v29, %v2029_v29  ;;  %v1165_v41 = vmul.f32 %v2032_v31, %v2032_v31  ;;  %v1166_v43 = vmul.f32 %v2035_v9, %v2035_v9 }
 0x14f   :  { %v1167_v45 = vmul.f32 %v2037_v32, %v2037_v32  ;;  %v1168_v47 = vmul.f32 %v2039_v33, %v2039_v33  ;;  %v1169_v49 = vmul.f32 %v2041_v35, %v2041_v35  ;;  %v1170_v51 = vmul.f32 %v2043_v37, %v2043_v37 }
 0x150   :  { %v1179_v42 = vadd.f32 %v1164_v40, %v1163_v36  ;;  %v1171_v53 = vmul.f32 %v2045_v38, %v2045_v38  ;;  %v1172_v55 = vmul.f32 %v2047_v13, %v2047_v13  ;;  %v1173_v57 = vmul.f32 %v2049_v14, %v2049_v14 }
 0x151   :  { %v1174_v59 = vmul.f32 %v2051_v39, %v2051_v39  ;;  %v1175_v61 = vmul.f32 %v2053_v16, %v2053_v16  ;;  %v1176_v63 = vmul.f32 %v2055_v23, %v2055_v23  ;;  %v1177_v1 = vmul.f32 %v2057_v30, %v2057_v30 }
 0x152   :  { %v1180_v44 = vadd.f32 %v1179_v42, %v1165_v41  ;;  %v1178_v3 = vmul.f32 %v2059_v34, %v2059_v34 }
 0x154   :  { %v1181_v46 = vadd.f32 %v1180_v44, %v1166_v43 }
 0x156   :  { %v1182_v48 = vadd.f32 %v1181_v46, %v1167_v45  ;;  %v1463_v45 = vld [vmem:[%s2183_s4] ss:$0 sm:$0xff] }
 0x158   :  { %v1183_v50 = vadd.f32 %v1182_v48, %v1168_v47 }
 0x15a   :  { %v1184_v52 = vadd.f32 %v1183_v50, %v1169_v49 }
 0x15c   :  { %v1185_v54 = vadd.f32 %v1184_v52, %v1170_v51 }
 0x15e   :  { %v1186_v56 = vadd.f32 %v1185_v54, %v1171_v53 }
 0x160   :  { %v1187_v58 = vadd.f32 %v1186_v56, %v1172_v55 }
 0x162   :  { %v1188_v60 = vadd.f32 %v1187_v58, %v1173_v57 }
 0x164   :  { %v1189_v62 = vadd.f32 %v1188_v60, %v1174_v59 }
 0x166   :  { %v1190_v0 = vadd.f32 %v1189_v62, %v1175_v61 }
 0x168   :  { %v1191_v2 = vadd.f32 %v1190_v0, %v1176_v63 }
 0x16a   :  { %v1192_v4 = vadd.f32 %v1191_v2, %v1177_v1 }
 0x16c   :  { %v1193_v5 = vadd.f32 %v1192_v4, %v1178_v3 }
 0x16e   :  { %v1194_v6 = vrot.slane %v1193_v5, 4 }
 0x170   :  { %v1195_v7 = vadd.f32 %v1194_v6, %v1193_v5 }
 0x172   :  { %v1196_v8 = vrot.slane %v1195_v7, 2 }
 0x174   :  { %v1197_v10 = vadd.f32 %v1196_v8, %v1195_v7 }
 0x176   :  { %v1198_v11 = vrot.slane %v1197_v10, 1 }
 0x178   :  { %v1199_v12 = vadd.f32 %v1198_v11, %v1197_v10 }
 0x17a   :  { %v1200_v15 = vmul.f32 0.0078125, %v1199_v12 }
 0x17c   :  { %v1202_v17 = vadd.f32 1e-05, %v1200_v15 }
 0x17e   :  { %1768 = vrsqrt.f32 %v1202_v17 }
 0x188   :  { %v1769_v22 = vpop.eup %1768 }
 0x189   :  { %v1204_v24 = vmul.f32 %v1769_v22, %v1201_v20 }
 0x18b   :  { %v1209_v25 = vrot.slane %v1204_v24, %v1208_v21 }
 0x18d   :  { %v1211_v26 = vmul.f32 %v1209_v25, %v2026_v28  ;;  %v1212_v27 = vmul.f32 %v1209_v25, %v2029_v29  ;;  %v1213_v36 = vmul.f32 %v1209_v25, %v2032_v31  ;;  %v1214_v40 = vmul.f32 %v1209_v25, %v2035_v9 }
 0x18e   :  { %v1215_v41 = vmul.f32 %v1209_v25, %v2037_v32  ;;  %v1216_v42 = vmul.f32 %v1209_v25, %v2039_v33  ;;  %v1217_v43 = vmul.f32 %v1209_v25, %v2041_v35  ;;  %v1218_v44 = vmul.f32 %v1209_v25, %v2043_v37 }
 0x18f   :  { %v1219_v28 = vmul.f32 %v1209_v25, %v2045_v38  ;;  %v1220_v29 = vmul.f32 %v1209_v25, %v2047_v13  ;;  %v1221_v31 = vmul.f32 %v1209_v25, %v2049_v14  ;;  %v1222_v9 = vmul.f32 %v1209_v25, %v2051_v39 }
 0x190   :  { %v1223_v32 = vmul.f32 %v1209_v25, %v2053_v16  ;;  %v1224_v33 = vmul.f32 %v1209_v25, %v2055_v23  ;;  %v1225_v35 = vmul.f32 %v1209_v25, %v2057_v30  ;;  %v1226_v37 = vmul.f32 %v1209_v25, %v2059_v34 }
 0x191   :  { %v1234_v46 = vadd.f32 %v1463_v45, %v1211_v26  ;;  %v1235_v47 = vadd.f32 %v1463_v45, %v1212_v27  ;;  %v1236_v48 = vadd.f32 %v1463_v45, %v1213_v36  ;;  %v1237_v49 = vadd.f32 %v1463_v45, %v1214_v40 }
 0x192   :  { %v1238_v50 = vadd.f32 %v1463_v45, %v1215_v41  ;;  %v1239_v38 = vadd.f32 %v1463_v45, %v1216_v42  ;;  %v1240_v51 = vadd.f32 %v1463_v45, %v1217_v43  ;;  %v1241_v13 = vadd.f32 %v1463_v45, %v1218_v44 }
 0x193   :  { %v1242_v52 = vadd.f32 %v1463_v45, %v1219_v28  ;;  %v1243_v14 = vadd.f32 %v1463_v45, %v1220_v29  ;;  %v1244_v53 = vadd.f32 %v1463_v45, %v1221_v31  ;;  %v1245_v39 = vadd.f32 %v1463_v45, %v1222_v9 }
 0x194   :  { %v1246_v54 = vadd.f32 %v1463_v45, %v1223_v32  ;;  %v1247_v16 = vadd.f32 %v1463_v45, %v1224_v33  ;;  %v1248_v55 = vadd.f32 %v1463_v45, %v1225_v35  ;;  %v1249_v23 = vadd.f32 %v1463_v45, %v1226_v37 }
 0x195   :  { %vm1250_vm0 = vcmp.gt.f32.partialorder %v1234_v46, 0.0  ;;  %vm1251_vm1 = vcmp.gt.f32.partialorder %v1235_v47, 0.0  ;;  %vm1252_vm2 = vcmp.gt.f32.partialorder %v1236_v48, 0.0  ;;  %vm1253_vm3 = vcmp.gt.f32.partialorder %v1237_v49, 0.0 }
 0x196   :  { %vm1254_vm4 = vcmp.gt.f32.partialorder %v1238_v50, 0.0  ;;  %vm1255_vm5 = vcmp.gt.f32.partialorder %v1239_v38, 0.0  ;;  %vm1256_vm6 = vcmp.gt.f32.partialorder %v1240_v51, 0.0  ;;  %vm1257_vm7 = vcmp.gt.f32.partialorder %v1241_v13, 0.0 }
 0x197   :  { %vm1258_vm8 = vcmp.gt.f32.partialorder %v1242_v52, 0.0  ;;  %vm1259_vm9 = vcmp.gt.f32.partialorder %v1243_v14, 0.0  ;;  %vm1260_vm10 = vcmp.gt.f32.partialorder %v1244_v53, 0.0  ;;  %vm1261_vm11 = vcmp.gt.f32.partialorder %v1245_v39, 0.0 }
 0x198   :  { %vm1262_vm12 = vcmp.gt.f32.partialorder %v1246_v54, 0.0  ;;  %vm1263_vm13 = vcmp.gt.f32.partialorder %v1247_v16, 0.0  ;;  %vm1264_vm14 = vcmp.gt.f32.partialorder %v1248_v55, 0.0  ;;  %vm1265_vm15 = vcmp.gt.f32.partialorder %v1249_v23, 0.0 }
 0x199   :  { %v1266_v30 = vmul.f32 0.2, %v1234_v46  ;;  %v1267_v34 = vmul.f32 0.2, %v1235_v47  ;;  %v1268_v56 = vmul.f32 0.2, %v1236_v48 }
 0x19a   :  { %v1269_v57 = vmul.f32 0.2, %v1237_v49  ;;  %v1270_v58 = vmul.f32 0.2, %v1238_v50  ;;  %v1271_v59 = vmul.f32 0.2, %v1239_v38 }
 0x19b   :  { %v1272_v60 = vmul.f32 0.2, %v1240_v51  ;;  %v1273_v61 = vmul.f32 0.2, %v1241_v13  ;;  %v1274_v62 = vmul.f32 0.2, %v1242_v52  ;;  %v1282_v63 = vsel %vm1250_vm0, %v1234_v46, %v1266_v30 }
 0x19c   :  { %v1275_v0 = vmul.f32 0.2, %v1243_v14  ;;  %v1276_v1 = vmul.f32 0.2, %v1244_v53  ;;  %v1277_v2 = vmul.f32 0.2, %v1245_v39  ;;  %v1283_v3 = vsel %vm1251_vm1, %v1235_v47, %v1267_v34  ;;  %1298 = vst [vmem:[%s2184_s5] sm:$0xff] %v1282_v63 }
 0x19d   :  { %v1278_v4 = vmul.f32 0.2, %v1246_v54  ;;  %v1279_v5 = vmul.f32 0.2, %v1247_v16  ;;  %v1280_v6 = vmul.f32 0.2, %v1248_v55  ;;  %v1284_v7 = vsel %vm1252_vm2, %v1236_v48, %v1268_v56 }
 0x19e   :  { %1299 = vst [vmem:[%s2184_s5 + $0x8] sm:$0xff] %v1283_v3  ;;  %v1281_v8 = vmul.f32 0.2, %v1249_v23  ;;  %v1285_v10 = vsel %vm1253_vm3, %v1237_v49, %v1269_v57  ;;  %v1286_v11 = vsel %vm1254_vm4, %v1238_v50, %v1270_v58  ;;  %v1287_v12 = vsel %vm1255_vm5, %v1239_v38, %v1271_v59  ;;  %1300 = vst [vmem:[%s2184_s5 + $0x10] sm:$0xff] %v1284_v7 }
 0x19f   :  { %v1288_v15 = vsel %vm1256_vm6, %v1240_v51, %v1272_v60  ;;  %v1289_v17 = vsel %vm1257_vm7, %v1241_v13, %v1273_v61  ;;  %v1290_v18 = vsel %vm1258_vm8, %v1242_v52, %v1274_v62  ;;  %v1291_v19 = vsel %vm1259_vm9, %v1243_v14, %v1275_v0  ;;  %1301 = vst [vmem:[%s2184_s5 + $0x18] sm:$0xff] %v1285_v10 }
 0x1a0   :  { %1302 = vst [vmem:[%s2184_s5 + $0x20] sm:$0xff] %v1286_v11  ;;  %1303 = vst [vmem:[%s2184_s5 + $0x28] sm:$0xff] %v1287_v12  ;;  %v1292_v20 = vsel %vm1260_vm10, %v1244_v53, %v1276_v1  ;;  %v1293_v21 = vsel %vm1261_vm11, %v1245_v39, %v1277_v2  ;;  %v1294_v22 = vsel %vm1262_vm12, %v1246_v54, %v1278_v4 }
 0x1a1   :  { %v1295_v24 = vsel %vm1263_vm13, %v1247_v16, %v1279_v5  ;;  %1304 = vst [vmem:[%s2184_s5 + $0x30] sm:$0xff] %v1288_v15  ;;  %1305 = vst [vmem:[%s2184_s5 + $0x38] sm:$0xff] %v1289_v17  ;;  %v1296_v25 = vsel %vm1264_vm14, %v1248_v55, %v1280_v6  ;;  %v1297_v26 = vsel %vm1265_vm15, %v1249_v23, %v1281_v8 }
 0x1a2   :  { %1306 = vst [vmem:[%s2184_s5 + $0x40] sm:$0xff] %v1290_v18  ;;  %1307 = vst [vmem:[%s2184_s5 + $0x48] sm:$0xff] %v1291_v19 }
 0x1a3   :  { %1308 = vst [vmem:[%s2184_s5 + $0x50] sm:$0xff] %v1292_v20  ;;  %1309 = vst [vmem:[%s2184_s5 + $0x58] sm:$0xff] %v1293_v21 }
 0x1a4   :  { %1310 = vst [vmem:[%s2184_s5 + $0x60] sm:$0xff] %v1294_v22  ;;  %1311 = vst [vmem:[%s2184_s5 + $0x68] sm:$0xff] %v1295_v24 }
 0x1a5   :  { %1312 = vst [vmem:[%s2184_s5 + $0x70] sm:$0xff] %v1296_v25  ;;  %1313 = vst [vmem:[%s2184_s5 + $0x78] sm:$0xff] %v1297_v26 }

// kernel: discriminator_forward.7
= control target key start
LH: loop header
LB: loop body
LE: loop exit
PB: predicated region body
PF: predicated region fallthrough
CT: control target
= control target key end

     0   :  { %s1623_s1 = inlined_call_operand.vmem [shape: bf16[4,256,128], index: 1, kind: input, shape index: {}]   ;;  %s1624_s0 = inlined_call_operand.vmem [shape: bf16[2,40,256], index: 0, kind: input, shape index: {}]   ;;  %s1625_s2 = inlined_call_operand.vmem [shape: f32[1,128], index: 2, kind: input, shape index: {}]   ;;  %s1626_s3 = inlined_call_operand.vmem [shape: f32[1,128], index: 3, kind: input, shape index: {}]   ;;  %s1627_s4 = inlined_call_operand.vmem [shape: f32[1,128], index: 4, kind: input, shape index: {}]   ;;  %s1628_s5 = inlined_call_operand.vmem [shape: f32[32,128], index: 5, kind: output, shape index: {}]  }
   0x1   :  { %v1256_v0 = vld [vmem:[%s1623_s1 + $0x40] sm:$0xff]   ;;  %v1260_v4 = vld [vmem:[%s1623_s1 + $0x48] sm:$0xff]   ;;  %v1264_v8 = vld [vmem:[%s1623_s1 + $0x50] sm:$0xff]  }
   0x2   :  { %v1257_v1 = vld [vmem:[%s1623_s1 + $0xc0] sm:$0xff]   ;;  %1144 = vmatprep.subr.bf16.mxu0 %v1256_v0  ;;  %v1261_v5 = vld [vmem:[%s1623_s1 + $0xc8] sm:$0xff]   ;;  %v1265_v9 = vld [vmem:[%s1623_s1 + $0xd0] sm:$0xff]  }
   0x3   :  { %v1258_v2 = vld [vmem:[%s1623_s1] sm:$0xff]   ;;  %1172 = vmatprep.subr.bf16.mxu1 %v1257_v1  ;;  %v1262_v6 = vld [vmem:[%s1623_s1 + $0x8] sm:$0xff]   ;;  %v1266_v10 = vld [vmem:[%s1623_s1 + $0x10] sm:$0xff]  }
   0x4   :  { %v1259_v3 = vld [vmem:[%s1623_s1 + $0x80] sm:$0xff]   ;;  %1145 = vmatpush3.bf16.msra.mxu0 %v1258_v2  ;;  %v1263_v7 = vld [vmem:[%s1623_s1 + $0x88] sm:$0xff]   ;;  %v1267_v11 = vld [vmem:[%s1623_s1 + $0x90] sm:$0xff]  }
   0x5   :  { %1173 = vmatpush3.bf16.msra.mxu1 %v1259_v3  ;;  %1146 = vmatprep.subr.bf16.mxu0 %v1260_v4  ;;  %v1268_v12 = vld [vmem:[%s1623_s1 + $0x58] sm:$0xff]   ;;  %v1272_v16 = vld [vmem:[%s1623_s1 + $0x60] sm:$0xff]   ;;  %v1276_v20 = vld [vmem:[%s1623_s1 + $0x68] sm:$0xff]  }
   0x6   :  { %1174 = vmatprep.subr.bf16.mxu1 %v1261_v5  ;;  %v1269_v13 = vld [vmem:[%s1623_s1 + $0xd8] sm:$0xff]   ;;  %v1273_v17 = vld [vmem:[%s1623_s1 + $0xe0] sm:$0xff]   ;;  %v1277_v21 = vld [vmem:[%s1623_s1 + $0xe8] sm:$0xff]  }
   0x7   :  { %v1270_v14 = vld [vmem:[%s1623_s1 + $0x18] sm:$0xff]   ;;  %v1274_v18 = vld [vmem:[%s1623_s1 + $0x20] sm:$0xff]   ;;  %v1278_v22 = vld [vmem:[%s1623_s1 + $0x28] sm:$0xff]  }
   0x8   :  { %1147 = vmatpush3.bf16.msra.mxu0 %v1262_v6  ;;  %v1271_v15 = vld [vmem:[%s1623_s1 + $0x98] sm:$0xff]   ;;  %v1275_v19 = vld [vmem:[%s1623_s1 + $0xa0] sm:$0xff]   ;;  %v1279_v23 = vld [vmem:[%s1623_s1 + $0xa8] sm:$0xff]  }
   0x9   :  { %1175 = vmatpush3.bf16.msra.mxu1 %v1263_v7  ;;  %1148 = vmatprep.subr.bf16.mxu0 %v1264_v8  ;;  %v1280_v24 = vld [vmem:[%s1623_s1 + $0x70] sm:$0xff]   ;;  %v1284_v28 = vld [vmem:[%s1623_s1 + $0x78] sm:$0xff]   ;;  %v21_v32 = vld [vmem:[%s1624_s0] sm:$0xff] }
   0xa   :  { %1176 = vmatprep.subr.bf16.mxu1 %v1265_v9  ;;  %v1281_v25 = vld [vmem:[%s1623_s1 + $0xf0] sm:$0xff]   ;;  %v1285_v29 = vld [vmem:[%s1623_s1 + $0xf8] sm:$0xff]   ;;  %v1470_v33 = vld [vmem:[%s1624_s0 + $0x8] sm:$0xff] }
   0xb   :  { %v1282_v26 = vld [vmem:[%s1623_s1 + $0x30] sm:$0xff]   ;;  %v1286_v30 = vld [vmem:[%s1623_s1 + $0x38] sm:$0xff]   ;;  %v978_v34 = vld [vmem:[%s1624_s0 + $0x28] sm:$0xff]  ;;  %v958_v35 = vcombine.low %v21_v32, %v1470_v33  ;;  %v959_v36 = vcombine.high %v21_v32, %v1470_v33 }
   0xc   :  { %1149 = vmatpush3.bf16.msra.mxu0 %v1266_v10  ;;  %v1283_v27 = vld [vmem:[%s1623_s1 + $0xb0] sm:$0xff]   ;;  %v1287_v31 = vld [vmem:[%s1623_s1 + $0xb8] sm:$0xff]   ;;  %v1292_v40 = vld [vmem:[%s1623_s1 + $0x140] sm:$0xff]  }
   0xd   :  { %1177 = vmatpush3.bf16.msra.mxu1 %v1267_v11  ;;  %1150 = vmatprep.subr.bf16.mxu0 %v1268_v12  ;;  %v1480_v37 = vld [vmem:[%s1624_s0 + $0x30] sm:$0xff]  ;;  %v1293_v41 = vld [vmem:[%s1623_s1 + $0x1c0] sm:$0xff]   ;;  %v1296_v44 = vld [vmem:[%s1623_s1 + $0x148] sm:$0xff]  }
   0xe   :  { %1178 = vmatprep.subr.bf16.mxu1 %v1269_v13  ;;  %v1014_v38 = vcombine.low %v978_v34, %v1480_v37  ;;  %v1015_v39 = vcombine.high %v978_v34, %v1480_v37  ;;  %205 = vmatprep.mubr.bf16.mxu0 %v959_v36  ;;  %v1294_v42 = vld [vmem:[%s1623_s1 + $0x100] sm:$0xff]   ;;  %v1297_v45 = vld [vmem:[%s1623_s1 + $0x1c8] sm:$0xff]   ;;  %v1300_v48 = vld [vmem:[%s1623_s1 + $0x150] sm:$0xff]  }
   0xf   :  { %v1295_v43 = vld [vmem:[%s1623_s1 + $0x180] sm:$0xff]   ;;  %v1298_v46 = vld [vmem:[%s1623_s1 + $0x108] sm:$0xff]   ;;  %v1301_v49 = vld [vmem:[%s1623_s1 + $0x1d0] sm:$0xff]  }
  0x10   :  { %1151 = vmatpush3.bf16.msra.mxu0 %v1270_v14  ;;  %412 = vmatprep.mubr.bf16.mxu1 %v1015_v39  ;;  %v1299_v47 = vld [vmem:[%s1623_s1 + $0x188] sm:$0xff]   ;;  %v1302_v50 = vld [vmem:[%s1623_s1 + $0x110] sm:$0xff]   ;;  %v1304_v52 = vld [vmem:[%s1623_s1 + $0x158] sm:$0xff]  }
  0x11   :  { %1179 = vmatpush3.bf16.msra.mxu1 %v1271_v15  ;;  %1152 = vmatprep.subr.bf16.mxu0 %v1272_v16  ;;  %v1303_v51 = vld [vmem:[%s1623_s1 + $0x190] sm:$0xff]   ;;  %v1305_v53 = vld [vmem:[%s1623_s1 + $0x1d8] sm:$0xff]   ;;  %v1308_v56 = vld [vmem:[%s1623_s1 + $0x160] sm:$0xff]  }
  0x12   :  { %1180 = vmatprep.subr.bf16.mxu1 %v1273_v17  ;;  %v1306_v54 = vld [vmem:[%s1623_s1 + $0x118] sm:$0xff]   ;;  %v1309_v57 = vld [vmem:[%s1623_s1 + $0x1e0] sm:$0xff]   ;;  %v23_v60 = vld [vmem:[%s1624_s0 + $0x10] sm:$0xff] }
  0x13   :  { %v1307_v55 = vld [vmem:[%s1623_s1 + $0x198] sm:$0xff]   ;;  %v1310_v58 = vld [vmem:[%s1623_s1 + $0x120] sm:$0xff]   ;;  %v1314_v3 = vld [vmem:[%s1623_s1 + $0x168] sm:$0xff]   ;;  %v1067_v6 = vcombine.high %v1470_v33, %v23_v60 }
  0x14   :  { %1153 = vmatpush3.bf16.msra.mxu0 %v1274_v18  ;;  %v1311_v59 = vld [vmem:[%s1623_s1 + $0x1a0] sm:$0xff]   ;;  %v24_v61 = vld [vmem:[%s1624_s0 + $0x18] sm:$0xff]  ;;  %v1315_v5 = vld [vmem:[%s1623_s1 + $0x1e8] sm:$0xff]   ;;  %v1066_v18 = vcombine.low %v1470_v33, %v23_v60 }
  0x15   :  { %1181 = vmatpush3.bf16.msra.mxu1 %v1275_v19  ;;  %1154 = vmatprep.subr.bf16.mxu0 %v1276_v20  ;;  %v961_v62 = vcombine.high %v23_v60, %v24_v61  ;;  %v980_v63 = vld [vmem:[%s1624_s0 + $0x38] sm:$0xff]  ;;  %v981_v0 = vld [vmem:[%s1624_s0 + $0x40] sm:$0xff]  ;;  %v960_v1 = vcombine.low %v23_v60, %v24_v61  ;;  %v1318_v7 = vld [vmem:[%s1623_s1 + $0x128] sm:$0xff]  }
  0x16   :  { %1182 = vmatprep.subr.bf16.mxu1 %v1277_v21  ;;  %v1017_v2 = vcombine.high %v980_v63, %v981_v0  ;;  %v1016_v4 = vcombine.low %v980_v63, %v981_v0  ;;  %v1123_v8 = vcombine.high %v1480_v37, %v980_v63  ;;  %v1319_v9 = vld [vmem:[%s1623_s1 + $0x1a8] sm:$0xff]   ;;  %v1320_v10 = vld [vmem:[%s1623_s1 + $0x170] sm:$0xff]   ;;  %v1324_v14 = vld [vmem:[%s1623_s1 + $0x178] sm:$0xff]   ;;  %v1122_v20 = vcombine.low %v1480_v37, %v980_v63 }
  0x17   :  { %v1321_v11 = vld [vmem:[%s1623_s1 + $0x1f0] sm:$0xff]   ;;  %v1325_v15 = vld [vmem:[%s1623_s1 + $0x1f8] sm:$0xff]   ;;  %v444_v19 = vld [vmem:[%s1624_s0 + $0x20] sm:$0xff] }
  0x18   :  { %1155 = vmatpush3.bf16.msra.mxu0 %v1278_v22  ;;  %v1322_v12 = vld [vmem:[%s1623_s1 + $0x130] sm:$0xff]   ;;  %v1326_v16 = vld [vmem:[%s1623_s1 + $0x138] sm:$0xff]   ;;  %v1069_v21 = vcombine.high %v24_v61, %v444_v19  ;;  %v1089_v22 = vld [vmem:[%s1624_s0 + $0x48] sm:$0xff] }
  0x19   :  { %1183 = vmatpush3.bf16.msra.mxu1 %v1279_v23  ;;  %1156 = vmatprep.subr.bf16.mxu0 %v1280_v24  ;;  %v1323_v13 = vld [vmem:[%s1623_s1 + $0x1b0] sm:$0xff]   ;;  %v1327_v17 = vld [vmem:[%s1623_s1 + $0x1b8] sm:$0xff]   ;;  %v1125_v23 = vcombine.high %v981_v0, %v1089_v22  ;;  %v1068_v24 = vcombine.low %v24_v61, %v444_v19 }
  0x1a   :  { %1184 = vmatprep.subr.bf16.mxu1 %v1281_v25  ;;  %v1124_v25 = vcombine.low %v981_v0, %v1089_v22 }
  0x1c   :  { %1157 = vmatpush3.bf16.msra.mxu0 %v1282_v26 }
  0x1d   :  { %1185 = vmatpush3.bf16.msra.mxu1 %v1283_v27  ;;  %1158 = vmatprep.subr.bf16.mxu0 %v1284_v28 }
  0x1e   :  { %1186 = vmatprep.subr.bf16.mxu1 %v1285_v29 }
  0x20   :  { %1159 = vmatpush3.bf16.msra.mxu0 %v1286_v30 }
  0x21   :  { %1187 = vmatpush3.bf16.msra.mxu1 %v1287_v31  ;;  %1200 = vmatprep.subr.bf16.mxu0 %v1292_v40 }
  0x22   :  { %1228 = vmatprep.subr.bf16.mxu1 %v1293_v41 }
  0x23   :  { %206 = vmatmul.mubr.bf16.vlgmr.msra.gmra.mrb[0].mxu0 %v958_v35 }
  0x24   :  { %413 = vmatmul.mubr.bf16.vlgmr.msra.gmra.mrb[0].mxu1 %v1014_v38  ;;  %1201 = vmatpush3.bf16.msra.mxu0 %v1294_v42 }
  0x25   :  { %1229 = vmatpush3.bf16.msra.mxu1 %v1295_v43  ;;  %1202 = vmatprep.subr.bf16.mxu0 %v1296_v44 }
  0x26   :  { %1230 = vmatprep.subr.bf16.mxu1 %v1297_v45  ;;  %213 = vmatprep.mubr.bf16.mxu0 %v961_v62 }
  0x27   :  { %420 = vmatprep.mubr.bf16.mxu1 %v1017_v2 }
  0x28   :  { %1203 = vmatpush3.bf16.msra.mxu0 %v1298_v46 }
  0x29   :  { %1231 = vmatpush3.bf16.msra.mxu1 %v1299_v47  ;;  %1204 = vmatprep.subr.bf16.mxu0 %v1300_v48 }
  0x2a   :  { %1232 = vmatprep.subr.bf16.mxu1 %v1301_v49 }
  0x2b   :  { %214 = vmatmul.mubr.bf16.gmra.mrb[4].mxu0 %v960_v1 }
  0x2c   :  { %1205 = vmatpush3.bf16.msra.mxu0 %v1302_v50  ;;  %421 = vmatmul.mubr.bf16.gmra.mrb[4].mxu1 %v1016_v4 }
  0x2d   :  { %1233 = vmatpush3.bf16.msra.mxu1 %v1303_v51  ;;  %1206 = vmatprep.subr.bf16.mxu0 %v1304_v52 }
  0x2e   :  { %1234 = vmatprep.subr.bf16.mxu1 %v1305_v53  ;;  %626 = vmatprep.mubr.bf16.mxu0 %v1067_v6 }
  0x2f   :  { %840 = vmatprep.mubr.bf16.mxu1 %v1123_v8 }
  0x30   :  { %1207 = vmatpush3.bf16.msra.mxu0 %v1306_v54 }
  0x31   :  { %1235 = vmatpush3.bf16.msra.mxu1 %v1307_v55  ;;  %1208 = vmatprep.subr.bf16.mxu0 %v1308_v56 }
  0x32   :  { %1236 = vmatprep.subr.bf16.mxu1 %v1309_v57 }
  0x34   :  { %1209 = vmatpush3.bf16.msra.mxu0 %v1310_v58 }
  0x35   :  { %1237 = vmatpush3.bf16.msra.mxu1 %v1311_v59  ;;  %1210 = vmatprep.subr.bf16.mxu0 %v1314_v3 }
  0x36   :  { %1238 = vmatprep.subr.bf16.mxu1 %v1315_v5  ;;  %v1142_v5 = vld [vmem:[%s1625_s2] ss:$0 sm:$0xff] }
  0x38   :  { %1211 = vmatpush3.bf16.msra.mxu0 %v1318_v7 }
  0x39   :  { %1239 = vmatpush3.bf16.msra.mxu1 %v1319_v9  ;;  %1212 = vmatprep.subr.bf16.mxu0 %v1320_v10 }
  0x3a   :  { %1240 = vmatprep.subr.bf16.mxu1 %v1321_v11 }
  0x3c   :  { %1213 = vmatpush3.bf16.msra.mxu0 %v1322_v12 }
  0x3d   :  { %1241 = vmatpush3.bf16.msra.mxu1 %v1323_v13  ;;  %1214 = vmatprep.subr.bf16.mxu0 %v1324_v14 }
  0x3e   :  { %1242 = vmatprep.subr.bf16.mxu1 %v1325_v15 }
  0x40   :  { %1215 = vmatpush3.bf16.msra.mxu0 %v1326_v16 }
  0x41   :  { %1243 = vmatpush3.bf16.msra.mxu1 %v1327_v17 }
  0x43   :  { %627 = vmatmul.mubr.bf16.vlgmr.msra.gmra.mrb[8].mxu0 %v1066_v18 }
  0x44   :  { %841 = vmatmul.mubr.bf16.vlgmr.msra.gmra.mrb[8].mxu1 %v1122_v20  ;;  %634 = vmatprep.mubr.bf16.mxu0 %v1069_v21 }
  0x45   :  { %848 = vmatprep.mubr.bf16.mxu1 %v1125_v23 }
  0x4b   :  { %635 = vmatmul.mubr.bf16.gmra.mrb[12].mxu0 %v1068_v24 }
  0x4c   :  { %849 = vmatmul.mubr.bf16.gmra.mrb[12].mxu1 %v1124_v25 }
  0xf6   :  { %v1160_v26 = vpop.f32.mrb[0].mxu0 }
  0xf7   :  { %v1188_v27 = vpop.f32.mrb[0].mxu1  ;;  %v1161_v28 = vpop.f32.mrb[1].mxu0 }
  0xf8   :  { %v1162_v29 = vadd.f32 %v1161_v28, %v1160_v26  ;;  %v1189_v30 = vpop.f32.mrb[1].mxu1  ;;  %v1163_v31 = vpop.f32.mrb[2].mxu0 }
  0xf9   :  { %v1190_v32 = vadd.f32 %v1189_v30, %v1188_v27  ;;  %v1191_v33 = vpop.f32.mrb[2].mxu1  ;;  %v1164_v34 = vpop.f32.mrb[3].mxu0 }
  0xfa   :  { %v1165_v35 = vadd.f32 %v1164_v34, %v1163_v31  ;;  %v1192_v36 = vpop.f32.mrb[3].mxu1 }
  0xfb   :  { %v433_v37 = vadd.f32 %v1190_v32, %v1162_v29  ;;  %v1193_v38 = vadd.f32 %v1192_v36, %v1191_v33 }
  0xfd   :  { %v434_v39 = vadd.f32 %v1193_v38, %v1165_v35 }
  0xfe   :  { %v1166_v40 = vpop.f32.mrb[4].mxu0 }
  0xff   :  { %v1194_v41 = vpop.f32.mrb[4].mxu1  ;;  %v1167_v42 = vpop.f32.mrb[5].mxu0 }
 0x100   :  { %v1168_v43 = vadd.f32 %v1167_v42, %v1166_v40  ;;  %v1195_v44 = vpop.f32.mrb[5].mxu1  ;;  %v1169_v45 = vpop.f32.mrb[6].mxu0 }
 0x101   :  { %v1196_v46 = vadd.f32 %v1195_v44, %v1194_v41  ;;  %v1197_v47 = vpop.f32.mrb[6].mxu1  ;;  %v1170_v48 = vpop.f32.mrb[7].mxu0 }
 0x102   :  { %v1171_v49 = vadd.f32 %v1170_v48, %v1169_v45  ;;  %v1198_v50 = vpop.f32.mrb[7].mxu1 }
 0x103   :  { %v435_v51 = vadd.f32 %v1196_v46, %v1168_v43  ;;  %v1199_v52 = vadd.f32 %v1198_v50, %v1197_v47 }
 0x105   :  { %v436_v53 = vadd.f32 %v1199_v52, %v1171_v49 }
 0x116   :  { %v1216_v54 = vpop.f32.mrb[8].mxu0 }
 0x117   :  { %v1244_v55 = vpop.f32.mrb[8].mxu1  ;;  %v1217_v56 = vpop.f32.mrb[9].mxu0 }
 0x118   :  { %v1218_v57 = vadd.f32 %v1217_v56, %v1216_v54  ;;  %v1245_v58 = vpop.f32.mrb[9].mxu1  ;;  %v1219_v59 = vpop.f32.mrb[10].mxu0  ;;  %v918_v56 = vlaneseq }
 0x119   :  { %v1246_v60 = vadd.f32 %v1245_v58, %v1244_v55  ;;  %v1247_v61 = vpop.f32.mrb[10].mxu1  ;;  %v1220_v62 = vpop.f32.mrb[11].mxu0  ;;  %v913_v58 = vld [vmem:[%s1626_s3] sm:$0x1] }
 0x11a   :  { %v647_v63 = vadd.f32 %v1218_v57, %v433_v37  ;;  %v1221_v0 = vadd.f32 %v1220_v62, %v1219_v59  ;;  %v1248_v1 = vpop.f32.mrb[11].mxu1  ;;  %v919_v57 = vshrl.u32 %v918_v56, 7 }
 0x11b   :  { %v1249_v2 = vadd.f32 %v1248_v1, %v1247_v61 }
 0x11c   :  { %v861_v3 = vadd.f32 %v1246_v60, %v647_v63  ;;  %v648_v4 = vadd.f32 %v1221_v0, %v434_v39  ;;  %v920_v59 = vsub.s32 0, %v919_v57  ;;  %v1143_v63 = vld [vmem:[%s1627_s4] ss:$0 sm:$0xff] }
 0x11e   :  { %v862_v6 = vadd.f32 %v1249_v2, %v648_v4  ;;  %v1222_v7 = vpop.f32.mrb[12].mxu0  ;;  %v880_v10 = vadd.f32 %v1142_v5, %v861_v3 }
 0x11f   :  { %v1250_v8 = vpop.f32.mrb[12].mxu1  ;;  %v1223_v9 = vpop.f32.mrb[13].mxu0 }
 0x120   :  { %v881_v11 = vadd.f32 %v1142_v5, %v862_v6  ;;  %v1224_v12 = vadd.f32 %v1223_v9, %v1222_v7  ;;  %v1251_v13 = vpop.f32.mrb[13].mxu1  ;;  %v1225_v14 = vpop.f32.mrb[14].mxu0 }
 0x121   :  { %v1252_v15 = vadd.f32 %v1251_v13, %v1250_v8  ;;  %v1253_v16 = vpop.f32.mrb[14].mxu1  ;;  %v1226_v17 = vpop.f32.mrb[15].mxu0 }
 0x122   :  { %v884_v18 = vadd.f32 %v881_v11, %v880_v10  ;;  %v649_v19 = vadd.f32 %v1224_v12, %v435_v51  ;;  %v1227_v20 = vadd.f32 %v1226_v17, %v1225_v14  ;;  %v1254_v21 = vpop.f32.mrb[15].mxu1 }
 0x123   :  { %v1255_v22 = vadd.f32 %v1254_v21, %v1253_v16 }
 0x124   :  { %v863_v23 = vadd.f32 %v1252_v15, %v649_v19  ;;  %v650_v24 = vadd.f32 %v1227_v20, %v436_v53 }
 0x126   :  { %v882_v25 = vadd.f32 %v1142_v5, %v863_v23  ;;  %v864_v26 = vadd.f32 %v1255_v22, %v650_v24 }
 0x128   :  { %v885_v27 = vadd.f32 %v884_v18, %v882_v25  ;;  %v883_v28 = vadd.f32 %v1142_v5, %v864_v26 }
 0x12a   :  { %v886_v29 = vadd.f32 %v885_v27, %v883_v28 }
 0x12c   :  { %v887_v30 = vrot.slane %v886_v29, 4 }
 0x12e   :  { %v888_v31 = vadd.f32 %v887_v30, %v886_v29 }
 0x130   :  { %v889_v32 = vrot.slane %v888_v31, 2 }
 0x132   :  { %v890_v33 = vadd.f32 %v889_v32, %v888_v31 }
 0x134   :  { %v891_v34 = vrot.slane %v890_v33, 1 }
 0x136   :  { %v892_v35 = vadd.f32 %v891_v34, %v890_v33 }
 0x138   :  { %v894_v36 = vmul.f32 0.03125, %v892_v35 }
 0x13a   :  { %v895_v37 = vsub.f32 %v880_v10, %v894_v36  ;;  %v896_v38 = vsub.f32 %v881_v11, %v894_v36  ;;  %v897_v39 = vsub.f32 %v882_v25, %v894_v36  ;;  %v898_v40 = vsub.f32 %v883_v28, %v894_v36 }
 0x13c   :  { %v899_v41 = vmul.f32 %v895_v37, %v895_v37  ;;  %v900_v42 = vmul.f32 %v896_v38, %v896_v38  ;;  %v901_v43 = vmul.f32 %v897_v39, %v897_v39  ;;  %v902_v45 = vmul.f32 %v898_v40, %v898_v40 }
 0x13e   :  { %v903_v44 = vadd.f32 %v900_v42, %v899_v41 }
 0x140   :  { %v904_v46 = vadd.f32 %v903_v44, %v901_v43 }
 0x142   :  { %v905_v47 = vadd.f32 %v904_v46, %v902_v45 }
 0x144   :  { %v906_v48 = vrot.slane %v905_v47, 4 }
 0x146   :  { %v907_v49 = vadd.f32 %v906_v48, %v905_v47 }
 0x148   :  { %v908_v50 = vrot.slane %v907_v49, 2 }
 0x14a   :  { %v909_v51 = vadd.f32 %v908_v50, %v907_v49 }
 0x14c   :  { %v910_v52 = vrot.slane %v909_v51, 1 }
 0x14e   :  { %v911_v53 = vadd.f32 %v910_v52, %v909_v51 }
 0x150   :  { %v912_v54 = vmul.f32 0.03125, %v911_v53 }
 0x152   :  { %v914_v55 = vadd.f32 1e-05, %v912_v54 }
 0x154   :  { %1336 = vrsqrt.f32 %v914_v55 }
 0x15e   :  { %v1337_v60 = vpop.eup %1336 }
 0x15f   :  { %v916_v61 = vmul.f32 %v1337_v60, %v913_v58 }
 0x161   :  { %v921_v62 = vrot.slane %v916_v61, %v920_v59 }
 0x163   :  { %v923_v0 = vmul.f32 %v921_v62, %v895_v37  ;;  %v924_v1 = vmul.f32 %v921_v62, %v896_v38  ;;  %v925_v2 = vmul.f32 %v921_v62, %v897_v39  ;;  %v926_v3 = vmul.f32 %v921_v62, %v898_v40 }
 0x165   :  { %v934_v4 = vadd.f32 %v1143_v63, %v923_v0  ;;  %v935_v5 = vadd.f32 %v1143_v63, %v924_v1  ;;  %v936_v6 = vadd.f32 %v1143_v63, %v925_v2  ;;  %v937_v7 = vadd.f32 %v1143_v63, %v926_v3 }
 0x167   :  { %vm938_vm0 = vcmp.gt.f32.partialorder %v934_v4, 0.0  ;;  %vm939_vm1 = vcmp.gt.f32.partialorder %v935_v5, 0.0  ;;  %vm940_vm2 = vcmp.gt.f32.partialorder %v936_v6, 0.0  ;;  %vm941_vm3 = vcmp.gt.f32.partialorder %v937_v7, 0.0 }
 0x168   :  { %v942_v8 = vmul.f32 0.2, %v934_v4  ;;  %v943_v9 = vmul.f32 0.2, %v935_v5  ;;  %v944_v10 = vmul.f32 0.2, %v936_v6 }
 0x169   :  { %v945_v11 = vmul.f32 0.2, %v937_v7 }
 0x16a   :  { %v946_v12 = vsel %vm938_vm0, %v934_v4, %v942_v8  ;;  %v947_v13 = vsel %vm939_vm1, %v935_v5, %v943_v9  ;;  %v948_v14 = vsel %vm940_vm2, %v936_v6, %v944_v10 }
 0x16b   :  { %v949_v15 = vsel %vm941_vm3, %v937_v7, %v945_v11  ;;  %950 = vst [vmem:[%s1628_s5] sm:$0xff] %v946_v12  ;;  %951 = vst [vmem:[%s1628_s5 + $0x8] sm:$0xff] %v947_v13 }
 0x16c   :  { %952 = vst [vmem:[%s1628_s5 + $0x10] sm:$0xff] %v948_v14  ;;  %953 = vst [vmem:[%s1628_s5 + $0x18] sm:$0xff] %v949_v15 }

// kernel: discriminator_forward.8
= control target key start
LH: loop header
LB: loop body
LE: loop exit
PB: predicated region body
PF: predicated region fallthrough
CT: control target
= control target key end

     0   :  { %vm1207_vm0 = vcmask 1045504   ;;  %vm649_vm1 = vcmask 1044480   ;;  %vm1765_vm2 = vcmask 1046528   ;;  %vm2251_vm3 = vcmask 1041408   ;;  %s4348_s1 = inlined_call_operand.vmem [shape: bf16[4,512,256], index: 1, kind: input, shape index: {}]   ;;  %s4349_s0 = inlined_call_operand.vmem [shape: bf16[1,36,512], index: 0, kind: input, shape index: {}]   ;;  %s4350_s2 = inlined_call_operand.vmem [shape: f32[1,256], index: 2, kind: input, shape index: {}]   ;;  %s4351_s3 = inlined_call_operand.vmem [shape: f32[1,256], index: 3, kind: input, shape index: {}]   ;;  %s4352_s4 = inlined_call_operand.vmem [shape: f32[1,256], index: 4, kind: input, shape index: {}]   ;;  %s4353_s5 = inlined_call_operand.vmem [shape: f32[18,256], index: 5, kind: output, shape index: {}]  }
   0x1   :  { %v2912_v0 = vld [vmem:[%s4348_s1 + $0x4] ss:$8 sps:$4 sm:$0xff]   ;;  %v2916_v2 = vld [vmem:[%s4348_s1] ss:$8 sps:$4 sm:$0xff]   ;;  %v2918_v4 = vld [vmem:[%s4348_s1 + $0x14] ss:$8 sps:$4 sm:$0xff]  }
   0x2   :  { %v2914_v1 = vld [vmem:[%s4348_s1 + $0x404] ss:$8 sps:$4 sm:$0xff]   ;;  %444 = vmatprep.subr.bf16.mxu1 %v2912_v0  ;;  %v2917_v3 = vld [vmem:[%s4348_s1 + $0x400] ss:$8 sps:$4 sm:$0xff]   ;;  %v2920_v5 = vld [vmem:[%s4348_s1 + $0x414] ss:$8 sps:$4 sm:$0xff]  }
   0x3   :  { %1548 = vmatprep.subr.bf16.mxu0 %v2914_v1  ;;  %445 = vmatpush1.bf16.msra.mxu1 %v2916_v2  ;;  %v2922_v6 = vld [vmem:[%s4348_s1 + $0x10] ss:$8 sps:$4 sm:$0xff]   ;;  %v2924_v8 = vld [vmem:[%s4348_s1 + $0x24] ss:$8 sps:$4 sm:$0xff]   ;;  %v2928_v10 = vld [vmem:[%s4348_s1 + $0x20] ss:$8 sps:$4 sm:$0xff]  }
   0x4   :  { %1549 = vmatpush1.bf16.msra.mxu0 %v2917_v3  ;;  %446 = vmatprep.subr.bf16.mxu1 %v2918_v4  ;;  %v2923_v7 = vld [vmem:[%s4348_s1 + $0x410] ss:$8 sps:$4 sm:$0xff]   ;;  %v2926_v9 = vld [vmem:[%s4348_s1 + $0x424] ss:$8 sps:$4 sm:$0xff]   ;;  %v2929_v11 = vld [vmem:[%s4348_s1 + $0x420] ss:$8 sps:$4 sm:$0xff]  }
   0x5   :  { %1550 = vmatprep.subr.bf16.mxu0 %v2920_v5  ;;  %v2930_v12 = vld [vmem:[%s4348_s1 + $0x34] ss:$8 sps:$4 sm:$0xff]   ;;  %v2934_v14 = vld [vmem:[%s4348_s1 + $0x30] ss:$8 sps:$4 sm:$0xff]   ;;  %v2936_v16 = vld [vmem:[%s4348_s1 + $0x44] ss:$8 sps:$4 sm:$0xff]  }
   0x6   :  { %v2932_v13 = vld [vmem:[%s4348_s1 + $0x434] ss:$8 sps:$4 sm:$0xff]   ;;  %v2935_v15 = vld [vmem:[%s4348_s1 + $0x430] ss:$8 sps:$4 sm:$0xff]   ;;  %v2938_v17 = vld [vmem:[%s4348_s1 + $0x444] ss:$8 sps:$4 sm:$0xff]  }
   0x7   :  { %447 = vmatpush1.bf16.msra.mxu1 %v2922_v6  ;;  %v2940_v18 = vld [vmem:[%s4348_s1 + $0x40] ss:$8 sps:$4 sm:$0xff]   ;;  %v2942_v20 = vld [vmem:[%s4348_s1 + $0x54] ss:$8 sps:$4 sm:$0xff]   ;;  %v2946_v22 = vld [vmem:[%s4348_s1 + $0x50] ss:$8 sps:$4 sm:$0xff]  }
   0x8   :  { %1551 = vmatpush1.bf16.msra.mxu0 %v2923_v7  ;;  %448 = vmatprep.subr.bf16.mxu1 %v2924_v8  ;;  %v2941_v19 = vld [vmem:[%s4348_s1 + $0x440] ss:$8 sps:$4 sm:$0xff]   ;;  %v2944_v21 = vld [vmem:[%s4348_s1 + $0x454] ss:$8 sps:$4 sm:$0xff]   ;;  %v2947_v23 = vld [vmem:[%s4348_s1 + $0x450] ss:$8 sps:$4 sm:$0xff]  }
   0x9   :  { %1552 = vmatprep.subr.bf16.mxu0 %v2926_v9  ;;  %v2948_v24 = vld [vmem:[%s4348_s1 + $0x64] ss:$8 sps:$4 sm:$0xff]   ;;  %v2952_v26 = vld [vmem:[%s4348_s1 + $0x60] ss:$8 sps:$4 sm:$0xff]   ;;  %v2954_v28 = vld [vmem:[%s4348_s1 + $0x74] ss:$8 sps:$4 sm:$0xff]  }
   0xa   :  { %v2950_v25 = vld [vmem:[%s4348_s1 + $0x464] ss:$8 sps:$4 sm:$0xff]   ;;  %v2953_v27 = vld [vmem:[%s4348_s1 + $0x460] ss:$8 sps:$4 sm:$0xff]   ;;  %v2956_v29 = vld [vmem:[%s4348_s1 + $0x474] ss:$8 sps:$4 sm:$0xff]  }
   0xb   :  { %449 = vmatpush1.bf16.msra.mxu1 %v2928_v10  ;;  %v2958_v30 = vld [vmem:[%s4348_s1 + $0x70] ss:$8 sps:$4 sm:$0xff]   ;;  %v2960_v32 = vld [vmem:[%s4348_s1 + $0x84] ss:$8 sps:$4 sm:$0xff]   ;;  %v2964_v34 = vld [vmem:[%s4348_s1 + $0x80] ss:$8 sps:$4 sm:$0xff]  }
   0xc   :  { %1553 = vmatpush1.bf16.msra.mxu0 %v2929_v11  ;;  %450 = vmatprep.subr.bf16.mxu1 %v2930_v12  ;;  %v2959_v31 = vld [vmem:[%s4348_s1 + $0x470] ss:$8 sps:$4 sm:$0xff]   ;;  %v2962_v33 = vld [vmem:[%s4348_s1 + $0x484] ss:$8 sps:$4 sm:$0xff]   ;;  %v2965_v35 = vld [vmem:[%s4348_s1 + $0x480] ss:$8 sps:$4 sm:$0xff]  }
   0xd   :  { %1554 = vmatprep.subr.bf16.mxu0 %v2932_v13  ;;  %v2966_v36 = vld [vmem:[%s4348_s1 + $0x94] ss:$8 sps:$4 sm:$0xff]   ;;  %v2970_v38 = vld [vmem:[%s4348_s1 + $0x90] ss:$8 sps:$4 sm:$0xff]   ;;  %v2972_v40 = vld [vmem:[%s4348_s1 + $0xa4] ss:$8 sps:$4 sm:$0xff]  }
   0xe   :  { %v2968_v37 = vld [vmem:[%s4348_s1 + $0x494] ss:$8 sps:$4 sm:$0xff]   ;;  %v2971_v39 = vld [vmem:[%s4348_s1 + $0x490] ss:$8 sps:$4 sm:$0xff]   ;;  %v2974_v41 = vld [vmem:[%s4348_s1 + $0x4a4] ss:$8 sps:$4 sm:$0xff]  }
   0xf   :  { %451 = vmatpush1.bf16.msra.mxu1 %v2934_v14  ;;  %v2976_v42 = vld [vmem:[%s4348_s1 + $0xa0] ss:$8 sps:$4 sm:$0xff]   ;;  %v2978_v44 = vld [vmem:[%s4348_s1 + $0xb4] ss:$8 sps:$4 sm:$0xff]   ;;  %v2982_v46 = vld [vmem:[%s4348_s1 + $0xb0] ss:$8 sps:$4 sm:$0xff]  }
  0x10   :  { %1555 = vmatpush1.bf16.msra.mxu0 %v2935_v15  ;;  %452 = vmatprep.subr.bf16.mxu1 %v2936_v16  ;;  %v2977_v43 = vld [vmem:[%s4348_s1 + $0x4a0] ss:$8 sps:$4 sm:$0xff]   ;;  %v2980_v45 = vld [vmem:[%s4348_s1 + $0x4b4] ss:$8 sps:$4 sm:$0xff]   ;;  %v2983_v47 = vld [vmem:[%s4348_s1 + $0x4b0] ss:$8 sps:$4 sm:$0xff]  }
  0x11   :  { %1556 = vmatprep.subr.bf16.mxu0 %v2938_v17  ;;  %v3514_v48 = vld [vmem:[%s4349_s0] sm:$0xff]  ;;  %v3519_v49 = vld [vmem:[%s4349_s0 + $0x10] sm:$0xff] }
  0x12   :  { %v2984_v50 = vld [vmem:[%s4348_s1 + $0xc4] ss:$8 sps:$4 sm:$0xff]   ;;  %v2392_v52 = vcombine.high %v3514_v48, %v3519_v49  ;;  %v1110_v53 = vld [vmem:[%s4349_s0 + $0x10] sm:$0xcc]  ;;  %v2988_v58 = vld [vmem:[%s4348_s1 + $0xc0] ss:$8 sps:$4 sm:$0xff]   ;;  %v2391_v17 = vcombine.low %v3514_v48, %v3519_v49 }
  0x13   :  { %453 = vmatpush1.bf16.msra.mxu1 %v2940_v18  ;;  %v2986_v51 = vld [vmem:[%s4348_s1 + $0x4c4] ss:$8 sps:$4 sm:$0xff]   ;;  %v1114_v55 = vld [vmem:[%s4349_s0 + $0x30] sm:$0x77]  ;;  %v2989_v59 = vld [vmem:[%s4348_s1 + $0x4c0] ss:$8 sps:$4 sm:$0xff]  }
  0x14   :  { %1557 = vmatpush1.bf16.msra.mxu0 %v2941_v19  ;;  %454 = vmatprep.subr.bf16.mxu1 %v2942_v20  ;;  %v3535_v54 = vld [vmem:[%s4349_s0 + $0x20] sm:$0xff]  ;;  %v2668_v57 = vcombine.high %v1114_v55, %v1114_v55  ;;  %v2990_v60 = vld [vmem:[%s4348_s1 + $0xd4] ss:$8 sps:$4 sm:$0xff]   ;;  %v2994_v1 = vld [vmem:[%s4348_s1 + $0xd0] ss:$8 sps:$4 sm:$0xff]   ;;  %v2667_v9 = vcombine.low %v1114_v55, %v1114_v55 }
  0x15   :  { %1558 = vmatprep.subr.bf16.mxu0 %v2944_v21  ;;  %476 = vmatprep.mubr.bf16.mxu1 %v2392_v52  ;;  %v2664_v56 = vcombine.high %v1110_v53, %v3535_v54  ;;  %v2992_v63 = vld [vmem:[%s4348_s1 + $0x4d4] ss:$8 sps:$4 sm:$0xff]   ;;  %v2995_v2 = vld [vmem:[%s4348_s1 + $0x4d0] ss:$8 sps:$4 sm:$0xff]   ;;  %v2996_v3 = vld [vmem:[%s4348_s1 + $0xe4] ss:$8 sps:$4 sm:$0xff]   ;;  %v2663_v8 = vcombine.low %v1110_v53, %v3535_v54 }
  0x16   :  { %v1212_v62 = vrot.slane %v2668_v57, 2  ;;  %v2998_v4 = vld [vmem:[%s4348_s1 + $0x4e4] ss:$8 sps:$4 sm:$0xff]   ;;  %v3000_v5 = vld [vmem:[%s4348_s1 + $0xe0] ss:$8 sps:$4 sm:$0xff]   ;;  %v1209_v15 = vrot.slane %v2667_v9, 2 }
  0x17   :  { %455 = vmatpush1.bf16.msra.mxu1 %v2946_v22  ;;  %v1211_v61 = vrot.slane %v2664_v56, 2  ;;  %v3001_v6 = vld [vmem:[%s4348_s1 + $0x4e0] ss:$8 sps:$4 sm:$0xff]   ;;  %v3002_v7 = vld [vmem:[%s4348_s1 + $0xf4] ss:$8 sps:$4 sm:$0xff]   ;;  %v1208_v14 = vrot.slane %v2663_v8, 2 }
  0x18   :  { %1559 = vmatpush1.bf16.msra.mxu0 %v2947_v23  ;;  %456 = vmatprep.subr.bf16.mxu1 %v2948_v24  ;;  %v3004_v10 = vld [vmem:[%s4348_s1 + $0x4f4] ss:$8 sps:$4 sm:$0xff]   ;;  %v3006_v11 = vld [vmem:[%s4348_s1 + $0xf0] ss:$8 sps:$4 sm:$0xff]   ;;  %v3012_v13 = vld [vmem:[%s4348_s1 + $0x104] ss:$8 sps:$4 sm:$0xff]  }
  0x19   :  { %1560 = vmatprep.subr.bf16.mxu0 %v2950_v25  ;;  %v1213_v0 = vsel %vm1207_vm0, %v1211_v61, %v1212_v62  ;;  %v3007_v12 = vld [vmem:[%s4348_s1 + $0x4f0] ss:$8 sps:$4 sm:$0xff]   ;;  %v3017_v16 = vld [vmem:[%s4348_s1 + $0x504] ss:$8 sps:$4 sm:$0xff]   ;;  %v3010_v18 = vld [vmem:[%s4348_s1 + $0x100] ss:$8 sps:$4 sm:$0xff]   ;;  %v1210_v20 = vsel %vm1207_vm0, %v1208_v14, %v1209_v15 }
  0x1a   :  { %1580 = vmatprep.mubr.bf16.mxu0 %v1213_v0  ;;  %v3015_v19 = vld [vmem:[%s4348_s1 + $0x500] ss:$8 sps:$4 sm:$0xff]   ;;  %v3022_v21 = vld [vmem:[%s4348_s1 + $0x114] ss:$8 sps:$4 sm:$0xff]   ;;  %v3020_v23 = vld [vmem:[%s4348_s1 + $0x110] ss:$8 sps:$4 sm:$0xff]  }
  0x1b   :  { %457 = vmatpush1.bf16.msra.mxu1 %v2952_v26  ;;  %v3025_v22 = vld [vmem:[%s4348_s1 + $0x514] ss:$8 sps:$4 sm:$0xff]   ;;  %v3023_v24 = vld [vmem:[%s4348_s1 + $0x510] ss:$8 sps:$4 sm:$0xff]   ;;  %v3028_v25 = vld [vmem:[%s4348_s1 + $0x124] ss:$8 sps:$4 sm:$0xff]  }
  0x1c   :  { %1561 = vmatpush1.bf16.msra.mxu0 %v2953_v27  ;;  %458 = vmatprep.subr.bf16.mxu1 %v2954_v28  ;;  %v3031_v26 = vld [vmem:[%s4348_s1 + $0x524] ss:$8 sps:$4 sm:$0xff]   ;;  %v3026_v27 = vld [vmem:[%s4348_s1 + $0x120] ss:$8 sps:$4 sm:$0xff]   ;;  %v3061_v52 = vld [vmem:[%s4348_s1 + $0x574] ss:$8 sps:$4 sm:$0xff]  }
  0x1d   :  { %1562 = vmatprep.subr.bf16.mxu0 %v2956_v29  ;;  %v3029_v28 = vld [vmem:[%s4348_s1 + $0x520] ss:$8 sps:$4 sm:$0xff]   ;;  %v3034_v29 = vld [vmem:[%s4348_s1 + $0x134] ss:$8 sps:$4 sm:$0xff]   ;;  %v3059_v61 = vld [vmem:[%s4348_s1 + $0x570] ss:$8 sps:$4 sm:$0xff]  }
  0x1e   :  { %v3678_v48 = vld [vmem:[%s4349_s0 + $0x8] sm:$0xff]  ;;  %v3696_v55 = vld [vmem:[%s4349_s0 + $0x18] sm:$0xcc] }
  0x1f   :  { %459 = vmatpush1.bf16.msra.mxu1 %v2958_v30  ;;  %v3037_v30 = vld [vmem:[%s4348_s1 + $0x534] ss:$8 sps:$4 sm:$0xff]   ;;  %v3701_v56 = vld [vmem:[%s4349_s0 + $0x28] sm:$0xff]  ;;  %v3071_v8 = vld [vmem:[%s4348_s1 + $0x590] ss:$8 sps:$4 sm:$0xff]  }
  0x20   :  { %1563 = vmatpush1.bf16.msra.mxu0 %v2959_v31  ;;  %460 = vmatprep.subr.bf16.mxu1 %v2960_v32  ;;  %v3032_v31 = vld [vmem:[%s4348_s1 + $0x130] ss:$8 sps:$4 sm:$0xff]   ;;  %v3076_v9 = vld [vmem:[%s4348_s1 + $0x1a4] ss:$8 sps:$4 sm:$0xff]   ;;  %v3085_v14 = vld [vmem:[%s4348_s1 + $0x5b4] ss:$8 sps:$4 sm:$0xff]  }
  0x21   :  { %1564 = vmatprep.subr.bf16.mxu0 %v2962_v33  ;;  %v3035_v32 = vld [vmem:[%s4348_s1 + $0x530] ss:$8 sps:$4 sm:$0xff]   ;;  %v3040_v33 = vld [vmem:[%s4348_s1 + $0x144] ss:$8 sps:$4 sm:$0xff]  }
  0x22   :  { %v3706_v57 = vld [vmem:[%s4349_s0 + $0x38] sm:$0x77] }
  0x23   :  { %461 = vmatpush1.bf16.msra.mxu1 %v2964_v34  ;;  %v3043_v34 = vld [vmem:[%s4348_s1 + $0x544] ss:$8 sps:$4 sm:$0xff]  }
  0x24   :  { %1565 = vmatpush1.bf16.msra.mxu0 %v2965_v35  ;;  %462 = vmatprep.subr.bf16.mxu1 %v2966_v36  ;;  %v3038_v35 = vld [vmem:[%s4348_s1 + $0x140] ss:$8 sps:$4 sm:$0xff]  }
  0x25   :  { %1566 = vmatprep.subr.bf16.mxu0 %v2968_v37  ;;  %v3041_v36 = vld [vmem:[%s4348_s1 + $0x540] ss:$8 sps:$4 sm:$0xff]   ;;  %v3046_v37 = vld [vmem:[%s4348_s1 + $0x154] ss:$8 sps:$4 sm:$0xff]  }
  0x27   :  { %463 = vmatpush1.bf16.msra.mxu1 %v2970_v38  ;;  %v3049_v38 = vld [vmem:[%s4348_s1 + $0x554] ss:$8 sps:$4 sm:$0xff]  }
  0x28   :  { %1567 = vmatpush1.bf16.msra.mxu0 %v2971_v39  ;;  %464 = vmatprep.subr.bf16.mxu1 %v2972_v40  ;;  %v24_v39 = vld [vmem:[%s4349_s0 + $0x20] sm:$0x11]  ;;  %v3044_v40 = vld [vmem:[%s4348_s1 + $0x150] ss:$8 sps:$4 sm:$0xff]  }
  0x29   :  { %1568 = vmatprep.subr.bf16.mxu0 %v2974_v41  ;;  %v3047_v41 = vld [vmem:[%s4348_s1 + $0x550] ss:$8 sps:$4 sm:$0xff]  }
  0x2b   :  { %465 = vmatpush1.bf16.msra.mxu1 %v2976_v42  ;;  %v2396_v42 = vcombine.high %v24_v39, %v24_v39 }
  0x2c   :  { %1569 = vmatpush1.bf16.msra.mxu0 %v2977_v43  ;;  %466 = vmatprep.subr.bf16.mxu1 %v2978_v44  ;;  %v2395_v43 = vcombine.low %v24_v39, %v24_v39  ;;  %v3052_v44 = vld [vmem:[%s4348_s1 + $0x164] ss:$8 sps:$4 sm:$0xff]   ;;  %v3114_v39 = vld [vmem:[%s4348_s1 + $0x200] ss:$8 sps:$4 sm:$0xff]  }
  0x2d   :  { %1570 = vmatprep.subr.bf16.mxu0 %v2980_v45  ;;  %v3055_v45 = vld [vmem:[%s4348_s1 + $0x564] ss:$8 sps:$4 sm:$0xff]  }
  0x2f   :  { %467 = vmatpush1.bf16.msra.mxu1 %v2982_v46  ;;  %v3050_v46 = vld [vmem:[%s4348_s1 + $0x160] ss:$8 sps:$4 sm:$0xff]  }
  0x30   :  { %1571 = vmatpush1.bf16.msra.mxu0 %v2983_v47  ;;  %468 = vmatprep.subr.bf16.mxu1 %v2984_v50  ;;  %v3053_v47 = vld [vmem:[%s4348_s1 + $0x560] ss:$8 sps:$4 sm:$0xff]   ;;  %v3683_v50 = vld [vmem:[%s4349_s0 + $0x18] sm:$0xff] }
  0x31   :  { %1572 = vmatprep.subr.bf16.mxu0 %v2986_v51  ;;  %v3058_v51 = vld [vmem:[%s4348_s1 + $0x174] ss:$8 sps:$4 sm:$0xff]   ;;  %v2394_v53 = vcombine.high %v3678_v48, %v3683_v50 }
  0x33   :  { %469 = vmatpush1.bf16.msra.mxu1 %v2988_v58  ;;  %v3056_v58 = vld [vmem:[%s4348_s1 + $0x170] ss:$8 sps:$4 sm:$0xff]  }
  0x34   :  { %1573 = vmatpush1.bf16.msra.mxu0 %v2989_v59  ;;  %470 = vmatprep.subr.bf16.mxu1 %v2990_v60  ;;  %v2666_v59 = vcombine.high %v3696_v55, %v3701_v56  ;;  %v2670_v60 = vcombine.high %v3706_v57, %v3706_v57 }
  0x35   :  { %1574 = vmatprep.subr.bf16.mxu0 %v2992_v63  ;;  %v3067_v63 = vld [vmem:[%s4348_s1 + $0x584] ss:$8 sps:$4 sm:$0xff]  }
  0x36   :  { %v1217_v0 = vrot.slane %v2666_v59, 2 }
  0x37   :  { %471 = vmatpush1.bf16.msra.mxu1 %v2994_v1  ;;  %v3724_v1 = vrot.slane %v2670_v60, 2  ;;  %v3876_v60 = vld [vmem:[%s4349_s0 + $0x40] sm:$0x33] }
  0x38   :  { %1575 = vmatpush1.bf16.msra.mxu0 %v2995_v2  ;;  %472 = vmatprep.subr.bf16.mxu1 %v2996_v3  ;;  %v3062_v2 = vld [vmem:[%s4348_s1 + $0x180] ss:$8 sps:$4 sm:$0xff]  }
  0x39   :  { %1576 = vmatprep.subr.bf16.mxu0 %v2998_v4  ;;  %v3065_v3 = vld [vmem:[%s4348_s1 + $0x580] ss:$8 sps:$4 sm:$0xff]   ;;  %v1219_v4 = vsel %vm1207_vm0, %v1217_v0, %v3724_v1  ;;  %v3143_v0 = vld [vmem:[%s4348_s1 + $0x634] ss:$8 sps:$4 sm:$0xff]  }
  0x3b   :  { %473 = vmatpush1.bf16.msra.mxu1 %v3000_v5  ;;  %v3070_v5 = vld [vmem:[%s4348_s1 + $0x194] ss:$8 sps:$4 sm:$0xff]  }
  0x3c   :  { %1577 = vmatpush1.bf16.msra.mxu0 %v3001_v6  ;;  %474 = vmatprep.subr.bf16.mxu1 %v3002_v7  ;;  %v3073_v6 = vld [vmem:[%s4348_s1 + $0x594] ss:$8 sps:$4 sm:$0xff]   ;;  %v3068_v7 = vld [vmem:[%s4348_s1 + $0x190] ss:$8 sps:$4 sm:$0xff]  }
  0x3d   :  { %1578 = vmatprep.subr.bf16.mxu0 %v3004_v10  ;;  %v3079_v10 = vld [vmem:[%s4348_s1 + $0x5a4] ss:$8 sps:$4 sm:$0xff]  }
  0x3f   :  { %475 = vmatpush1.bf16.msra.mxu1 %v3006_v11  ;;  %v3074_v11 = vld [vmem:[%s4348_s1 + $0x1a0] ss:$8 sps:$4 sm:$0xff]  }
  0x40   :  { %1579 = vmatpush1.bf16.msra.mxu0 %v3007_v12  ;;  %495 = vmatprep.subr.bf16.mxu1 %v3012_v13  ;;  %v3077_v12 = vld [vmem:[%s4348_s1 + $0x5a0] ss:$8 sps:$4 sm:$0xff]   ;;  %v3082_v13 = vld [vmem:[%s4348_s1 + $0x1b4] ss:$8 sps:$4 sm:$0xff]  }
  0x41   :  { %1599 = vmatprep.subr.bf16.mxu0 %v3017_v16  ;;  %v3083_v16 = vld [vmem:[%s4348_s1 + $0x5b0] ss:$8 sps:$4 sm:$0xff]  }
  0x42   :  { %477 = vmatmul.mubr.bf16.vlgmr.msra.gmra.mrb[0].mxu1 %v2391_v17  ;;  %v3088_v17 = vld [vmem:[%s4348_s1 + $0x1c4] ss:$8 sps:$4 sm:$0xff]  }
  0x43   :  { %1581 = vmatmul.mubr.bf16.vlgmr.msra.gmra.mrb[0].mxu0 %v1210_v20  ;;  %496 = vmatpush1.bf16.msra.mxu1 %v3010_v18  ;;  %v3091_v18 = vld [vmem:[%s4348_s1 + $0x5c4] ss:$8 sps:$4 sm:$0xff]   ;;  %v3089_v20 = vld [vmem:[%s4348_s1 + $0x5c0] ss:$8 sps:$4 sm:$0xff]  }
  0x44   :  { %1600 = vmatpush1.bf16.msra.mxu0 %v3015_v19  ;;  %497 = vmatprep.subr.bf16.mxu1 %v3022_v21  ;;  %v3086_v19 = vld [vmem:[%s4348_s1 + $0x1c0] ss:$8 sps:$4 sm:$0xff]   ;;  %v3094_v21 = vld [vmem:[%s4348_s1 + $0x1d4] ss:$8 sps:$4 sm:$0xff]  }
  0x45   :  { %1601 = vmatprep.subr.bf16.mxu0 %v3025_v22  ;;  %1590 = vmatprep.mubr.bf16.mxu0 %v1212_v62  ;;  %v3064_v62 = vld [vmem:[%s4348_s1 + $0x184] ss:$8 sps:$4 sm:$0xff]   ;;  %v3097_v22 = vld [vmem:[%s4348_s1 + $0x5d4] ss:$8 sps:$4 sm:$0xff]  }
  0x46   :  { %486 = vmatprep.mubr.bf16.mxu1 %v2396_v42  ;;  %v25_v42 = vld [vmem:[%s4349_s0 + $0x28] sm:$0x11] }
  0x47   :  { %498 = vmatpush1.bf16.msra.mxu1 %v3020_v23  ;;  %v3092_v23 = vld [vmem:[%s4348_s1 + $0x1d0] ss:$8 sps:$4 sm:$0xff]  }
  0x48   :  { %1602 = vmatpush1.bf16.msra.mxu0 %v3023_v24  ;;  %499 = vmatprep.subr.bf16.mxu1 %v3028_v25  ;;  %v3095_v24 = vld [vmem:[%s4348_s1 + $0x5d0] ss:$8 sps:$4 sm:$0xff]   ;;  %v3102_v25 = vld [vmem:[%s4348_s1 + $0x1e4] ss:$8 sps:$4 sm:$0xff]  }
  0x49   :  { %1603 = vmatprep.subr.bf16.mxu0 %v3031_v26  ;;  %v3105_v26 = vld [vmem:[%s4348_s1 + $0x5e4] ss:$8 sps:$4 sm:$0xff]  }
  0x4a   :  { %487 = vmatmul.mubr.bf16.gmra.mrb[4].mxu1 %v2395_v43 }
  0x4b   :  { %1591 = vmatmul.mubr.bf16.gmra.mrb[4].mxu0 %v1209_v15  ;;  %500 = vmatpush1.bf16.msra.mxu1 %v3026_v27  ;;  %v3080_v15 = vld [vmem:[%s4348_s1 + $0x1b0] ss:$8 sps:$4 sm:$0xff]   ;;  %v3100_v27 = vld [vmem:[%s4348_s1 + $0x1e0] ss:$8 sps:$4 sm:$0xff]  }
  0x4c   :  { %1604 = vmatpush1.bf16.msra.mxu0 %v3029_v28  ;;  %501 = vmatprep.subr.bf16.mxu1 %v3034_v29  ;;  %v3103_v28 = vld [vmem:[%s4348_s1 + $0x5e0] ss:$8 sps:$4 sm:$0xff]   ;;  %v3108_v29 = vld [vmem:[%s4348_s1 + $0x1f4] ss:$8 sps:$4 sm:$0xff]  }
  0x4d   :  { %1605 = vmatprep.subr.bf16.mxu0 %v3037_v30  ;;  %527 = vmatprep.mubr.bf16.mxu1 %v2394_v53  ;;  %v2665_v30 = vcombine.low %v3696_v55, %v3701_v56  ;;  %v3137_v53 = vld [vmem:[%s4348_s1 + $0x624] ss:$8 sps:$4 sm:$0xff]  }
  0x4e   :  { %1631 = vmatprep.mubr.bf16.mxu0 %v1219_v4  ;;  %v3863_v55 = vld [vmem:[%s4349_s0] sm:$0x88]  ;;  %v3141_v4 = vld [vmem:[%s4348_s1 + $0x630] ss:$8 sps:$4 sm:$0xff]  }
  0x4f   :  { %502 = vmatpush1.bf16.msra.mxu1 %v3032_v31  ;;  %v2669_v31 = vcombine.low %v3706_v57, %v3706_v57  ;;  %v2528_v57 = vcombine.high %v3863_v55, %v3519_v49 }
  0x50   :  { %1606 = vmatpush1.bf16.msra.mxu0 %v3035_v32  ;;  %503 = vmatprep.subr.bf16.mxu1 %v3040_v33  ;;  %v3111_v32 = vld [vmem:[%s4348_s1 + $0x5f4] ss:$8 sps:$4 sm:$0xff]   ;;  %v3106_v33 = vld [vmem:[%s4348_s1 + $0x1f0] ss:$8 sps:$4 sm:$0xff]  }
  0x51   :  { %1607 = vmatprep.subr.bf16.mxu0 %v3043_v34  ;;  %v3109_v34 = vld [vmem:[%s4348_s1 + $0x5f0] ss:$8 sps:$4 sm:$0xff]   ;;  %v653_v49 = vrot.slane %v2528_v57, 3 }
  0x52   :  { %v3201_v57 = vld [vmem:[%s4348_s1 + $0x6d0] ss:$8 sps:$4 sm:$0xff]  }
  0x53   :  { %504 = vmatpush1.bf16.msra.mxu1 %v3038_v35  ;;  %v3116_v35 = vld [vmem:[%s4348_s1 + $0x204] ss:$8 sps:$4 sm:$0xff]  }
  0x54   :  { %1608 = vmatpush1.bf16.msra.mxu0 %v3041_v36  ;;  %505 = vmatprep.subr.bf16.mxu1 %v3046_v37  ;;  %v1214_v36 = vrot.slane %v2665_v30, 2  ;;  %v1215_v37 = vrot.slane %v2669_v31, 2  ;;  %v3174_v30 = vld [vmem:[%s4348_s1 + $0x290] ss:$8 sps:$4 sm:$0xff]  }
  0x55   :  { %1609 = vmatprep.subr.bf16.mxu0 %v3049_v38  ;;  %v3123_v38 = vld [vmem:[%s4348_s1 + $0x604] ss:$8 sps:$4 sm:$0xff]   ;;  %v3177_v31 = vld [vmem:[%s4348_s1 + $0x690] ss:$8 sps:$4 sm:$0xff]  }
  0x56   :  { %v1216_v43 = vsel %vm1207_vm0, %v1214_v36, %v1215_v37  ;;  %v3188_v36 = vld [vmem:[%s4348_s1 + $0x2b4] ss:$8 sps:$4 sm:$0xff]  }
  0x57   :  { %506 = vmatpush1.bf16.msra.mxu1 %v3044_v40  ;;  %v2393_v40 = vcombine.low %v3678_v48, %v3683_v50  ;;  %v3127_v48 = vld [vmem:[%s4348_s1 + $0x610] ss:$8 sps:$4 sm:$0xff]  }
  0x58   :  { %1610 = vmatpush1.bf16.msra.mxu0 %v3047_v41  ;;  %507 = vmatprep.subr.bf16.mxu1 %v3052_v44  ;;  %v3121_v41 = vld [vmem:[%s4348_s1 + $0x600] ss:$8 sps:$4 sm:$0xff]   ;;  %v3126_v44 = vld [vmem:[%s4348_s1 + $0x214] ss:$8 sps:$4 sm:$0xff]  }
  0x59   :  { %1611 = vmatprep.subr.bf16.mxu0 %v3055_v45  ;;  %v3129_v45 = vld [vmem:[%s4348_s1 + $0x614] ss:$8 sps:$4 sm:$0xff]  }
  0x5b   :  { %508 = vmatpush1.bf16.msra.mxu1 %v3050_v46  ;;  %v2398_v46 = vcombine.high %v25_v42, %v25_v42 }
  0x5c   :  { %1612 = vmatpush1.bf16.msra.mxu0 %v3053_v47  ;;  %509 = vmatprep.subr.bf16.mxu1 %v3058_v51  ;;  %v3124_v47 = vld [vmem:[%s4348_s1 + $0x210] ss:$8 sps:$4 sm:$0xff]   ;;  %v2532_v51 = vcombine.high %v3535_v54, %v3535_v54  ;;  %v3132_v54 = vld [vmem:[%s4348_s1 + $0x220] ss:$8 sps:$4 sm:$0xff]  }
  0x5d   :  { %1613 = vmatprep.subr.bf16.mxu0 %v3061_v52  ;;  %v3134_v52 = vld [vmem:[%s4348_s1 + $0x224] ss:$8 sps:$4 sm:$0xff]  }
  0x5e   :  { %v3871_v59 = vrot.slane %v2532_v51, 3 }
  0x5f   :  { %510 = vmatpush1.bf16.msra.mxu1 %v3056_v58  ;;  %v2397_v58 = vcombine.low %v25_v42, %v25_v42  ;;  %v3192_v42 = vld [vmem:[%s4348_s1 + $0x2c0] ss:$8 sps:$4 sm:$0xff]  }
  0x60   :  { %1614 = vmatpush1.bf16.msra.mxu0 %v3059_v61  ;;  %511 = vmatprep.subr.bf16.mxu1 %v3064_v62  ;;  %v3135_v61 = vld [vmem:[%s4348_s1 + $0x620] ss:$8 sps:$4 sm:$0xff]   ;;  %v3140_v62 = vld [vmem:[%s4348_s1 + $0x234] ss:$8 sps:$4 sm:$0xff]  }
  0x61   :  { %1615 = vmatprep.subr.bf16.mxu0 %v3067_v63  ;;  %v2804_v63 = vcombine.high %v3876_v60, %v3876_v60 }
  0x63   :  { %512 = vmatpush1.bf16.msra.mxu1 %v3062_v2  ;;  %v3892_v2 = vrot.slane %v2804_v63, 1 }
  0x64   :  { %1616 = vmatpush1.bf16.msra.mxu0 %v3065_v3  ;;  %513 = vmatprep.subr.bf16.mxu1 %v3070_v5  ;;  %v3138_v3 = vld [vmem:[%s4348_s1 + $0x230] ss:$8 sps:$4 sm:$0xff]   ;;  %v655_v5 = vsel %vm649_vm1, %v653_v49, %v3871_v59  ;;  %v3204_v49 = vld [vmem:[%s4348_s1 + $0x2e0] ss:$8 sps:$4 sm:$0xff]  }
  0x65   :  { %1617 = vmatprep.subr.bf16.mxu0 %v3073_v6 }
  0x67   :  { %514 = vmatpush1.bf16.msra.mxu1 %v3068_v7  ;;  %v3146_v7 = vld [vmem:[%s4348_s1 + $0x244] ss:$8 sps:$4 sm:$0xff]  }
  0x68   :  { %1618 = vmatpush1.bf16.msra.mxu0 %v3071_v8  ;;  %515 = vmatprep.subr.bf16.mxu1 %v3076_v9  ;;  %v3149_v8 = vld [vmem:[%s4348_s1 + $0x644] ss:$8 sps:$4 sm:$0xff]  }
  0x69   :  { %1619 = vmatprep.subr.bf16.mxu0 %v3079_v10  ;;  %v3144_v10 = vld [vmem:[%s4348_s1 + $0x240] ss:$8 sps:$4 sm:$0xff]  }
  0x6b   :  { %516 = vmatpush1.bf16.msra.mxu1 %v3074_v11  ;;  %v3147_v11 = vld [vmem:[%s4348_s1 + $0x640] ss:$8 sps:$4 sm:$0xff]  }
  0x6c   :  { %1620 = vmatpush1.bf16.msra.mxu0 %v3077_v12  ;;  %517 = vmatprep.subr.bf16.mxu1 %v3082_v13  ;;  %v3152_v12 = vld [vmem:[%s4348_s1 + $0x254] ss:$8 sps:$4 sm:$0xff]  }
  0x6d   :  { %1621 = vmatprep.subr.bf16.mxu0 %v3085_v14  ;;  %v3155_v13 = vld [vmem:[%s4348_s1 + $0x654] ss:$8 sps:$4 sm:$0xff]   ;;  %v3150_v14 = vld [vmem:[%s4348_s1 + $0x250] ss:$8 sps:$4 sm:$0xff]  }
  0x6f   :  { %518 = vmatpush1.bf16.msra.mxu1 %v3080_v15  ;;  %v3153_v15 = vld [vmem:[%s4348_s1 + $0x650] ss:$8 sps:$4 sm:$0xff]  }
  0x70   :  { %1622 = vmatpush1.bf16.msra.mxu0 %v3083_v16  ;;  %519 = vmatprep.subr.bf16.mxu1 %v3088_v17  ;;  %v3158_v16 = vld [vmem:[%s4348_s1 + $0x264] ss:$8 sps:$4 sm:$0xff]  }
  0x71   :  { %1623 = vmatprep.subr.bf16.mxu0 %v3091_v18  ;;  %v3161_v17 = vld [vmem:[%s4348_s1 + $0x664] ss:$8 sps:$4 sm:$0xff]   ;;  %v3156_v18 = vld [vmem:[%s4348_s1 + $0x260] ss:$8 sps:$4 sm:$0xff]  }
  0x73   :  { %520 = vmatpush1.bf16.msra.mxu1 %v3086_v19  ;;  %v3159_v19 = vld [vmem:[%s4348_s1 + $0x660] ss:$8 sps:$4 sm:$0xff]  }
  0x74   :  { %1624 = vmatpush1.bf16.msra.mxu0 %v3089_v20  ;;  %521 = vmatprep.subr.bf16.mxu1 %v3094_v21  ;;  %v3164_v20 = vld [vmem:[%s4348_s1 + $0x274] ss:$8 sps:$4 sm:$0xff]  }
  0x75   :  { %1625 = vmatprep.subr.bf16.mxu0 %v3097_v22  ;;  %v3167_v21 = vld [vmem:[%s4348_s1 + $0x674] ss:$8 sps:$4 sm:$0xff]   ;;  %v3162_v22 = vld [vmem:[%s4348_s1 + $0x270] ss:$8 sps:$4 sm:$0xff]  }
  0x77   :  { %522 = vmatpush1.bf16.msra.mxu1 %v3092_v23  ;;  %v3165_v23 = vld [vmem:[%s4348_s1 + $0x670] ss:$8 sps:$4 sm:$0xff]  }
  0x78   :  { %1626 = vmatpush1.bf16.msra.mxu0 %v3095_v24  ;;  %523 = vmatprep.subr.bf16.mxu1 %v3102_v25  ;;  %v3170_v24 = vld [vmem:[%s4348_s1 + $0x284] ss:$8 sps:$4 sm:$0xff]  }
  0x79   :  { %1627 = vmatprep.subr.bf16.mxu0 %v3105_v26  ;;  %v3173_v25 = vld [vmem:[%s4348_s1 + $0x684] ss:$8 sps:$4 sm:$0xff]   ;;  %v3168_v26 = vld [vmem:[%s4348_s1 + $0x280] ss:$8 sps:$4 sm:$0xff]  }
  0x7b   :  { %524 = vmatpush1.bf16.msra.mxu1 %v3100_v27  ;;  %v3171_v27 = vld [vmem:[%s4348_s1 + $0x680] ss:$8 sps:$4 sm:$0xff]  }
  0x7c   :  { %1628 = vmatpush1.bf16.msra.mxu0 %v3103_v28  ;;  %525 = vmatprep.subr.bf16.mxu1 %v3108_v29  ;;  %v3176_v28 = vld [vmem:[%s4348_s1 + $0x294] ss:$8 sps:$4 sm:$0xff]  }
  0x7d   :  { %1629 = vmatprep.subr.bf16.mxu0 %v3111_v32  ;;  %v3179_v29 = vld [vmem:[%s4348_s1 + $0x694] ss:$8 sps:$4 sm:$0xff]   ;;  %v3182_v32 = vld [vmem:[%s4348_s1 + $0x2a4] ss:$8 sps:$4 sm:$0xff]  }
  0x7f   :  { %526 = vmatpush1.bf16.msra.mxu1 %v3106_v33  ;;  %v3185_v33 = vld [vmem:[%s4348_s1 + $0x6a4] ss:$8 sps:$4 sm:$0xff]  }
  0x80   :  { %1630 = vmatpush1.bf16.msra.mxu0 %v3109_v34  ;;  %990 = vmatprep.subr.bf16.mxu1 %v3116_v35  ;;  %v3180_v34 = vld [vmem:[%s4348_s1 + $0x2a0] ss:$8 sps:$4 sm:$0xff]  }
  0x81   :  { %2106 = vmatprep.subr.bf16.mxu0 %v3123_v38  ;;  %v3183_v35 = vld [vmem:[%s4348_s1 + $0x6a0] ss:$8 sps:$4 sm:$0xff]   ;;  %v3186_v38 = vld [vmem:[%s4348_s1 + $0x2b0] ss:$8 sps:$4 sm:$0xff]  }
  0x82   :  { %528 = vmatmul.mubr.bf16.vlgmr.msra.gmra.mrb[0].mxu1 %v2393_v40  ;;  %v3194_v40 = vld [vmem:[%s4348_s1 + $0x2c4] ss:$8 sps:$4 sm:$0xff]  }
  0x83   :  { %1632 = vmatmul.mubr.bf16.vlgmr.msra.gmra.mrb[0].mxu0 %v1216_v43  ;;  %991 = vmatpush1.bf16.msra.mxu1 %v3114_v39  ;;  %v3189_v39 = vld [vmem:[%s4348_s1 + $0x6b0] ss:$8 sps:$4 sm:$0xff]   ;;  %v3195_v43 = vld [vmem:[%s4348_s1 + $0x6c0] ss:$8 sps:$4 sm:$0xff]  }
  0x84   :  { %2107 = vmatpush1.bf16.msra.mxu0 %v3121_v41  ;;  %992 = vmatprep.subr.bf16.mxu1 %v3126_v44  ;;  %v3197_v41 = vld [vmem:[%s4348_s1 + $0x6c4] ss:$8 sps:$4 sm:$0xff]   ;;  %v2533_v44 = vcombine.low %v3701_v56, %v3701_v56 }
  0x85   :  { %2108 = vmatprep.subr.bf16.mxu0 %v3129_v45  ;;  %537 = vmatprep.mubr.bf16.mxu1 %v2398_v46  ;;  %v2534_v45 = vcombine.high %v3701_v56, %v3701_v56  ;;  %v3200_v46 = vld [vmem:[%s4348_s1 + $0x2d4] ss:$8 sps:$4 sm:$0xff]  }
  0x86   :  { %1641 = vmatprep.mubr.bf16.mxu0 %v3724_v1  ;;  %v3225_v1 = vld [vmem:[%s4349_s0 + $0x24] ss:$16 sps:$4 sm:$0xfe]  }
  0x87   :  { %993 = vmatpush1.bf16.msra.mxu1 %v3124_v47  ;;  %v1769_v6 = vrot.slane %v3225_v1, 1  ;;  %v3203_v47 = vld [vmem:[%s4348_s1 + $0x6d4] ss:$8 sps:$4 sm:$0xff]   ;;  %v3207_v1 = vld [vmem:[%s4348_s1 + $0x6e0] ss:$8 sps:$4 sm:$0xff]  }
  0x88   :  { %2109 = vmatpush1.bf16.msra.mxu0 %v3127_v48  ;;  %994 = vmatprep.subr.bf16.mxu1 %v3134_v52  ;;  %v553_v48 = vld [vmem:[%s4349_s0 + $0x8] sm:$0x88]  ;;  %v4027_v52 = vrot.slane %v2533_v44, 3  ;;  %v3258_v44 = vld [vmem:[%s4348_s1 + $0x750] ss:$8 sps:$4 sm:$0xff]  }
  0x89   :  { %2110 = vmatprep.subr.bf16.mxu0 %v3137_v53  ;;  %v1771_v9 = vsel %vm1765_vm2, %v1769_v6, %v3892_v2  ;;  %v2529_v51 = vcombine.low %v553_v48, %v3683_v50  ;;  %v2530_v56 = vcombine.high %v553_v48, %v3683_v50  ;;  %v4029_v53 = vrot.slane %v2534_v45, 3  ;;  %v3206_v50 = vld [vmem:[%s4348_s1 + $0x2e4] ss:$8 sps:$4 sm:$0xff]   ;;  %v3264_v48 = vld [vmem:[%s4348_s1 + $0x760] ss:$8 sps:$4 sm:$0xff]  }
  0x8a   :  { %538 = vmatmul.mubr.bf16.gmra.mrb[4].mxu1 %v2397_v58  ;;  %v3209_v58 = vld [vmem:[%s4348_s1 + $0x6e4] ss:$8 sps:$4 sm:$0xff]  }
  0x8b   :  { %1642 = vmatmul.mubr.bf16.gmra.mrb[8].mxu0 %v1215_v37  ;;  %995 = vmatpush1.bf16.msra.mxu1 %v3132_v54  ;;  %v3191_v37 = vld [vmem:[%s4348_s1 + $0x6b4] ss:$8 sps:$4 sm:$0xff]   ;;  %v3198_v54 = vld [vmem:[%s4348_s1 + $0x2d0] ss:$8 sps:$4 sm:$0xff]   ;;  %v3263_v45 = vld [vmem:[%s4348_s1 + $0x364] ss:$8 sps:$4 sm:$0xff]  }
  0x8c   :  { %2111 = vmatpush1.bf16.msra.mxu0 %v3135_v61  ;;  %996 = vmatprep.subr.bf16.mxu1 %v3140_v62  ;;  %v656_v61 = vrot.slane %v2529_v51, 3  ;;  %v659_v62 = vrot.slane %v2530_v56, 3  ;;  %v3269_v51 = vld [vmem:[%s4348_s1 + $0x374] ss:$8 sps:$4 sm:$0xff]  }
  0x8d   :  { %2112 = vmatprep.subr.bf16.mxu0 %v3143_v0  ;;  %1022 = vmatprep.mubr.bf16.mxu1 %v655_v5  ;;  %v3335_v5 = vld [vmem:[%s4349_s0 + $0x20] sm:$0xff]  ;;  %v3272_v56 = vld [vmem:[%s4348_s1 + $0x774] ss:$8 sps:$4 sm:$0xff]  }
  0x8e   :  { %2138 = vmatprep.mubr.bf16.mxu0 %v1771_v9  ;;  %v4048_v63 = vsel %vm649_vm1, %v659_v62, %v4029_v53  ;;  %v4052_v0 = vsel %vm649_vm1, %v656_v61, %v4027_v52  ;;  %v2531_v6 = vcombine.low %v3335_v5, %v3335_v5  ;;  %v3212_v9 = vld [vmem:[%s4348_s1 + $0x2f4] ss:$8 sps:$4 sm:$0xff]   ;;  %v3273_v61 = vld [vmem:[%s4348_s1 + $0x380] ss:$8 sps:$4 sm:$0xff]   ;;  %v3290_v5 = vld [vmem:[%s4348_s1 + $0x7a4] ss:$8 sps:$4 sm:$0xff]  }
  0x8f   :  { %997 = vmatpush1.bf16.msra.mxu1 %v3138_v3  ;;  %v3334_v3 = vld [vmem:[%s4349_s0 + $0x10] sm:$0xff]  ;;  %v3276_v62 = vld [vmem:[%s4348_s1 + $0x780] ss:$8 sps:$4 sm:$0xff]  }
  0x90   :  { %2113 = vmatpush1.bf16.msra.mxu0 %v3141_v4  ;;  %998 = vmatprep.subr.bf16.mxu1 %v3146_v7  ;;  %v2527_v4 = vcombine.low %v3863_v55, %v3334_v3  ;;  %v3223_v7 = vld [vmem:[%s4349_s0 + $0x20] ss:$16 sps:$4 sm:$0xfe]   ;;  %v3215_v55 = vld [vmem:[%s4348_s1 + $0x6f4] ss:$8 sps:$4 sm:$0xff]  }
  0x91   :  { %2114 = vmatprep.subr.bf16.mxu0 %v3149_v8  ;;  %v2803_v8 = vcombine.low %v3876_v60, %v3876_v60  ;;  %v3213_v60 = vld [vmem:[%s4348_s1 + $0x6f0] ss:$8 sps:$4 sm:$0xff]  }
  0x92   :  { %v3282_v3 = vld [vmem:[%s4348_s1 + $0x790] ss:$8 sps:$4 sm:$0xff]  }
  0x93   :  { %999 = vmatpush1.bf16.msra.mxu1 %v3144_v10  ;;  %v3210_v10 = vld [vmem:[%s4348_s1 + $0x2f0] ss:$8 sps:$4 sm:$0xff]  }
  0x94   :  { %2115 = vmatpush1.bf16.msra.mxu0 %v3147_v11  ;;  %1000 = vmatprep.subr.bf16.mxu1 %v3152_v12  ;;  %v650_v11 = vrot.slane %v2527_v4, 3  ;;  %v651_v12 = vrot.slane %v2531_v6, 3  ;;  %v3287_v4 = vld [vmem:[%s4348_s1 + $0x3a4] ss:$8 sps:$4 sm:$0xff]   ;;  %v3285_v6 = vld [vmem:[%s4348_s1 + $0x3a0] ss:$8 sps:$4 sm:$0xff]  }
  0x95   :  { %2116 = vmatprep.subr.bf16.mxu0 %v3155_v13  ;;  %v1766_v13 = vrot.slane %v3223_v7, 1  ;;  %v3288_v7 = vld [vmem:[%s4348_s1 + $0x7a0] ss:$8 sps:$4 sm:$0xff]  }
  0x97   :  { %1001 = vmatpush1.bf16.msra.mxu1 %v3150_v14  ;;  %v1767_v14 = vrot.slane %v2803_v8, 1  ;;  %v3293_v8 = vld [vmem:[%s4348_s1 + $0x3b4] ss:$8 sps:$4 sm:$0xff]  }
  0x98   :  { %2117 = vmatpush1.bf16.msra.mxu0 %v3153_v15  ;;  %1002 = vmatprep.subr.bf16.mxu1 %v3158_v16  ;;  %v3222_v15 = vld [vmem:[%s4348_s1 + $0x304] ss:$8 sps:$4 sm:$0xff]  }
  0x99   :  { %2118 = vmatprep.subr.bf16.mxu0 %v3161_v17  ;;  %v3230_v16 = vld [vmem:[%s4348_s1 + $0x704] ss:$8 sps:$4 sm:$0xff]   ;;  %v3220_v17 = vld [vmem:[%s4348_s1 + $0x300] ss:$8 sps:$4 sm:$0xff]  }
  0x9b   :  { %1003 = vmatpush1.bf16.msra.mxu1 %v3156_v18  ;;  %v3228_v18 = vld [vmem:[%s4348_s1 + $0x700] ss:$8 sps:$4 sm:$0xff]  }
  0x9c   :  { %2119 = vmatpush1.bf16.msra.mxu0 %v3159_v19  ;;  %1004 = vmatprep.subr.bf16.mxu1 %v3164_v20  ;;  %v652_v19 = vsel %vm649_vm1, %v650_v11, %v651_v12  ;;  %v1768_v20 = vsel %vm1765_vm2, %v1766_v13, %v1767_v14  ;;  %v3302_v11 = vld [vmem:[%s4348_s1 + $0x7c4] ss:$8 sps:$4 sm:$0xff]   ;;  %v3300_v13 = vld [vmem:[%s4348_s1 + $0x7c0] ss:$8 sps:$4 sm:$0xff]  }
  0x9d   :  { %2120 = vmatprep.subr.bf16.mxu0 %v3167_v21  ;;  %v4098_v21 = vld [vmem:[%s4349_s0 + $0x48] sm:$0x33] }
  0x9f   :  { %1005 = vmatpush1.bf16.msra.mxu1 %v3162_v22  ;;  %v3233_v22 = vld [vmem:[%s4348_s1 + $0x314] ss:$8 sps:$4 sm:$0xff]  }
  0xa0   :  { %2121 = vmatpush1.bf16.msra.mxu0 %v3165_v23  ;;  %1006 = vmatprep.subr.bf16.mxu1 %v3170_v24  ;;  %v3236_v23 = vld [vmem:[%s4348_s1 + $0x714] ss:$8 sps:$4 sm:$0xff]  }
  0xa1   :  { %2122 = vmatprep.subr.bf16.mxu0 %v3173_v25  ;;  %v3327_v24 = vld [vmem:[%s4349_s0 + $0x2c] ss:$16 sps:$4 sm:$0xfe]   ;;  %v2806_v25 = vcombine.high %v4098_v21, %v4098_v21 }
  0xa3   :  { %1007 = vmatpush1.bf16.msra.mxu1 %v3168_v26  ;;  %v3231_v26 = vld [vmem:[%s4348_s1 + $0x310] ss:$8 sps:$4 sm:$0xff]  }
  0xa4   :  { %2123 = vmatpush1.bf16.msra.mxu0 %v3171_v27  ;;  %1008 = vmatprep.subr.bf16.mxu1 %v3176_v28  ;;  %v3234_v27 = vld [vmem:[%s4348_s1 + $0x710] ss:$8 sps:$4 sm:$0xff]   ;;  %v3239_v28 = vld [vmem:[%s4348_s1 + $0x324] ss:$8 sps:$4 sm:$0xff]  }
  0xa5   :  { %2124 = vmatprep.subr.bf16.mxu0 %v3179_v29  ;;  %v3242_v29 = vld [vmem:[%s4348_s1 + $0x724] ss:$8 sps:$4 sm:$0xff]  }
  0xa7   :  { %1009 = vmatpush1.bf16.msra.mxu1 %v3174_v30  ;;  %v1775_v30 = vrot.slane %v3327_v24, 1  ;;  %v2805_v24 = vcombine.low %v4098_v21, %v4098_v21  ;;  %v3318_v21 = vld [vmem:[%s4348_s1 + $0x7f0] ss:$8 sps:$4 sm:$0xff]  }
  0xa8   :  { %2125 = vmatpush1.bf16.msra.mxu0 %v3177_v31  ;;  %1010 = vmatprep.subr.bf16.mxu1 %v3182_v32  ;;  %v4125_v31 = vrot.slane %v2806_v25, 1  ;;  %v3237_v32 = vld [vmem:[%s4348_s1 + $0x320] ss:$8 sps:$4 sm:$0xff]   ;;  %v3317_v25 = vld [vmem:[%s4348_s1 + $0x3f4] ss:$8 sps:$4 sm:$0xff]  }
  0xa9   :  { %2126 = vmatprep.subr.bf16.mxu0 %v3185_v33  ;;  %v3240_v33 = vld [vmem:[%s4348_s1 + $0x720] ss:$8 sps:$4 sm:$0xff]  }
  0xab   :  { %1011 = vmatpush1.bf16.msra.mxu1 %v3180_v34  ;;  %v1777_v34 = vsel %vm1765_vm2, %v1775_v30, %v4125_v31 }
  0xac   :  { %2127 = vmatpush1.bf16.msra.mxu0 %v3183_v35  ;;  %1012 = vmatprep.subr.bf16.mxu1 %v3188_v36  ;;  %v3243_v35 = vld [vmem:[%s4348_s1 + $0x330] ss:$8 sps:$4 sm:$0xff]  }
  0xad   :  { %2128 = vmatprep.subr.bf16.mxu0 %v3191_v37  ;;  %v3246_v36 = vld [vmem:[%s4348_s1 + $0x730] ss:$8 sps:$4 sm:$0xff]   ;;  %v3251_v37 = vld [vmem:[%s4348_s1 + $0x344] ss:$8 sps:$4 sm:$0xff]  }
  0xaf   :  { %1013 = vmatpush1.bf16.msra.mxu1 %v3186_v38  ;;  %v3254_v38 = vld [vmem:[%s4348_s1 + $0x744] ss:$8 sps:$4 sm:$0xff]  }
  0xb0   :  { %2129 = vmatpush1.bf16.msra.mxu0 %v3189_v39  ;;  %1014 = vmatprep.subr.bf16.mxu1 %v3194_v40  ;;  %v3249_v39 = vld [vmem:[%s4348_s1 + $0x340] ss:$8 sps:$4 sm:$0xff]  }
  0xb1   :  { %2130 = vmatprep.subr.bf16.mxu0 %v3197_v41  ;;  %v3252_v40 = vld [vmem:[%s4348_s1 + $0x740] ss:$8 sps:$4 sm:$0xff]   ;;  %v3257_v41 = vld [vmem:[%s4348_s1 + $0x354] ss:$8 sps:$4 sm:$0xff]  }
  0xb3   :  { %1015 = vmatpush1.bf16.msra.mxu1 %v3192_v42  ;;  %v3260_v42 = vld [vmem:[%s4348_s1 + $0x754] ss:$8 sps:$4 sm:$0xff]  }
  0xb4   :  { %2131 = vmatpush1.bf16.msra.mxu0 %v3195_v43  ;;  %1016 = vmatprep.subr.bf16.mxu1 %v3200_v46  ;;  %v3255_v43 = vld [vmem:[%s4348_s1 + $0x350] ss:$8 sps:$4 sm:$0xff]   ;;  %v3266_v46 = vld [vmem:[%s4348_s1 + $0x764] ss:$8 sps:$4 sm:$0xff]  }
  0xb5   :  { %2132 = vmatprep.subr.bf16.mxu0 %v3203_v47  ;;  %v3261_v47 = vld [vmem:[%s4348_s1 + $0x360] ss:$8 sps:$4 sm:$0xff]  }
  0xb7   :  { %1017 = vmatpush1.bf16.msra.mxu1 %v3198_v54  ;;  %v3267_v54 = vld [vmem:[%s4348_s1 + $0x370] ss:$8 sps:$4 sm:$0xff]  }
  0xb8   :  { %2133 = vmatpush1.bf16.msra.mxu0 %v3201_v57  ;;  %1018 = vmatprep.subr.bf16.mxu1 %v3206_v50  ;;  %v3270_v57 = vld [vmem:[%s4348_s1 + $0x770] ss:$8 sps:$4 sm:$0xff]   ;;  %v3275_v50 = vld [vmem:[%s4348_s1 + $0x384] ss:$8 sps:$4 sm:$0xff]  }
  0xb9   :  { %2134 = vmatprep.subr.bf16.mxu0 %v3209_v58  ;;  %v3278_v58 = vld [vmem:[%s4348_s1 + $0x784] ss:$8 sps:$4 sm:$0xff]  }
  0xbb   :  { %1019 = vmatpush1.bf16.msra.mxu1 %v3204_v49  ;;  %v3281_v49 = vld [vmem:[%s4348_s1 + $0x394] ss:$8 sps:$4 sm:$0xff]  }
  0xbc   :  { %2135 = vmatpush1.bf16.msra.mxu0 %v3207_v1  ;;  %1020 = vmatprep.subr.bf16.mxu1 %v3212_v9  ;;  %v3279_v1 = vld [vmem:[%s4348_s1 + $0x390] ss:$8 sps:$4 sm:$0xff]   ;;  %v3296_v9 = vld [vmem:[%s4348_s1 + $0x7b4] ss:$8 sps:$4 sm:$0xff]  }
  0xbd   :  { %2136 = vmatprep.subr.bf16.mxu0 %v3215_v55  ;;  %v3291_v55 = vld [vmem:[%s4348_s1 + $0x3b0] ss:$8 sps:$4 sm:$0xff]  }
  0xbf   :  { %1021 = vmatpush1.bf16.msra.mxu1 %v3210_v10  ;;  %v3294_v10 = vld [vmem:[%s4348_s1 + $0x7b0] ss:$8 sps:$4 sm:$0xff]  }
  0xc0   :  { %2137 = vmatpush1.bf16.msra.mxu0 %v3213_v60  ;;  %1041 = vmatprep.subr.bf16.mxu1 %v3222_v15  ;;  %v3299_v60 = vld [vmem:[%s4348_s1 + $0x3c4] ss:$8 sps:$4 sm:$0xff]   ;;  %v3308_v15 = vld [vmem:[%s4348_s1 + $0x7d4] ss:$8 sps:$4 sm:$0xff]  }
  0xc1   :  { %2157 = vmatprep.subr.bf16.mxu0 %v3230_v16  ;;  %v3303_v16 = vld [vmem:[%s4348_s1 + $0x3d0] ss:$8 sps:$4 sm:$0xff]  }
  0xc2   :  { %1023 = vmatmul.mubr.bf16.vlgmr.msra.gmra.mrb[0].mxu1 %v652_v19  ;;  %v3314_v19 = vld [vmem:[%s4348_s1 + $0x7e4] ss:$8 sps:$4 sm:$0xff]  }
  0xc3   :  { %2139 = vmatmul.mubr.bf16.vlgmr.msra.gmra.mrb[0].mxu0 %v1768_v20  ;;  %1042 = vmatpush1.bf16.msra.mxu1 %v3220_v17  ;;  %v3306_v17 = vld [vmem:[%s4348_s1 + $0x7d0] ss:$8 sps:$4 sm:$0xff]   ;;  %v3309_v20 = vld [vmem:[%s4348_s1 + $0x3e0] ss:$8 sps:$4 sm:$0xff]  }
  0xc4   :  { %2158 = vmatpush1.bf16.msra.mxu0 %v3228_v18  ;;  %1043 = vmatprep.subr.bf16.mxu1 %v3233_v22  ;;  %v3311_v18 = vld [vmem:[%s4348_s1 + $0x3e4] ss:$8 sps:$4 sm:$0xff]   ;;  %v3312_v22 = vld [vmem:[%s4348_s1 + $0x7e0] ss:$8 sps:$4 sm:$0xff]  }
  0xc5   :  { %2159 = vmatprep.subr.bf16.mxu0 %v3236_v23  ;;  %1032 = vmatprep.mubr.bf16.mxu1 %v3871_v59  ;;  %v3245_v59 = vld [vmem:[%s4348_s1 + $0x334] ss:$8 sps:$4 sm:$0xff]   ;;  %v3325_v23 = vld [vmem:[%s4349_s0 + $0x28] ss:$16 sps:$4 sm:$0xfe]  }
  0xc6   :  { %2148 = vmatprep.mubr.bf16.mxu0 %v3892_v2  ;;  %v3248_v2 = vld [vmem:[%s4348_s1 + $0x734] ss:$8 sps:$4 sm:$0xff]  }
  0xc7   :  { %1044 = vmatpush1.bf16.msra.mxu1 %v3231_v26  ;;  %v3320_v26 = vld [vmem:[%s4348_s1 + $0x7f4] ss:$8 sps:$4 sm:$0xff]  }
  0xc8   :  { %2160 = vmatpush1.bf16.msra.mxu0 %v3234_v27  ;;  %1045 = vmatprep.subr.bf16.mxu1 %v3239_v28  ;;  %v3315_v27 = vld [vmem:[%s4348_s1 + $0x3f0] ss:$8 sps:$4 sm:$0xff]   ;;  %v1772_v28 = vrot.slane %v3325_v23, 1 }
  0xc9   :  { %2161 = vmatprep.subr.bf16.mxu0 %v3242_v29  ;;  %v1773_v29 = vrot.slane %v2805_v24, 1 }
  0xca   :  { %1033 = vmatmul.mubr.bf16.gmra.mrb[8].mxu1 %v651_v12  ;;  %v3297_v12 = vld [vmem:[%s4348_s1 + $0x3c0] ss:$8 sps:$4 sm:$0xff]  }
  0xcb   :  { %2149 = vmatmul.mubr.bf16.gmra.mrb[12].mxu0 %v1767_v14  ;;  %1046 = vmatpush1.bf16.msra.mxu1 %v3237_v32  ;;  %v3305_v14 = vld [vmem:[%s4348_s1 + $0x3d4] ss:$8 sps:$4 sm:$0xff]   ;;  %v1774_v30 = vsel %vm1765_vm2, %v1772_v28, %v1773_v29 }
  0xcc   :  { %2162 = vmatpush1.bf16.msra.mxu0 %v3240_v33  ;;  %1047 = vmatprep.subr.bf16.mxu1 %v3245_v59 }
  0xcd   :  { %2163 = vmatprep.subr.bf16.mxu0 %v3248_v2  ;;  %1073 = vmatprep.mubr.bf16.mxu1 %v4048_v63  ;;  %v3284_v63 = vld [vmem:[%s4348_s1 + $0x794] ss:$8 sps:$4 sm:$0xff]  }
  0xce   :  { %2189 = vmatprep.mubr.bf16.mxu0 %v1777_v34 }
  0xcf   :  { %1048 = vmatpush1.bf16.msra.mxu1 %v3243_v35 }
  0xd0   :  { %2164 = vmatpush1.bf16.msra.mxu0 %v3246_v36  ;;  %1049 = vmatprep.subr.bf16.mxu1 %v3251_v37 }
  0xd1   :  { %2165 = vmatprep.subr.bf16.mxu0 %v3254_v38 }
  0xd3   :  { %1050 = vmatpush1.bf16.msra.mxu1 %v3249_v39 }
  0xd4   :  { %2166 = vmatpush1.bf16.msra.mxu0 %v3252_v40  ;;  %1051 = vmatprep.subr.bf16.mxu1 %v3257_v41 }
  0xd5   :  { %2167 = vmatprep.subr.bf16.mxu0 %v3260_v42 }
  0xd7   :  { %1052 = vmatpush1.bf16.msra.mxu1 %v3255_v43 }
  0xd8   :  { %2168 = vmatpush1.bf16.msra.mxu0 %v3258_v44  ;;  %1053 = vmatprep.subr.bf16.mxu1 %v3263_v45 }
  0xd9   :  { %2169 = vmatprep.subr.bf16.mxu0 %v3266_v46 }
  0xdb   :  { %1054 = vmatpush1.bf16.msra.mxu1 %v3261_v47 }
  0xdc   :  { %2170 = vmatpush1.bf16.msra.mxu0 %v3264_v48  ;;  %1055 = vmatprep.subr.bf16.mxu1 %v3269_v51  ;;  %v2234_v48 = vlaneseq }
  0xdd   :  { %2171 = vmatprep.subr.bf16.mxu0 %v3272_v56 }
  0xde   :  { %v4302_v51 = vshrl.u32 %v2234_v48, 7 }
  0xdf   :  { %1056 = vmatpush1.bf16.msra.mxu1 %v3267_v54  ;;  %v2232_v54 = vld [vmem:[%s4350_s2] sm:$0x3] }
  0xe0   :  { %2172 = vmatpush1.bf16.msra.mxu0 %v3270_v57  ;;  %1057 = vmatprep.subr.bf16.mxu1 %v3275_v50  ;;  %v4305_v56 = vsub.s32 0, %v4302_v51  ;;  %v4311_v57 = vsub.s32 1, %v4302_v51 }
  0xe1   :  { %2173 = vmatprep.subr.bf16.mxu0 %v3278_v58 }
  0xe3   :  { %1058 = vmatpush1.bf16.msra.mxu1 %v3273_v61 }
  0xe4   :  { %2174 = vmatpush1.bf16.msra.mxu0 %v3276_v62  ;;  %1059 = vmatprep.subr.bf16.mxu1 %v3281_v49  ;;  %v2237_v62 = vrot.slane %v2232_v54, %v4305_v56 }
  0xe5   :  { %2175 = vmatprep.subr.bf16.mxu0 %v3284_v63 }
  0xe7   :  { %1060 = vmatpush1.bf16.msra.mxu1 %v3279_v1 }
  0xe8   :  { %2176 = vmatpush1.bf16.msra.mxu0 %v3282_v3  ;;  %1061 = vmatprep.subr.bf16.mxu1 %v3287_v4  ;;  %v2241_v3 = vrot.slane %v2232_v54, %v4311_v57 }
  0xe9   :  { %2177 = vmatprep.subr.bf16.mxu0 %v3290_v5 }
  0xeb   :  { %1062 = vmatpush1.bf16.msra.mxu1 %v3285_v6 }
  0xec   :  { %2178 = vmatpush1.bf16.msra.mxu0 %v3288_v7  ;;  %1063 = vmatprep.subr.bf16.mxu1 %v3293_v8 }
  0xed   :  { %2179 = vmatprep.subr.bf16.mxu0 %v3296_v9 }
  0xef   :  { %1064 = vmatpush1.bf16.msra.mxu1 %v3291_v55 }
  0xf0   :  { %2180 = vmatpush1.bf16.msra.mxu0 %v3294_v10  ;;  %1065 = vmatprep.subr.bf16.mxu1 %v3299_v60 }
  0xf1   :  { %2181 = vmatprep.subr.bf16.mxu0 %v3302_v11 }
  0xf3   :  { %1066 = vmatpush1.bf16.msra.mxu1 %v3297_v12 }
  0xf4   :  { %2182 = vmatpush1.bf16.msra.mxu0 %v3300_v13  ;;  %1067 = vmatprep.subr.bf16.mxu1 %v3305_v14 }
  0xf5   :  { %2183 = vmatprep.subr.bf16.mxu0 %v3308_v15 }
  0xf7   :  { %1068 = vmatpush1.bf16.msra.mxu1 %v3303_v16 }
  0xf8   :  { %2184 = vmatpush1.bf16.msra.mxu0 %v3306_v17  ;;  %1069 = vmatprep.subr.bf16.mxu1 %v3311_v18 }
  0xf9   :  { %2185 = vmatprep.subr.bf16.mxu0 %v3314_v19 }
  0xfb   :  { %1070 = vmatpush1.bf16.msra.mxu1 %v3309_v20 }
  0xfc   :  { %2186 = vmatpush1.bf16.msra.mxu0 %v3312_v22  ;;  %1071 = vmatprep.subr.bf16.mxu1 %v3317_v25 }
  0xfd   :  { %2187 = vmatprep.subr.bf16.mxu0 %v3320_v26 }
  0xff   :  { %1072 = vmatpush1.bf16.msra.mxu1 %v3315_v27 }
 0x100   :  { %2188 = vmatpush1.bf16.msra.mxu0 %v3318_v21 }
 0x102   :  { %1074 = vmatmul.mubr.bf16.vlgmr.msra.gmra.mrb[0].mxu1 %v4052_v0 }
 0x103   :  { %2190 = vmatmul.mubr.bf16.vlgmr.msra.gmra.mrb[0].mxu0 %v1774_v30  ;;  %1083 = vmatprep.mubr.bf16.mxu1 %v4029_v53 }
 0x104   :  { %2199 = vmatprep.mubr.bf16.mxu0 %v4125_v31 }
 0x10a   :  { %1084 = vmatmul.mubr.bf16.gmra.mrb[12].mxu1 %v4027_v52 }
 0x10b   :  { %2200 = vmatmul.mubr.bf16.gmra.mrb[16].mxu0 %v1773_v29 }
 0x11e   :  { %v1592_v32 = vpop.f32.mrb[4].mxu0 }
 0x11f   :  { %v1594_v33 = vpop.f32.mrb[5].mxu0 }
 0x120   :  { %v1596_v59 = vpop.f32.mrb[6].mxu0 }
 0x121   :  { %v1597_v2 = vpop.f32.mrb[7].mxu0 }
 0x15d   :  { %v539_v34 = vpop.f32.mrb[4].mxu1 }
 0x15e   :  { %v1643_v35 = vpop.f32.mrb[8].mxu0  ;;  %550 = vst [vmem:[#allocation2 + $0x20] sm:$0x3] %v539_v34  ;;  %v541_v36 = vpop.f32.mrb[5].mxu1 }
 0x15f   :  { %v1644_v37 = vadd.f32 %v1643_v35, %v1592_v32  ;;  %v1645_v38 = vpop.f32.mrb[9].mxu0  ;;  %551 = vst [vmem:[#allocation2 + $0x28] sm:$0x3] %v541_v36  ;;  %v543_v0 = vpop.f32.mrb[6].mxu1 }
 0x160   :  { %v1646_v39 = vadd.f32 %v1645_v38, %v1594_v33  ;;  %v1647_v40 = vpop.f32.mrb[10].mxu0  ;;  %v544_v53 = vpop.f32.mrb[7].mxu1 }
 0x161   :  { %v1648_v41 = vpop.f32.mrb[11].mxu0 }
 0x165   :  { %v1096_v20 = vld [vmem:[#allocation2 + $0x20] sm:$0x3] }
 0x166   :  { %v1097_v27 = vld [vmem:[#allocation2 + $0x28] sm:$0x3] }
 0x19d   :  { %v1034_v31 = vpop.f32.mrb[8].mxu1 }
 0x19e   :  { %v2150_v42 = vpop.f32.mrb[12].mxu0  ;;  %v1036_v52 = vpop.f32.mrb[9].mxu1 }
 0x19f   :  { %v2152_v43 = vpop.f32.mrb[13].mxu0  ;;  %v1038_v44 = vpop.f32.mrb[10].mxu1 }
 0x1a0   :  { %v2154_v45 = vpop.f32.mrb[14].mxu0  ;;  %v1039_v46 = vpop.f32.mrb[11].mxu1 }
 0x1a1   :  { %v2155_v47 = vpop.f32.mrb[15].mxu0 }
 0x1d5   :  { %v1075_v50 = vpop.f32.mrb[0].mxu1 }
 0x1d6   :  { %v2191_v58 = vpop.f32.mrb[0].mxu0  ;;  %v1077_v49 = vpop.f32.mrb[1].mxu1 }
 0x1d7   :  { %v2873_v61 = vadd.f32 %v2191_v58, %v1075_v50  ;;  %v2193_v63 = vpop.f32.mrb[1].mxu0  ;;  %v1079_v4 = vpop.f32.mrb[2].mxu1 }
 0x1d8   :  { %v2876_v1 = vadd.f32 %v2193_v63, %v1077_v49  ;;  %v2195_v5 = vpop.f32.mrb[2].mxu0  ;;  %v1081_v7 = vpop.f32.mrb[3].mxu1 }
 0x1d9   :  { %v2879_v6 = vadd.f32 %v2195_v5, %v1079_v4  ;;  %v2197_v8 = vpop.f32.mrb[3].mxu0  ;;  %v2244_v55 = vadd.f32 %v2873_v61, %v2237_v62 }
 0x1da   :  { %v2882_v9 = vadd.f32 %v2197_v8, %v1081_v7  ;;  %v2245_v60 = vadd.f32 %v2876_v1, %v2241_v3 }
 0x1db   :  { %v2246_v10 = vadd.f32 %v2879_v6, %v2237_v62 }
 0x1dc   :  { %v2247_v11 = vadd.f32 %v2882_v9, %v2241_v3 }
 0x1dd   :  { %v2250_v12 = vadd.f32 %v2246_v10, %v2244_v55  ;;  %v1085_v14 = vpop.f32.mrb[12].mxu1 }
 0x1de   :  { %v2260_v13 = vadd.f32 %v2247_v11, %v2245_v60  ;;  %v2201_v15 = vpop.f32.mrb[16].mxu0  ;;  %v1086_v16 = vadd.f32 %v1085_v14, %v1034_v31  ;;  %v1087_v17 = vpop.f32.mrb[13].mxu1 }
 0x1df   :  { %v2202_v18 = vadd.f32 %v2201_v15, %v2150_v42  ;;  %v2203_v19 = vpop.f32.mrb[17].mxu0  ;;  %v1088_v22 = vadd.f32 %v1087_v17, %v1036_v52  ;;  %v1089_v23 = vpop.f32.mrb[14].mxu1 }
 0x1e0   :  { %v2204_v24 = vadd.f32 %v2203_v19, %v2152_v43  ;;  %v2205_v25 = vpop.f32.mrb[18].mxu0  ;;  %v1102_v26 = vadd.f32 %v1096_v20, %v1086_v16  ;;  %v1090_v21 = vpop.f32.mrb[15].mxu1 }
 0x1e1   :  { %v2206_v28 = vpop.f32.mrb[19].mxu0  ;;  %v1103_v29 = vadd.f32 %v1097_v27, %v1088_v22 }
 0x1e2   :  { %1108 = vst [vmem:[#allocation2 + $0x20] sm:$0x3] %v1102_v26 }
 0x1e3   :  { %1109 = vst [vmem:[#allocation2 + $0x28] sm:$0x3] %v1103_v29 }
 0x1e9   :  { %v1654_v30 = vld [vmem:[#allocation2 + $0x20] sm:$0x3] }
 0x1ea   :  { %v1660_v32 = vadd.f32 %v1654_v30, %v1644_v37  ;;  %v1655_v33 = vld [vmem:[#allocation2 + $0x28] sm:$0x3] }
 0x1eb   :  { %v1661_v59 = vadd.f32 %v1655_v33, %v1646_v39 }
 0x1ec   :  { %1666 = vst [vmem:[#allocation2 + $0x20] sm:$0x3] %v1660_v32 }
 0x1ed   :  { %1667 = vst [vmem:[#allocation2 + $0x28] sm:$0x3] %v1661_v59  ;;  %v3336_v59 = vmov 1966171168  }
 0x1f3   :  { %v2212_v2 = vld [vmem:[#allocation2 + $0x20] sm:$0x3] }
 0x1f4   :  { %v2218_v34 = vadd.f32 %v2212_v2, %v2202_v18  ;;  %v2213_v35 = vld [vmem:[#allocation2 + $0x28] sm:$0x3]  ;;  %v2313_v2 = vunpack.c.l.s4 %v3336_v59 }
 0x1f5   :  { %v2219_v36 = vadd.f32 %v2213_v35, %v2204_v24 }
 0x1f6   :  { %2224 = vst [vmem:[#allocation2 + $0x20] sm:$0x3] %v2218_v34  ;;  %v2314_v34 = vunpack.c.0.s8 %v2313_v2 }
 0x1f7   :  { %2225 = vst [vmem:[#allocation2 + $0x28] sm:$0x3] %v2219_v36 }
 0x1f8   :  { %v2317_v36 = vsub.s32 %v2314_v34, %v4302_v51 }
 0x1fd   :  { %v2230_v38 = vld [vmem:[#allocation2 + $0x20] sm:$0x3] }
 0x1fe   :  { %v2248_v0 = vadd.f32 %v2237_v62, %v2230_v38  ;;  %v2231_v40 = vld [vmem:[#allocation2 + $0x28] sm:$0x3] }
 0x1ff   :  { %v2249_v53 = vadd.f32 %v2241_v3, %v2231_v40 }
 0x200   :  { %v2252_v41 = vsel %vm2251_vm3, %v2248_v0, 0.0 }
 0x201   :  { %v2253_v31 = vadd.f32 %v2252_v41, %v2250_v12  ;;  %v2261_v37 = vsel %vm2251_vm3, %v2249_v53, 0.0 }
 0x202   :  { %v2262_v42 = vadd.f32 %v2261_v37, %v2260_v13 }
 0x203   :  { %v2254_v39 = vrot.slane %v2253_v31, 4 }
 0x204   :  { %v2263_v52 = vrot.slane %v2262_v42, 4 }
 0x205   :  { %v2255_v43 = vadd.f32 %v2254_v39, %v2253_v31  ;;  %v2345_v31 = vld [vmem:[%s4352_s4] sm:$0x3] }
 0x206   :  { %v2264_v44 = vadd.f32 %v2263_v52, %v2262_v42  ;;  %v2350_v42 = vrot.slane %v2345_v31, %v4305_v56  ;;  %v2354_v39 = vrot.slane %v2345_v31, %v4311_v57 }
 0x207   :  { %v2256_v45 = vrot.slane %v2255_v43, 2 }
 0x208   :  { %v2265_v46 = vrot.slane %v2264_v44, 2 }
 0x209   :  { %v2257_v47 = vadd.f32 %v2256_v45, %v2255_v43 }
 0x20a   :  { %v2266_v48 = vadd.f32 %v2265_v46, %v2264_v44 }
 0x20b   :  { %v2258_v54 = vrot.slane %v2257_v47, 1 }
 0x20c   :  { %v2267_v50 = vrot.slane %v2266_v48, 1 }
 0x20d   :  { %v2259_v58 = vadd.f32 %v2258_v54, %v2257_v47 }
 0x20e   :  { %v2268_v61 = vadd.f32 %v2267_v50, %v2266_v48 }
 0x20f   :  { %v2270_v62 = vmul.f32 0.055555556, %v2259_v58 }
 0x210   :  { %v2271_v49 = vmul.f32 0.055555556, %v2268_v61 }
 0x211   :  { %v2272_v63 = vsub.f32 %v2244_v55, %v2270_v62  ;;  %v2274_v1 = vsub.f32 %v2246_v10, %v2270_v62  ;;  %v2276_v3 = vsub.f32 %v2248_v0, %v2270_v62 }
 0x212   :  { %v2273_v4 = vsub.f32 %v2245_v60, %v2271_v49  ;;  %v2275_v5 = vsub.f32 %v2247_v11, %v2271_v49  ;;  %v2277_v6 = vsub.f32 %v2249_v53, %v2271_v49  ;;  %v2304_v53 = vld [vmem:[%s4351_s3] sm:$0x3] }
 0x213   :  { %v2278_v7 = vmul.f32 %v2272_v63, %v2272_v63  ;;  %v2280_v8 = vmul.f32 %v2274_v1, %v2274_v1  ;;  %v2282_v9 = vmul.f32 %v2276_v3, %v2276_v3 }
 0x214   :  { %v2279_v12 = vmul.f32 %v2273_v4, %v2273_v4  ;;  %v2281_v13 = vmul.f32 %v2275_v5, %v2275_v5  ;;  %v2283_v14 = vmul.f32 %v2277_v6, %v2277_v6 }
 0x215   :  { %v2284_v15 = vadd.f32 %v2280_v8, %v2278_v7  ;;  %v2285_v16 = vsel %vm2251_vm3, %v2282_v9, 0.0 }
 0x216   :  { %v2293_v17 = vadd.f32 %v2281_v13, %v2279_v12  ;;  %v2294_v18 = vsel %vm2251_vm3, %v2283_v14, 0.0 }
 0x217   :  { %v2286_v19 = vadd.f32 %v2285_v16, %v2284_v15 }
 0x218   :  { %v2295_v20 = vadd.f32 %v2294_v18, %v2293_v17 }
 0x219   :  { %v2287_v55 = vrot.slane %v2286_v19, 4 }
 0x21a   :  { %v2296_v10 = vrot.slane %v2295_v20, 4 }
 0x21b   :  { %v2288_v22 = vadd.f32 %v2287_v55, %v2286_v19 }
 0x21c   :  { %v2297_v60 = vadd.f32 %v2296_v10, %v2295_v20 }
 0x21d   :  { %v2289_v11 = vrot.slane %v2288_v22, 2 }
 0x21e   :  { %v2298_v23 = vrot.slane %v2297_v60, 2 }
 0x21f   :  { %v2290_v24 = vadd.f32 %v2289_v11, %v2288_v22 }
 0x220   :  { %v2299_v25 = vadd.f32 %v2298_v23, %v2297_v60 }
 0x221   :  { %v2291_v26 = vrot.slane %v2290_v24, 1 }
 0x222   :  { %v2300_v27 = vrot.slane %v2299_v25, 1 }
 0x223   :  { %v2292_v21 = vadd.f32 %v2291_v26, %v2290_v24 }
 0x224   :  { %v2301_v28 = vadd.f32 %v2300_v27, %v2299_v25 }
 0x225   :  { %v2302_v29 = vmul.f32 0.055555556, %v2292_v21 }
 0x226   :  { %v2303_v30 = vmul.f32 0.055555556, %v2301_v28 }
 0x227   :  { %v2305_v32 = vadd.f32 1e-05, %v2302_v29 }
 0x228   :  { %v2306_v33 = vadd.f32 1e-05, %v2303_v30 }
 0x229   :  { %3330 = vrsqrt.f32 %v2305_v32 }
 0x22a   :  { %3332 = vrsqrt.f32 %v2306_v33 }
 0x233   :  { %v3331_v35 = vpop.eup %3330 }
 0x234   :  { %v3333_v38 = vpop.eup %3332 }
 0x235   :  { %v2311_v0 = vcombine.low %v3331_v35, %v3333_v38 }
 0x237   :  { %v2318_v40 = vrot.slane %v2311_v0, %v2317_v36 }
 0x239   :  { %v2325_v41 = vrot.slane %v2318_v40, %v2317_v36 }
 0x23b   :  { %v2327_v37 = vmul.f32 %v2325_v41, %v2304_v53 }
 0x23d   :  { %v2332_v52 = vrot.slane %v2327_v37, %v4305_v56  ;;  %v2336_v51 = vrot.slane %v2327_v37, %v4311_v57 }
 0x23f   :  { %v2339_v43 = vmul.f32 %v2332_v52, %v2272_v63  ;;  %v2340_v44 = vmul.f32 %v2336_v51, %v2273_v4  ;;  %v2341_v45 = vmul.f32 %v2332_v52, %v2274_v1  ;;  %v2342_v46 = vmul.f32 %v2336_v51, %v2275_v5 }
 0x240   :  { %v2343_v47 = vmul.f32 %v2332_v52, %v2276_v3  ;;  %v2344_v48 = vmul.f32 %v2336_v51, %v2277_v6 }
 0x241   :  { %v2357_v54 = vadd.f32 %v2350_v42, %v2339_v43  ;;  %v2358_v50 = vadd.f32 %v2354_v39, %v2340_v44  ;;  %v2359_v58 = vadd.f32 %v2350_v42, %v2341_v45  ;;  %v2360_v61 = vadd.f32 %v2354_v39, %v2342_v46 }
 0x242   :  { %v2361_v62 = vadd.f32 %v2350_v42, %v2343_v47  ;;  %v2362_v49 = vadd.f32 %v2354_v39, %v2344_v48 }
 0x243   :  { %vm2363_vm4 = vcmp.gt.f32.partialorder %v2357_v54, 0.0  ;;  %vm2364_vm5 = vcmp.gt.f32.partialorder %v2358_v50, 0.0  ;;  %vm2365_vm6 = vcmp.gt.f32.partialorder %v2359_v58, 0.0  ;;  %vm2366_vm7 = vcmp.gt.f32.partialorder %v2360_v61, 0.0 }
 0x244   :  { %vm2367_vm8 = vcmp.gt.f32.partialorder %v2361_v62, 0.0  ;;  %vm2368_vm9 = vcmp.gt.f32.partialorder %v2362_v49, 0.0  ;;  %v2369_v56 = vmul.f32 0.2, %v2357_v54  ;;  %v2370_v57 = vmul.f32 0.2, %v2358_v50 }
 0x245   :  { %v2371_v63 = vmul.f32 0.2, %v2359_v58  ;;  %v2372_v4 = vmul.f32 0.2, %v2360_v61  ;;  %v2373_v1 = vmul.f32 0.2, %v2361_v62 }
 0x246   :  { %v2374_v5 = vmul.f32 0.2, %v2362_v49  ;;  %v2375_v3 = vsel %vm2363_vm4, %v2357_v54, %v2369_v56  ;;  %v2376_v6 = vsel %vm2364_vm5, %v2358_v50, %v2370_v57 }
 0x247   :  { %v2377_v7 = vsel %vm2365_vm6, %v2359_v58, %v2371_v63  ;;  %v2378_v8 = vsel %vm2366_vm7, %v2360_v61, %v2372_v4  ;;  %v2379_v9 = vsel %vm2367_vm8, %v2361_v62, %v2373_v1  ;;  %2381 = vst [vmem:[%s4353_s5] sm:$0xff] %v2375_v3  ;;  %2382 = vst [vmem:[%s4353_s5 + $0x8] sm:$0xff] %v2376_v6 }
 0x248   :  { %v2380_v12 = vsel %vm2368_vm9, %v2362_v49, %v2374_v5  ;;  %2383 = vst [vmem:[%s4353_s5 + $0x10] sm:$0xff] %v2377_v7  ;;  %2384 = vst [vmem:[%s4353_s5 + $0x18] sm:$0xff] %v2378_v8 }
 0x249   :  { %2385 = vst [vmem:[%s4353_s5 + $0x20] sm:$0x3] %v2379_v9  ;;  %2386 = vst [vmem:[%s4353_s5 + $0x28] sm:$0x3] %v2380_v12 }

// kernel: discriminator_forward.9
= control target key start
LH: loop header
LB: loop body
LE: loop exit
PB: predicated region body
PF: predicated region fallthrough
CT: control target
= control target key end

     0   :  { %s5095_s1 = inlined_call_operand.vmem [shape: bf16[4,1024,128], index: 1, kind: input, shape index: {}]   ;;  %s5096_s3 = inlined_call_operand.vmem [shape: f32[1,128], index: 3, kind: input, shape index: {}]   ;;  %s5097_s4 = inlined_call_operand.vmem [shape: f32[1,128], index: 4, kind: input, shape index: {}]   ;;  %s5098_s0 = inlined_call_operand.vmem [shape: bf16[1,20,1024], index: 0, kind: input, shape index: {}]   ;;  %s5099_s2 = inlined_call_operand.vmem [shape: f32[1,128], index: 2, kind: input, shape index: {}]   ;;  %s5100_s5 = inlined_call_operand.vmem [shape: f32[8,128], index: 5, kind: output, shape index: {}]  }
   0x1   :  { %v3943_v0 = vld [vmem:[%s5095_s1 + $0x40] sm:$0xff]   ;;  %v3947_v4 = vld [vmem:[%s5095_s1 + $0x48] sm:$0xff]   ;;  %v3951_v8 = vld [vmem:[%s5095_s1 + $0x50] sm:$0xff]  }
   0x2   :  { %v3944_v1 = vld [vmem:[%s5095_s1 + $0xc0] sm:$0xff]   ;;  %3591 = vmatprep.subr.bf16.mxu0 %v3943_v0  ;;  %v3948_v5 = vld [vmem:[%s5095_s1 + $0xc8] sm:$0xff]   ;;  %v3952_v9 = vld [vmem:[%s5095_s1 + $0xd0] sm:$0xff]  }
   0x3   :  { %v3945_v2 = vld [vmem:[%s5095_s1] sm:$0xff]   ;;  %3613 = vmatprep.subr.bf16.mxu1 %v3944_v1  ;;  %v3949_v6 = vld [vmem:[%s5095_s1 + $0x8] sm:$0xff]   ;;  %v3953_v10 = vld [vmem:[%s5095_s1 + $0x10] sm:$0xff]  }
   0x4   :  { %v3946_v3 = vld [vmem:[%s5095_s1 + $0x80] sm:$0xff]   ;;  %3592 = vmatpush3.bf16.msra.mxu0 %v3945_v2  ;;  %v3950_v7 = vld [vmem:[%s5095_s1 + $0x88] sm:$0xff]   ;;  %v3954_v11 = vld [vmem:[%s5095_s1 + $0x90] sm:$0xff]  }
   0x5   :  { %3614 = vmatpush3.bf16.msra.mxu1 %v3946_v3  ;;  %3593 = vmatprep.subr.bf16.mxu0 %v3947_v4  ;;  %v3955_v12 = vld [vmem:[%s5095_s1 + $0x58] sm:$0xff]   ;;  %v3959_v16 = vld [vmem:[%s5095_s1 + $0x60] sm:$0xff]   ;;  %v3963_v20 = vld [vmem:[%s5095_s1 + $0x68] sm:$0xff]  }
   0x6   :  { %3615 = vmatprep.subr.bf16.mxu1 %v3948_v5  ;;  %v3956_v13 = vld [vmem:[%s5095_s1 + $0xd8] sm:$0xff]   ;;  %v3960_v17 = vld [vmem:[%s5095_s1 + $0xe0] sm:$0xff]   ;;  %v3964_v21 = vld [vmem:[%s5095_s1 + $0xe8] sm:$0xff]  }
   0x7   :  { %v3957_v14 = vld [vmem:[%s5095_s1 + $0x18] sm:$0xff]   ;;  %v3961_v18 = vld [vmem:[%s5095_s1 + $0x20] sm:$0xff]   ;;  %v3965_v22 = vld [vmem:[%s5095_s1 + $0x28] sm:$0xff]  }
   0x8   :  { %3594 = vmatpush3.bf16.msra.mxu0 %v3949_v6  ;;  %v3958_v15 = vld [vmem:[%s5095_s1 + $0x98] sm:$0xff]   ;;  %v3962_v19 = vld [vmem:[%s5095_s1 + $0xa0] sm:$0xff]   ;;  %v3966_v23 = vld [vmem:[%s5095_s1 + $0xa8] sm:$0xff]  }
   0x9   :  { %3616 = vmatpush3.bf16.msra.mxu1 %v3950_v7  ;;  %3595 = vmatprep.subr.bf16.mxu0 %v3951_v8  ;;  %v3967_v24 = vld [vmem:[%s5095_s1 + $0x70] sm:$0xff]   ;;  %v3971_v28 = vld [vmem:[%s5095_s1 + $0x78] sm:$0xff]   ;;  %v21_v32 = vld [vmem:[%s5098_s0] sm:$0xff] }
   0xa   :  { %3617 = vmatprep.subr.bf16.mxu1 %v3952_v9  ;;  %v3968_v25 = vld [vmem:[%s5095_s1 + $0xf0] sm:$0xff]   ;;  %v3972_v29 = vld [vmem:[%s5095_s1 + $0xf8] sm:$0xff]   ;;  %v22_v33 = vld [vmem:[%s5098_s0 + $0x8] sm:$0xff]  ;;  %v2918_v34 = vcombine.low %v21_v32, %v21_v32  ;;  %v2919_v35 = vcombine.high %v21_v32, %v21_v32 }
   0xb   :  { %v3969_v26 = vld [vmem:[%s5095_s1 + $0x30] sm:$0xff]   ;;  %v3973_v30 = vld [vmem:[%s5095_s1 + $0x38] sm:$0xff]   ;;  %v2920_v36 = vcombine.low %v22_v33, %v22_v33  ;;  %v2921_v37 = vcombine.high %v22_v33, %v22_v33  ;;  %v3979_v38 = vld [vmem:[%s5095_s1 + $0x140] sm:$0xff]  }
   0xc   :  { %3596 = vmatpush3.bf16.msra.mxu0 %v3953_v10  ;;  %v3970_v27 = vld [vmem:[%s5095_s1 + $0xb0] sm:$0xff]   ;;  %v3974_v31 = vld [vmem:[%s5095_s1 + $0xb8] sm:$0xff]   ;;  %v3980_v39 = vld [vmem:[%s5095_s1 + $0x1c0] sm:$0xff]   ;;  %597 = vmatprep.mubr.bf16.mxu0 %v2919_v35 }
   0xd   :  { %3618 = vmatpush3.bf16.msra.mxu1 %v3954_v11  ;;  %3597 = vmatprep.subr.bf16.mxu0 %v3955_v12  ;;  %v3981_v40 = vld [vmem:[%s5095_s1 + $0x100] sm:$0xff]   ;;  %v3983_v42 = vld [vmem:[%s5095_s1 + $0x148] sm:$0xff]   ;;  %v3987_v46 = vld [vmem:[%s5095_s1 + $0x150] sm:$0xff]  }
   0xe   :  { %3619 = vmatprep.subr.bf16.mxu1 %v3956_v13  ;;  %637 = vmatprep.mubr.bf16.mxu1 %v2921_v37  ;;  %v3982_v41 = vld [vmem:[%s5095_s1 + $0x180] sm:$0xff]   ;;  %v3984_v43 = vld [vmem:[%s5095_s1 + $0x1c8] sm:$0xff]   ;;  %v3988_v47 = vld [vmem:[%s5095_s1 + $0x1d0] sm:$0xff]  }
   0xf   :  { %v3985_v44 = vld [vmem:[%s5095_s1 + $0x108] sm:$0xff]   ;;  %v3989_v48 = vld [vmem:[%s5095_s1 + $0x110] sm:$0xff]   ;;  %v3991_v50 = vld [vmem:[%s5095_s1 + $0x158] sm:$0xff]  }
  0x10   :  { %3598 = vmatpush3.bf16.msra.mxu0 %v3957_v14  ;;  %v3986_v45 = vld [vmem:[%s5095_s1 + $0x188] sm:$0xff]   ;;  %v3990_v49 = vld [vmem:[%s5095_s1 + $0x190] sm:$0xff]   ;;  %v3992_v51 = vld [vmem:[%s5095_s1 + $0x1d8] sm:$0xff]  }
  0x11   :  { %3620 = vmatpush3.bf16.msra.mxu1 %v3958_v15  ;;  %3599 = vmatprep.subr.bf16.mxu0 %v3959_v16  ;;  %v3993_v52 = vld [vmem:[%s5095_s1 + $0x118] sm:$0xff]   ;;  %v3995_v54 = vld [vmem:[%s5095_s1 + $0x160] sm:$0xff]   ;;  %v3999_v58 = vld [vmem:[%s5095_s1 + $0x168] sm:$0xff]  }
  0x12   :  { %3621 = vmatprep.subr.bf16.mxu1 %v3960_v17  ;;  %v3994_v53 = vld [vmem:[%s5095_s1 + $0x198] sm:$0xff]   ;;  %v3996_v55 = vld [vmem:[%s5095_s1 + $0x1e0] sm:$0xff]   ;;  %v4000_v59 = vld [vmem:[%s5095_s1 + $0x1e8] sm:$0xff]  }
  0x13   :  { %v3997_v56 = vld [vmem:[%s5095_s1 + $0x120] sm:$0xff]   ;;  %v4001_v60 = vld [vmem:[%s5095_s1 + $0x128] sm:$0xff]   ;;  %v4003_v62 = vld [vmem:[%s5095_s1 + $0x170] sm:$0xff]  }
  0x14   :  { %3600 = vmatpush3.bf16.msra.mxu0 %v3961_v18  ;;  %v3998_v57 = vld [vmem:[%s5095_s1 + $0x1a0] sm:$0xff]   ;;  %v4002_v61 = vld [vmem:[%s5095_s1 + $0x1a8] sm:$0xff]   ;;  %v4004_v63 = vld [vmem:[%s5095_s1 + $0x1f0] sm:$0xff]  }
  0x15   :  { %3622 = vmatpush3.bf16.msra.mxu1 %v3962_v19  ;;  %3601 = vmatprep.subr.bf16.mxu0 %v3963_v20  ;;  %v4005_v0 = vld [vmem:[%s5095_s1 + $0x130] sm:$0xff]   ;;  %v4007_v2 = vld [vmem:[%s5095_s1 + $0x178] sm:$0xff]   ;;  %v4015_v12 = vld [vmem:[%s5095_s1 + $0x240] sm:$0xff]  }
  0x16   :  { %3623 = vmatprep.subr.bf16.mxu1 %v3964_v21  ;;  %v4006_v1 = vld [vmem:[%s5095_s1 + $0x1b0] sm:$0xff]   ;;  %v4008_v3 = vld [vmem:[%s5095_s1 + $0x1f8] sm:$0xff]   ;;  %v4016_v13 = vld [vmem:[%s5095_s1 + $0x2c0] sm:$0xff]  }
  0x17   :  { %v4009_v4 = vld [vmem:[%s5095_s1 + $0x138] sm:$0xff]   ;;  %v23_v6 = vld [vmem:[%s5098_s0 + $0x10] sm:$0xff]  ;;  %v4017_v14 = vld [vmem:[%s5095_s1 + $0x200] sm:$0xff]  }
  0x18   :  { %3602 = vmatpush3.bf16.msra.mxu0 %v3965_v22  ;;  %v4010_v5 = vld [vmem:[%s5095_s1 + $0x1b8] sm:$0xff]   ;;  %v2922_v7 = vcombine.low %v23_v6, %v23_v6  ;;  %v2923_v8 = vcombine.high %v23_v6, %v23_v6  ;;  %v4018_v15 = vld [vmem:[%s5095_s1 + $0x280] sm:$0xff]   ;;  %v4019_v16 = vld [vmem:[%s5095_s1 + $0x248] sm:$0xff]  }
  0x19   :  { %3624 = vmatpush3.bf16.msra.mxu1 %v3966_v23  ;;  %3603 = vmatprep.subr.bf16.mxu0 %v3967_v24  ;;  %v24_v9 = vld [vmem:[%s5098_s0 + $0x18] sm:$0xff]  ;;  %v4020_v17 = vld [vmem:[%s5095_s1 + $0x2c8] sm:$0xff]   ;;  %v4023_v20 = vld [vmem:[%s5095_s1 + $0x250] sm:$0xff]  }
  0x1a   :  { %3625 = vmatprep.subr.bf16.mxu1 %v3968_v25  ;;  %v2924_v10 = vcombine.low %v24_v9, %v24_v9  ;;  %v2925_v11 = vcombine.high %v24_v9, %v24_v9  ;;  %v4021_v18 = vld [vmem:[%s5095_s1 + $0x208] sm:$0xff]   ;;  %v4024_v21 = vld [vmem:[%s5095_s1 + $0x2d0] sm:$0xff]   ;;  %v4027_v24 = vld [vmem:[%s5095_s1 + $0x258] sm:$0xff]  }
  0x1b   :  { %v4022_v19 = vld [vmem:[%s5095_s1 + $0x288] sm:$0xff]   ;;  %v4025_v22 = vld [vmem:[%s5095_s1 + $0x210] sm:$0xff]   ;;  %v4028_v25 = vld [vmem:[%s5095_s1 + $0x2d8] sm:$0xff]  }
  0x1c   :  { %3604 = vmatpush3.bf16.msra.mxu0 %v3969_v26  ;;  %v4026_v23 = vld [vmem:[%s5095_s1 + $0x290] sm:$0xff]   ;;  %v4029_v26 = vld [vmem:[%s5095_s1 + $0x218] sm:$0xff]   ;;  %v4035_v32 = vld [vmem:[%s5095_s1 + $0x268] sm:$0xff]  }
  0x1d   :  { %3626 = vmatpush3.bf16.msra.mxu1 %v3970_v27  ;;  %3605 = vmatprep.subr.bf16.mxu0 %v3971_v28  ;;  %v4030_v27 = vld [vmem:[%s5095_s1 + $0x298] sm:$0xff]   ;;  %v4031_v28 = vld [vmem:[%s5095_s1 + $0x260] sm:$0xff]   ;;  %v4036_v33 = vld [vmem:[%s5095_s1 + $0x2e8] sm:$0xff]  }
  0x1e   :  { %3627 = vmatprep.subr.bf16.mxu1 %v3972_v29  ;;  %v4032_v29 = vld [vmem:[%s5095_s1 + $0x2e0] sm:$0xff]   ;;  %v4038_v35 = vld [vmem:[%s5095_s1 + $0x2a8] sm:$0xff]   ;;  %v4040_v37 = vld [vmem:[%s5095_s1 + $0x2f0] sm:$0xff]  }
  0x1f   :  { %v4061_v6 = vld [vmem:[%s5095_s1 + $0x318] sm:$0xff]   ;;  %v4064_v9 = vld [vmem:[%s5095_s1 + $0x3e0] sm:$0xff]  }
  0x20   :  { %3606 = vmatpush3.bf16.msra.mxu0 %v3973_v30  ;;  %v4033_v30 = vld [vmem:[%s5095_s1 + $0x220] sm:$0xff]  }
  0x21   :  { %3628 = vmatpush3.bf16.msra.mxu1 %v3974_v31  ;;  %3635 = vmatprep.subr.bf16.mxu0 %v3979_v38  ;;  %v4034_v31 = vld [vmem:[%s5095_s1 + $0x2a0] sm:$0xff]   ;;  %v4041_v38 = vld [vmem:[%s5095_s1 + $0x230] sm:$0xff]  }
  0x22   :  { %3657 = vmatprep.subr.bf16.mxu1 %v3980_v39  ;;  %v4042_v39 = vld [vmem:[%s5095_s1 + $0x2b0] sm:$0xff]  }
  0x23   :  { %598 = vmatmul.mubr.bf16.vlgmr.msra.gmra.mrb[0].mxu0 %v2918_v34  ;;  %v4037_v34 = vld [vmem:[%s5095_s1 + $0x228] sm:$0xff]  }
  0x24   :  { %638 = vmatmul.mubr.bf16.vlgmr.msra.gmra.mrb[0].mxu1 %v2920_v36  ;;  %3636 = vmatpush3.bf16.msra.mxu0 %v3981_v40  ;;  %v4039_v36 = vld [vmem:[%s5095_s1 + $0x270] sm:$0xff]   ;;  %v4043_v40 = vld [vmem:[%s5095_s1 + $0x278] sm:$0xff]  }
  0x25   :  { %3658 = vmatpush3.bf16.msra.mxu1 %v3982_v41  ;;  %3637 = vmatprep.subr.bf16.mxu0 %v3983_v42  ;;  %v4044_v41 = vld [vmem:[%s5095_s1 + $0x2f8] sm:$0xff]  }
  0x26   :  { %3659 = vmatprep.subr.bf16.mxu1 %v3984_v43  ;;  %677 = vmatprep.mubr.bf16.mxu0 %v2923_v8  ;;  %v4045_v42 = vld [vmem:[%s5095_s1 + $0x238] sm:$0xff]   ;;  %v4063_v8 = vld [vmem:[%s5095_s1 + $0x360] sm:$0xff]  }
  0x27   :  { %717 = vmatprep.mubr.bf16.mxu1 %v2925_v11  ;;  %v4046_v43 = vld [vmem:[%s5095_s1 + $0x2b8] sm:$0xff]   ;;  %v4066_v11 = vld [vmem:[%s5095_s1 + $0x3a0] sm:$0xff]  }
  0x28   :  { %3638 = vmatpush3.bf16.msra.mxu0 %v3985_v44  ;;  %v726_v44 = vld [vmem:[%s5098_s0] sm:$0xcc] }
  0x29   :  { %3660 = vmatpush3.bf16.msra.mxu1 %v3986_v45  ;;  %3639 = vmatprep.subr.bf16.mxu0 %v3987_v46  ;;  %v730_v45 = vld [vmem:[%s5098_s0 + $0x20] sm:$0x33] }
  0x2a   :  { %3661 = vmatprep.subr.bf16.mxu1 %v3988_v47  ;;  %v3118_v46 = vcombine.low %v726_v44, %v730_v45  ;;  %v3119_v47 = vcombine.high %v726_v44, %v730_v45  ;;  %v4087_v44 = vld [vmem:[%s5095_s1 + $0x450] sm:$0xff]  }
  0x2b   :  { %v4088_v45 = vld [vmem:[%s5095_s1 + $0x4d0] sm:$0xff]  }
  0x2c   :  { %3640 = vmatpush3.bf16.msra.mxu0 %v3989_v48  ;;  %v727_v48 = vld [vmem:[%s5098_s0 + $0x8] sm:$0xcc] }
  0x2d   :  { %3662 = vmatpush3.bf16.msra.mxu1 %v3990_v49  ;;  %3641 = vmatprep.subr.bf16.mxu0 %v3991_v50  ;;  %v731_v49 = vld [vmem:[%s5098_s0 + $0x28] sm:$0x33] }
  0x2e   :  { %3663 = vmatprep.subr.bf16.mxu1 %v3992_v51  ;;  %v3120_v50 = vcombine.low %v727_v48, %v731_v49  ;;  %v3121_v51 = vcombine.high %v727_v48, %v731_v49  ;;  %v4091_v48 = vld [vmem:[%s5095_s1 + $0x458] sm:$0xff]  }
  0x2f   :  { %v4092_v49 = vld [vmem:[%s5095_s1 + $0x4d8] sm:$0xff]  }
  0x30   :  { %3642 = vmatpush3.bf16.msra.mxu0 %v3993_v52  ;;  %v4047_v52 = vld [vmem:[%s5095_s1 + $0x340] sm:$0xff]  }
  0x31   :  { %3664 = vmatpush3.bf16.msra.mxu1 %v3994_v53  ;;  %3643 = vmatprep.subr.bf16.mxu0 %v3995_v54  ;;  %v895_v53 = vrot.slane %v3118_v46, 2  ;;  %v896_v54 = vrot.slane %v3119_v47, 2  ;;  %v4089_v46 = vld [vmem:[%s5095_s1 + $0x410] sm:$0xff]  }
  0x32   :  { %3665 = vmatprep.subr.bf16.mxu1 %v3996_v55  ;;  %v4048_v55 = vld [vmem:[%s5095_s1 + $0x3c0] sm:$0xff]   ;;  %v4090_v47 = vld [vmem:[%s5095_s1 + $0x490] sm:$0xff]  }
  0x34   :  { %3644 = vmatpush3.bf16.msra.mxu0 %v3997_v56  ;;  %v4049_v56 = vld [vmem:[%s5095_s1 + $0x300] sm:$0xff]  }
  0x35   :  { %3666 = vmatpush3.bf16.msra.mxu1 %v3998_v57  ;;  %3645 = vmatprep.subr.bf16.mxu0 %v3999_v58  ;;  %v897_v57 = vrot.slane %v3120_v50, 2  ;;  %v898_v58 = vrot.slane %v3121_v51, 2  ;;  %v4093_v50 = vld [vmem:[%s5095_s1 + $0x418] sm:$0xff]  }
  0x36   :  { %3667 = vmatprep.subr.bf16.mxu1 %v4000_v59  ;;  %v4050_v59 = vld [vmem:[%s5095_s1 + $0x380] sm:$0xff]   ;;  %v4094_v51 = vld [vmem:[%s5095_s1 + $0x498] sm:$0xff]  }
  0x38   :  { %3646 = vmatpush3.bf16.msra.mxu0 %v4001_v60  ;;  %v4051_v60 = vld [vmem:[%s5095_s1 + $0x348] sm:$0xff]  }
  0x39   :  { %3668 = vmatpush3.bf16.msra.mxu1 %v4002_v61  ;;  %3647 = vmatprep.subr.bf16.mxu0 %v4003_v62  ;;  %v4052_v61 = vld [vmem:[%s5095_s1 + $0x3c8] sm:$0xff]  }
  0x3a   :  { %3669 = vmatprep.subr.bf16.mxu1 %v4004_v63  ;;  %v4053_v62 = vld [vmem:[%s5095_s1 + $0x308] sm:$0xff]  }
  0x3b   :  { %v4054_v63 = vld [vmem:[%s5095_s1 + $0x388] sm:$0xff]  }
  0x3c   :  { %3648 = vmatpush3.bf16.msra.mxu0 %v4005_v0  ;;  %v4055_v0 = vld [vmem:[%s5095_s1 + $0x350] sm:$0xff]  }
  0x3d   :  { %3670 = vmatpush3.bf16.msra.mxu1 %v4006_v1  ;;  %3649 = vmatprep.subr.bf16.mxu0 %v4007_v2  ;;  %v4056_v1 = vld [vmem:[%s5095_s1 + $0x3d0] sm:$0xff]  }
  0x3e   :  { %3671 = vmatprep.subr.bf16.mxu1 %v4008_v3  ;;  %v4057_v2 = vld [vmem:[%s5095_s1 + $0x310] sm:$0xff]  }
  0x3f   :  { %v4058_v3 = vld [vmem:[%s5095_s1 + $0x390] sm:$0xff]  }
  0x40   :  { %3650 = vmatpush3.bf16.msra.mxu0 %v4009_v4  ;;  %v4059_v4 = vld [vmem:[%s5095_s1 + $0x358] sm:$0xff]  }
  0x41   :  { %3672 = vmatpush3.bf16.msra.mxu1 %v4010_v5  ;;  %3679 = vmatprep.subr.bf16.mxu0 %v4015_v12  ;;  %v4060_v5 = vld [vmem:[%s5095_s1 + $0x3d8] sm:$0xff]   ;;  %v4067_v12 = vld [vmem:[%s5095_s1 + $0x368] sm:$0xff]  }
  0x42   :  { %3701 = vmatprep.subr.bf16.mxu1 %v4016_v13  ;;  %v4068_v13 = vld [vmem:[%s5095_s1 + $0x3e8] sm:$0xff]  }
  0x43   :  { %678 = vmatmul.mubr.bf16.vlgmr.msra.gmra.mrb[4].mxu0 %v2922_v7  ;;  %v4062_v7 = vld [vmem:[%s5095_s1 + $0x398] sm:$0xff]  }
  0x44   :  { %718 = vmatmul.mubr.bf16.vlgmr.msra.gmra.mrb[4].mxu1 %v2924_v10  ;;  %3680 = vmatpush3.bf16.msra.mxu0 %v4017_v14  ;;  %v4065_v10 = vld [vmem:[%s5095_s1 + $0x320] sm:$0xff]   ;;  %v4069_v14 = vld [vmem:[%s5095_s1 + $0x328] sm:$0xff]  }
  0x45   :  { %3702 = vmatpush3.bf16.msra.mxu1 %v4018_v15  ;;  %3681 = vmatprep.subr.bf16.mxu0 %v4019_v16  ;;  %v4070_v15 = vld [vmem:[%s5095_s1 + $0x3a8] sm:$0xff]   ;;  %v4071_v16 = vld [vmem:[%s5095_s1 + $0x370] sm:$0xff]  }
  0x46   :  { %3703 = vmatprep.subr.bf16.mxu1 %v4020_v17  ;;  %1327 = vmatprep.mubr.bf16.mxu0 %v896_v54  ;;  %v4072_v17 = vld [vmem:[%s5095_s1 + $0x3f0] sm:$0xff]   ;;  %v4097_v54 = vld [vmem:[%s5095_s1 + $0x420] sm:$0xff]  }
  0x47   :  { %1367 = vmatprep.mubr.bf16.mxu1 %v898_v58  ;;  %v4101_v58 = vld [vmem:[%s5095_s1 + $0x428] sm:$0xff]  }
  0x48   :  { %3682 = vmatpush3.bf16.msra.mxu0 %v4021_v18  ;;  %v4073_v18 = vld [vmem:[%s5095_s1 + $0x330] sm:$0xff]  }
  0x49   :  { %3704 = vmatpush3.bf16.msra.mxu1 %v4022_v19  ;;  %3683 = vmatprep.subr.bf16.mxu0 %v4023_v20  ;;  %v4074_v19 = vld [vmem:[%s5095_s1 + $0x3b0] sm:$0xff]   ;;  %v4075_v20 = vld [vmem:[%s5095_s1 + $0x378] sm:$0xff]  }
  0x4a   :  { %3705 = vmatprep.subr.bf16.mxu1 %v4024_v21  ;;  %v4076_v21 = vld [vmem:[%s5095_s1 + $0x3f8] sm:$0xff]  }
  0x4c   :  { %3684 = vmatpush3.bf16.msra.mxu0 %v4025_v22  ;;  %v4077_v22 = vld [vmem:[%s5095_s1 + $0x338] sm:$0xff]  }
  0x4d   :  { %3706 = vmatpush3.bf16.msra.mxu1 %v4026_v23  ;;  %3685 = vmatprep.subr.bf16.mxu0 %v4027_v24  ;;  %v4078_v23 = vld [vmem:[%s5095_s1 + $0x3b8] sm:$0xff]   ;;  %v728_v24 = vld [vmem:[%s5098_s0 + $0x10] sm:$0xcc] }
  0x4e   :  { %3707 = vmatprep.subr.bf16.mxu1 %v4028_v25  ;;  %v732_v25 = vld [vmem:[%s5098_s0 + $0x30] sm:$0x33] }
  0x50   :  { %3686 = vmatpush3.bf16.msra.mxu0 %v4029_v26  ;;  %v729_v26 = vld [vmem:[%s5098_s0 + $0x18] sm:$0xcc] }
  0x51   :  { %3708 = vmatpush3.bf16.msra.mxu1 %v4030_v27  ;;  %3687 = vmatprep.subr.bf16.mxu0 %v4031_v28  ;;  %v3122_v27 = vcombine.low %v728_v24, %v732_v25  ;;  %v3123_v28 = vcombine.high %v728_v24, %v732_v25  ;;  %v4129_v24 = vld [vmem:[%s5095_s1 + $0x518] sm:$0xff]  }
  0x52   :  { %3709 = vmatprep.subr.bf16.mxu1 %v4032_v29  ;;  %v733_v29 = vld [vmem:[%s5098_s0 + $0x38] sm:$0x33] }
  0x53   :  { %v4130_v25 = vld [vmem:[%s5095_s1 + $0x598] sm:$0xff]  }
  0x54   :  { %3688 = vmatpush3.bf16.msra.mxu0 %v4033_v30  ;;  %v3124_v30 = vcombine.low %v729_v26, %v733_v29 }
  0x55   :  { %3710 = vmatpush3.bf16.msra.mxu1 %v4034_v31  ;;  %3689 = vmatprep.subr.bf16.mxu0 %v4035_v32  ;;  %v3125_v31 = vcombine.high %v729_v26, %v733_v29  ;;  %v4079_v32 = vld [vmem:[%s5095_s1 + $0x440] sm:$0xff]  }
  0x56   :  { %3711 = vmatprep.subr.bf16.mxu1 %v4036_v33  ;;  %v899_v33 = vrot.slane %v3122_v27, 2  ;;  %v4131_v26 = vld [vmem:[%s5095_s1 + $0x560] sm:$0xff]  }
  0x57   :  { %v4132_v27 = vld [vmem:[%s5095_s1 + $0x5e0] sm:$0xff]  }
  0x58   :  { %3690 = vmatpush3.bf16.msra.mxu0 %v4037_v34  ;;  %v900_v34 = vrot.slane %v3123_v28, 2  ;;  %v4133_v28 = vld [vmem:[%s5095_s1 + $0x520] sm:$0xff]  }
  0x59   :  { %3712 = vmatpush3.bf16.msra.mxu1 %v4038_v35  ;;  %3691 = vmatprep.subr.bf16.mxu0 %v4039_v36  ;;  %v4080_v35 = vld [vmem:[%s5095_s1 + $0x4c0] sm:$0xff]  }
  0x5a   :  { %3713 = vmatprep.subr.bf16.mxu1 %v4040_v37  ;;  %v4081_v36 = vld [vmem:[%s5095_s1 + $0x400] sm:$0xff]   ;;  %v901_v37 = vrot.slane %v3124_v30, 2  ;;  %v4135_v30 = vld [vmem:[%s5095_s1 + $0x568] sm:$0xff]  }
  0x5b   :  { %v4134_v29 = vld [vmem:[%s5095_s1 + $0x5a0] sm:$0xff]  }
  0x5c   :  { %3692 = vmatpush3.bf16.msra.mxu0 %v4041_v38  ;;  %v902_v38 = vrot.slane %v3125_v31, 2  ;;  %v4136_v31 = vld [vmem:[%s5095_s1 + $0x5e8] sm:$0xff]  }
  0x5d   :  { %3714 = vmatpush3.bf16.msra.mxu1 %v4042_v39  ;;  %3693 = vmatprep.subr.bf16.mxu0 %v4043_v40  ;;  %v4082_v39 = vld [vmem:[%s5095_s1 + $0x480] sm:$0xff]   ;;  %v4083_v40 = vld [vmem:[%s5095_s1 + $0x448] sm:$0xff]  }
  0x5e   :  { %3715 = vmatprep.subr.bf16.mxu1 %v4044_v41  ;;  %v4084_v41 = vld [vmem:[%s5095_s1 + $0x4c8] sm:$0xff]  }
  0x60   :  { %3694 = vmatpush3.bf16.msra.mxu0 %v4045_v42  ;;  %v4085_v42 = vld [vmem:[%s5095_s1 + $0x408] sm:$0xff]  }
  0x61   :  { %3716 = vmatpush3.bf16.msra.mxu1 %v4046_v43  ;;  %3723 = vmatprep.subr.bf16.mxu0 %v4047_v52  ;;  %v4086_v43 = vld [vmem:[%s5095_s1 + $0x488] sm:$0xff]   ;;  %v4095_v52 = vld [vmem:[%s5095_s1 + $0x460] sm:$0xff]  }
  0x62   :  { %3745 = vmatprep.subr.bf16.mxu1 %v4048_v55  ;;  %v4098_v55 = vld [vmem:[%s5095_s1 + $0x4a0] sm:$0xff]  }
  0x63   :  { %1328 = vmatmul.mubr.bf16.vlgmr.msra.gmra.mrb[8].mxu0 %v895_v53  ;;  %v4096_v53 = vld [vmem:[%s5095_s1 + $0x4e0] sm:$0xff]  }
  0x64   :  { %1368 = vmatmul.mubr.bf16.vlgmr.msra.gmra.mrb[8].mxu1 %v897_v57  ;;  %3724 = vmatpush3.bf16.msra.mxu0 %v4049_v56  ;;  %v4099_v56 = vld [vmem:[%s5095_s1 + $0x468] sm:$0xff]  }
  0x65   :  { %3746 = vmatpush3.bf16.msra.mxu1 %v4050_v59  ;;  %3725 = vmatprep.subr.bf16.mxu0 %v4051_v60  ;;  %v4100_v57 = vld [vmem:[%s5095_s1 + $0x4e8] sm:$0xff]   ;;  %v4103_v60 = vld [vmem:[%s5095_s1 + $0x470] sm:$0xff]  }
  0x66   :  { %3747 = vmatprep.subr.bf16.mxu1 %v4052_v61  ;;  %1407 = vmatprep.mubr.bf16.mxu0 %v900_v34  ;;  %v4102_v59 = vld [vmem:[%s5095_s1 + $0x4a8] sm:$0xff]   ;;  %v4104_v61 = vld [vmem:[%s5095_s1 + $0x4f0] sm:$0xff]  }
  0x67   :  { %1447 = vmatprep.mubr.bf16.mxu1 %v902_v38  ;;  %v4139_v34 = vld [vmem:[%s5095_s1 + $0x570] sm:$0xff]   ;;  %v4143_v38 = vld [vmem:[%s5095_s1 + $0x578] sm:$0xff]  }
  0x68   :  { %3726 = vmatpush3.bf16.msra.mxu0 %v4053_v62  ;;  %v4105_v62 = vld [vmem:[%s5095_s1 + $0x430] sm:$0xff]  }
  0x69   :  { %3748 = vmatpush3.bf16.msra.mxu1 %v4054_v63  ;;  %3727 = vmatprep.subr.bf16.mxu0 %v4055_v0  ;;  %v4106_v63 = vld [vmem:[%s5095_s1 + $0x4b0] sm:$0xff]   ;;  %v4107_v0 = vld [vmem:[%s5095_s1 + $0x478] sm:$0xff]  }
  0x6a   :  { %3749 = vmatprep.subr.bf16.mxu1 %v4056_v1  ;;  %v4108_v1 = vld [vmem:[%s5095_s1 + $0x4f8] sm:$0xff]  }
  0x6c   :  { %3728 = vmatpush3.bf16.msra.mxu0 %v4057_v2  ;;  %v4109_v2 = vld [vmem:[%s5095_s1 + $0x438] sm:$0xff]  }
  0x6d   :  { %3750 = vmatpush3.bf16.msra.mxu1 %v4058_v3  ;;  %3729 = vmatprep.subr.bf16.mxu0 %v4059_v4  ;;  %v4110_v3 = vld [vmem:[%s5095_s1 + $0x4b8] sm:$0xff]   ;;  %v1458_v4 = vld [vmem:[%s5098_s0 + $0x20] sm:$0xff] }
  0x6e   :  { %3751 = vmatprep.subr.bf16.mxu1 %v4060_v5  ;;  %v3318_v5 = vcombine.low %v1458_v4, %v1458_v4 }
  0x70   :  { %3730 = vmatpush3.bf16.msra.mxu0 %v4061_v6  ;;  %v3319_v6 = vcombine.high %v1458_v4, %v1458_v4  ;;  %v4171_v4 = vld [vmem:[%s5095_s1 + $0x668] sm:$0xff]  }
  0x71   :  { %3752 = vmatpush3.bf16.msra.mxu1 %v4062_v7  ;;  %3731 = vmatprep.subr.bf16.mxu0 %v4063_v8  ;;  %v1459_v7 = vld [vmem:[%s5098_s0 + $0x28] sm:$0xff] }
  0x72   :  { %3753 = vmatprep.subr.bf16.mxu1 %v4064_v9  ;;  %v3320_v8 = vcombine.low %v1459_v7, %v1459_v7  ;;  %v3321_v9 = vcombine.high %v1459_v7, %v1459_v7  ;;  %v4174_v7 = vld [vmem:[%s5095_s1 + $0x6a8] sm:$0xff]  }
  0x74   :  { %3732 = vmatpush3.bf16.msra.mxu0 %v4065_v10  ;;  %v4115_v10 = vld [vmem:[%s5095_s1 + $0x540] sm:$0xff]  }
  0x75   :  { %3754 = vmatpush3.bf16.msra.mxu1 %v4066_v11  ;;  %3733 = vmatprep.subr.bf16.mxu0 %v4067_v12  ;;  %v4116_v11 = vld [vmem:[%s5095_s1 + $0x5c0] sm:$0xff]  }
  0x76   :  { %3755 = vmatprep.subr.bf16.mxu1 %v4068_v13  ;;  %v4117_v12 = vld [vmem:[%s5095_s1 + $0x500] sm:$0xff]  }
  0x77   :  { %v4118_v13 = vld [vmem:[%s5095_s1 + $0x580] sm:$0xff]  }
  0x78   :  { %3734 = vmatpush3.bf16.msra.mxu0 %v4069_v14  ;;  %v4119_v14 = vld [vmem:[%s5095_s1 + $0x548] sm:$0xff]  }
  0x79   :  { %3756 = vmatpush3.bf16.msra.mxu1 %v4070_v15  ;;  %3735 = vmatprep.subr.bf16.mxu0 %v4071_v16  ;;  %v4120_v15 = vld [vmem:[%s5095_s1 + $0x5c8] sm:$0xff]  }
  0x7a   :  { %3757 = vmatprep.subr.bf16.mxu1 %v4072_v17  ;;  %v4121_v16 = vld [vmem:[%s5095_s1 + $0x508] sm:$0xff]  }
  0x7b   :  { %v4122_v17 = vld [vmem:[%s5095_s1 + $0x588] sm:$0xff]  }
  0x7c   :  { %3736 = vmatpush3.bf16.msra.mxu0 %v4073_v18  ;;  %v4123_v18 = vld [vmem:[%s5095_s1 + $0x550] sm:$0xff]  }
  0x7d   :  { %3758 = vmatpush3.bf16.msra.mxu1 %v4074_v19  ;;  %3737 = vmatprep.subr.bf16.mxu0 %v4075_v20  ;;  %v4124_v19 = vld [vmem:[%s5095_s1 + $0x5d0] sm:$0xff]  }
  0x7e   :  { %3759 = vmatprep.subr.bf16.mxu1 %v4076_v21  ;;  %v4125_v20 = vld [vmem:[%s5095_s1 + $0x510] sm:$0xff]  }
  0x7f   :  { %v4126_v21 = vld [vmem:[%s5095_s1 + $0x590] sm:$0xff]  }
  0x80   :  { %3738 = vmatpush3.bf16.msra.mxu0 %v4077_v22  ;;  %v4127_v22 = vld [vmem:[%s5095_s1 + $0x558] sm:$0xff]  }
  0x81   :  { %3760 = vmatpush3.bf16.msra.mxu1 %v4078_v23  ;;  %3767 = vmatprep.subr.bf16.mxu0 %v4079_v32  ;;  %v4128_v23 = vld [vmem:[%s5095_s1 + $0x5d8] sm:$0xff]   ;;  %v4137_v32 = vld [vmem:[%s5095_s1 + $0x528] sm:$0xff]  }
  0x82   :  { %3789 = vmatprep.subr.bf16.mxu1 %v4080_v35  ;;  %v4140_v35 = vld [vmem:[%s5095_s1 + $0x5f0] sm:$0xff]  }
  0x83   :  { %1408 = vmatmul.mubr.bf16.vlgmr.msra.gmra.mrb[12].mxu0 %v899_v33  ;;  %v4138_v33 = vld [vmem:[%s5095_s1 + $0x5a8] sm:$0xff]  }
  0x84   :  { %1448 = vmatmul.mubr.bf16.vlgmr.msra.gmra.mrb[12].mxu1 %v901_v37  ;;  %3768 = vmatpush3.bf16.msra.mxu0 %v4081_v36  ;;  %v4141_v36 = vld [vmem:[%s5095_s1 + $0x530] sm:$0xff]  }
  0x85   :  { %3790 = vmatpush3.bf16.msra.mxu1 %v4082_v39  ;;  %3769 = vmatprep.subr.bf16.mxu0 %v4083_v40  ;;  %v4142_v37 = vld [vmem:[%s5095_s1 + $0x5b0] sm:$0xff]   ;;  %v4144_v39 = vld [vmem:[%s5095_s1 + $0x5f8] sm:$0xff]  }
  0x86   :  { %3791 = vmatprep.subr.bf16.mxu1 %v4084_v41  ;;  %2035 = vmatprep.mubr.bf16.mxu0 %v3319_v6  ;;  %v4145_v40 = vld [vmem:[%s5095_s1 + $0x538] sm:$0xff]   ;;  %v4173_v6 = vld [vmem:[%s5095_s1 + $0x628] sm:$0xff]  }
  0x87   :  { %2075 = vmatprep.mubr.bf16.mxu1 %v3321_v9  ;;  %v4146_v41 = vld [vmem:[%s5095_s1 + $0x5b8] sm:$0xff]   ;;  %v4176_v9 = vld [vmem:[%s5095_s1 + $0x6f0] sm:$0xff]  }
  0x88   :  { %3770 = vmatpush3.bf16.msra.mxu0 %v4085_v42  ;;  %v1460_v42 = vld [vmem:[%s5098_s0 + $0x30] sm:$0xff] }
  0x89   :  { %3792 = vmatpush3.bf16.msra.mxu1 %v4086_v43  ;;  %3771 = vmatprep.subr.bf16.mxu0 %v4087_v44  ;;  %v1461_v43 = vld [vmem:[%s5098_s0 + $0x38] sm:$0xff]  ;;  %v3322_v44 = vcombine.low %v1460_v42, %v1460_v42 }
  0x8a   :  { %3793 = vmatprep.subr.bf16.mxu1 %v4088_v45  ;;  %v3323_v45 = vcombine.high %v1460_v42, %v1460_v42  ;;  %v4197_v42 = vld [vmem:[%s5095_s1 + $0x718] sm:$0xff]  }
  0x8c   :  { %3772 = vmatpush3.bf16.msra.mxu0 %v4089_v46  ;;  %v3324_v46 = vcombine.low %v1461_v43, %v1461_v43 }
  0x8d   :  { %3794 = vmatpush3.bf16.msra.mxu1 %v4090_v47  ;;  %3773 = vmatprep.subr.bf16.mxu0 %v4091_v48  ;;  %v3325_v47 = vcombine.high %v1461_v43, %v1461_v43  ;;  %v4151_v48 = vld [vmem:[%s5095_s1 + $0x640] sm:$0xff]   ;;  %v4198_v43 = vld [vmem:[%s5095_s1 + $0x798] sm:$0xff]  }
  0x8e   :  { %3795 = vmatprep.subr.bf16.mxu1 %v4092_v49  ;;  %v4152_v49 = vld [vmem:[%s5095_s1 + $0x6c0] sm:$0xff]  }
  0x90   :  { %3774 = vmatpush3.bf16.msra.mxu0 %v4093_v50  ;;  %v4153_v50 = vld [vmem:[%s5095_s1 + $0x600] sm:$0xff]  }
  0x91   :  { %3796 = vmatpush3.bf16.msra.mxu1 %v4094_v51  ;;  %3775 = vmatprep.subr.bf16.mxu0 %v4095_v52  ;;  %v4154_v51 = vld [vmem:[%s5095_s1 + $0x680] sm:$0xff]   ;;  %v4155_v52 = vld [vmem:[%s5095_s1 + $0x648] sm:$0xff]  }
  0x92   :  { %3797 = vmatprep.subr.bf16.mxu1 %v4096_v53  ;;  %v4156_v53 = vld [vmem:[%s5095_s1 + $0x6c8] sm:$0xff]  }
  0x94   :  { %3776 = vmatpush3.bf16.msra.mxu0 %v4097_v54  ;;  %v4157_v54 = vld [vmem:[%s5095_s1 + $0x608] sm:$0xff]  }
  0x95   :  { %3798 = vmatpush3.bf16.msra.mxu1 %v4098_v55  ;;  %3777 = vmatprep.subr.bf16.mxu0 %v4099_v56  ;;  %v4158_v55 = vld [vmem:[%s5095_s1 + $0x688] sm:$0xff]   ;;  %v4159_v56 = vld [vmem:[%s5095_s1 + $0x650] sm:$0xff]  }
  0x96   :  { %3799 = vmatprep.subr.bf16.mxu1 %v4100_v57  ;;  %v4160_v57 = vld [vmem:[%s5095_s1 + $0x6d0] sm:$0xff]  }
  0x98   :  { %3778 = vmatpush3.bf16.msra.mxu0 %v4101_v58  ;;  %v4161_v58 = vld [vmem:[%s5095_s1 + $0x610] sm:$0xff]  }
  0x99   :  { %3800 = vmatpush3.bf16.msra.mxu1 %v4102_v59  ;;  %3779 = vmatprep.subr.bf16.mxu0 %v4103_v60  ;;  %v4162_v59 = vld [vmem:[%s5095_s1 + $0x690] sm:$0xff]   ;;  %v4163_v60 = vld [vmem:[%s5095_s1 + $0x658] sm:$0xff]  }
  0x9a   :  { %3801 = vmatprep.subr.bf16.mxu1 %v4104_v61  ;;  %v4164_v61 = vld [vmem:[%s5095_s1 + $0x6d8] sm:$0xff]  }
  0x9c   :  { %3780 = vmatpush3.bf16.msra.mxu0 %v4105_v62  ;;  %v4165_v62 = vld [vmem:[%s5095_s1 + $0x618] sm:$0xff]  }
  0x9d   :  { %3802 = vmatpush3.bf16.msra.mxu1 %v4106_v63  ;;  %3781 = vmatprep.subr.bf16.mxu0 %v4107_v0  ;;  %v4166_v63 = vld [vmem:[%s5095_s1 + $0x698] sm:$0xff]   ;;  %v4167_v0 = vld [vmem:[%s5095_s1 + $0x660] sm:$0xff]  }
  0x9e   :  { %3803 = vmatprep.subr.bf16.mxu1 %v4108_v1  ;;  %v4168_v1 = vld [vmem:[%s5095_s1 + $0x6e0] sm:$0xff]  }
  0xa0   :  { %3782 = vmatpush3.bf16.msra.mxu0 %v4109_v2  ;;  %v4169_v2 = vld [vmem:[%s5095_s1 + $0x620] sm:$0xff]  }
  0xa1   :  { %3804 = vmatpush3.bf16.msra.mxu1 %v4110_v3  ;;  %3811 = vmatprep.subr.bf16.mxu0 %v4115_v10  ;;  %v4170_v3 = vld [vmem:[%s5095_s1 + $0x6a0] sm:$0xff]   ;;  %v4177_v10 = vld [vmem:[%s5095_s1 + $0x630] sm:$0xff]  }
  0xa2   :  { %3833 = vmatprep.subr.bf16.mxu1 %v4116_v11  ;;  %v4178_v11 = vld [vmem:[%s5095_s1 + $0x6b0] sm:$0xff]  }
  0xa3   :  { %2036 = vmatmul.mubr.bf16.vlgmr.msra.gmra.mrb[16].mxu0 %v3318_v5  ;;  %v4172_v5 = vld [vmem:[%s5095_s1 + $0x6e8] sm:$0xff]  }
  0xa4   :  { %2076 = vmatmul.mubr.bf16.vlgmr.msra.gmra.mrb[16].mxu1 %v3320_v8  ;;  %3812 = vmatpush3.bf16.msra.mxu0 %v4117_v12  ;;  %v4175_v8 = vld [vmem:[%s5095_s1 + $0x670] sm:$0xff]   ;;  %v4179_v12 = vld [vmem:[%s5095_s1 + $0x678] sm:$0xff]  }
  0xa5   :  { %3834 = vmatpush3.bf16.msra.mxu1 %v4118_v13  ;;  %3813 = vmatprep.subr.bf16.mxu0 %v4119_v14  ;;  %v4180_v13 = vld [vmem:[%s5095_s1 + $0x6f8] sm:$0xff]  }
  0xa6   :  { %3835 = vmatprep.subr.bf16.mxu1 %v4120_v15  ;;  %2115 = vmatprep.mubr.bf16.mxu0 %v3323_v45  ;;  %v4181_v14 = vld [vmem:[%s5095_s1 + $0x638] sm:$0xff]   ;;  %v4199_v45 = vld [vmem:[%s5095_s1 + $0x760] sm:$0xff]  }
  0xa7   :  { %2155 = vmatprep.mubr.bf16.mxu1 %v3325_v47  ;;  %v4182_v15 = vld [vmem:[%s5095_s1 + $0x6b8] sm:$0xff]   ;;  %v4200_v47 = vld [vmem:[%s5095_s1 + $0x7e0] sm:$0xff]  }
  0xa8   :  { %3814 = vmatpush3.bf16.msra.mxu0 %v4121_v16  ;;  %v2166_v16 = vld [vmem:[%s5098_s0 + $0x20] sm:$0xcc] }
  0xa9   :  { %3836 = vmatpush3.bf16.msra.mxu1 %v4122_v17  ;;  %3815 = vmatprep.subr.bf16.mxu0 %v4123_v18  ;;  %v2170_v17 = vld [vmem:[%s5098_s0 + $0x40] sm:$0x33]  ;;  %v2167_v18 = vld [vmem:[%s5098_s0 + $0x28] sm:$0xcc] }
  0xaa   :  { %3837 = vmatprep.subr.bf16.mxu1 %v4124_v19  ;;  %v3518_v19 = vcombine.low %v2166_v16, %v2170_v17 }
  0xac   :  { %3816 = vmatpush3.bf16.msra.mxu0 %v4125_v20  ;;  %v3519_v20 = vcombine.high %v2166_v16, %v2170_v17 }
  0xad   :  { %3838 = vmatpush3.bf16.msra.mxu1 %v4126_v21  ;;  %3817 = vmatprep.subr.bf16.mxu0 %v4127_v22  ;;  %v2171_v21 = vld [vmem:[%s5098_s0 + $0x48] sm:$0x33] }
  0xae   :  { %3839 = vmatprep.subr.bf16.mxu1 %v4128_v23  ;;  %v3520_v22 = vcombine.low %v2167_v18, %v2171_v21  ;;  %v3521_v23 = vcombine.high %v2167_v18, %v2171_v21 }
  0xb0   :  { %3818 = vmatpush3.bf16.msra.mxu0 %v4129_v24  ;;  %v4183_v24 = vld [vmem:[%s5095_s1 + $0x740] sm:$0xff]  }
  0xb1   :  { %3840 = vmatpush3.bf16.msra.mxu1 %v4130_v25  ;;  %3819 = vmatprep.subr.bf16.mxu0 %v4131_v26  ;;  %v2335_v25 = vrot.slane %v3518_v19, 2  ;;  %v2336_v26 = vrot.slane %v3519_v20, 2 }
  0xb2   :  { %3841 = vmatprep.subr.bf16.mxu1 %v4132_v27  ;;  %v4184_v27 = vld [vmem:[%s5095_s1 + $0x7c0] sm:$0xff]  }
  0xb4   :  { %3820 = vmatpush3.bf16.msra.mxu0 %v4133_v28  ;;  %v4185_v28 = vld [vmem:[%s5095_s1 + $0x700] sm:$0xff]  }
  0xb5   :  { %3842 = vmatpush3.bf16.msra.mxu1 %v4134_v29  ;;  %3821 = vmatprep.subr.bf16.mxu0 %v4135_v30  ;;  %v2337_v29 = vrot.slane %v3520_v22, 2  ;;  %v2338_v30 = vrot.slane %v3521_v23, 2 }
  0xb6   :  { %3843 = vmatprep.subr.bf16.mxu1 %v4136_v31  ;;  %v4186_v31 = vld [vmem:[%s5095_s1 + $0x780] sm:$0xff]  }
  0xb8   :  { %3822 = vmatpush3.bf16.msra.mxu0 %v4137_v32  ;;  %v4187_v32 = vld [vmem:[%s5095_s1 + $0x748] sm:$0xff]  }
  0xb9   :  { %3844 = vmatpush3.bf16.msra.mxu1 %v4138_v33  ;;  %3823 = vmatprep.subr.bf16.mxu0 %v4139_v34  ;;  %v4188_v33 = vld [vmem:[%s5095_s1 + $0x7c8] sm:$0xff]  }
  0xba   :  { %3845 = vmatprep.subr.bf16.mxu1 %v4140_v35  ;;  %v4189_v34 = vld [vmem:[%s5095_s1 + $0x708] sm:$0xff]  }
  0xbb   :  { %v4190_v35 = vld [vmem:[%s5095_s1 + $0x788] sm:$0xff]  }
  0xbc   :  { %3824 = vmatpush3.bf16.msra.mxu0 %v4141_v36  ;;  %v4191_v36 = vld [vmem:[%s5095_s1 + $0x750] sm:$0xff]  }
  0xbd   :  { %3846 = vmatpush3.bf16.msra.mxu1 %v4142_v37  ;;  %3825 = vmatprep.subr.bf16.mxu0 %v4143_v38  ;;  %v4192_v37 = vld [vmem:[%s5095_s1 + $0x7d0] sm:$0xff]  }
  0xbe   :  { %3847 = vmatprep.subr.bf16.mxu1 %v4144_v39  ;;  %v4193_v38 = vld [vmem:[%s5095_s1 + $0x710] sm:$0xff]  }
  0xbf   :  { %v4194_v39 = vld [vmem:[%s5095_s1 + $0x790] sm:$0xff]  }
  0xc0   :  { %3826 = vmatpush3.bf16.msra.mxu0 %v4145_v40  ;;  %v4195_v40 = vld [vmem:[%s5095_s1 + $0x758] sm:$0xff]  }
  0xc1   :  { %3848 = vmatpush3.bf16.msra.mxu1 %v4146_v41  ;;  %3855 = vmatprep.subr.bf16.mxu0 %v4151_v48  ;;  %v4196_v41 = vld [vmem:[%s5095_s1 + $0x7d8] sm:$0xff]  }
  0xc2   :  { %3877 = vmatprep.subr.bf16.mxu1 %v4152_v49  ;;  %v4201_v49 = vld [vmem:[%s5095_s1 + $0x720] sm:$0xff]  }
  0xc3   :  { %2116 = vmatmul.mubr.bf16.vlgmr.msra.gmra.mrb[20].mxu0 %v3322_v44 }
  0xc4   :  { %2156 = vmatmul.mubr.bf16.vlgmr.msra.gmra.mrb[20].mxu1 %v3324_v46  ;;  %3856 = vmatpush3.bf16.msra.mxu0 %v4153_v50 }
  0xc5   :  { %3878 = vmatpush3.bf16.msra.mxu1 %v4154_v51  ;;  %3857 = vmatprep.subr.bf16.mxu0 %v4155_v52  ;;  %v4202_v52 = vld [vmem:[%s5095_s1 + $0x7a0] sm:$0xff]  }
  0xc6   :  { %3879 = vmatprep.subr.bf16.mxu1 %v4156_v53  ;;  %2767 = vmatprep.mubr.bf16.mxu0 %v2336_v26 }
  0xc7   :  { %2807 = vmatprep.mubr.bf16.mxu1 %v2338_v30 }
  0xc8   :  { %3858 = vmatpush3.bf16.msra.mxu0 %v4157_v54 }
  0xc9   :  { %3880 = vmatpush3.bf16.msra.mxu1 %v4158_v55  ;;  %3859 = vmatprep.subr.bf16.mxu0 %v4159_v56  ;;  %v4203_v55 = vld [vmem:[%s5095_s1 + $0x768] sm:$0xff]  }
  0xca   :  { %3881 = vmatprep.subr.bf16.mxu1 %v4160_v57 }
  0xcc   :  { %3860 = vmatpush3.bf16.msra.mxu0 %v4161_v58  ;;  %v4204_v58 = vld [vmem:[%s5095_s1 + $0x7e8] sm:$0xff]  }
  0xcd   :  { %3882 = vmatpush3.bf16.msra.mxu1 %v4162_v59  ;;  %3861 = vmatprep.subr.bf16.mxu0 %v4163_v60  ;;  %v4205_v60 = vld [vmem:[%s5095_s1 + $0x728] sm:$0xff]  }
  0xce   :  { %3883 = vmatprep.subr.bf16.mxu1 %v4164_v61 }
  0xd0   :  { %3862 = vmatpush3.bf16.msra.mxu0 %v4165_v62  ;;  %v4206_v62 = vld [vmem:[%s5095_s1 + $0x7a8] sm:$0xff]  }
  0xd1   :  { %3884 = vmatpush3.bf16.msra.mxu1 %v4166_v63  ;;  %3863 = vmatprep.subr.bf16.mxu0 %v4167_v0  ;;  %v4207_v63 = vld [vmem:[%s5095_s1 + $0x770] sm:$0xff]  }
  0xd2   :  { %3885 = vmatprep.subr.bf16.mxu1 %v4168_v1  ;;  %v4208_v0 = vld [vmem:[%s5095_s1 + $0x7f0] sm:$0xff]  }
  0xd3   :  { %v4209_v1 = vld [vmem:[%s5095_s1 + $0x730] sm:$0xff]  }
  0xd4   :  { %3864 = vmatpush3.bf16.msra.mxu0 %v4169_v2  ;;  %v4210_v2 = vld [vmem:[%s5095_s1 + $0x7b0] sm:$0xff]  }
  0xd5   :  { %3886 = vmatpush3.bf16.msra.mxu1 %v4170_v3  ;;  %3865 = vmatprep.subr.bf16.mxu0 %v4171_v4  ;;  %v4211_v3 = vld [vmem:[%s5095_s1 + $0x778] sm:$0xff]  }
  0xd6   :  { %3887 = vmatprep.subr.bf16.mxu1 %v4172_v5  ;;  %v4212_v4 = vld [vmem:[%s5095_s1 + $0x7f8] sm:$0xff]  }
  0xd7   :  { %v4213_v5 = vld [vmem:[%s5095_s1 + $0x738] sm:$0xff]  }
  0xd8   :  { %3866 = vmatpush3.bf16.msra.mxu0 %v4173_v6  ;;  %v4214_v6 = vld [vmem:[%s5095_s1 + $0x7b8] sm:$0xff]  }
  0xd9   :  { %3888 = vmatpush3.bf16.msra.mxu1 %v4174_v7  ;;  %3867 = vmatprep.subr.bf16.mxu0 %v4175_v8  ;;  %v2168_v7 = vld [vmem:[%s5098_s0 + $0x30] sm:$0xcc]  ;;  %v2172_v8 = vld [vmem:[%s5098_s0 + $0x50] sm:$0x33] }
  0xda   :  { %3889 = vmatprep.subr.bf16.mxu1 %v4176_v9  ;;  %v2169_v9 = vld [vmem:[%s5098_s0 + $0x38] sm:$0xcc] }
  0xdc   :  { %3868 = vmatpush3.bf16.msra.mxu0 %v4177_v10  ;;  %v2173_v10 = vld [vmem:[%s5098_s0 + $0x58] sm:$0x33] }
  0xdd   :  { %3890 = vmatpush3.bf16.msra.mxu1 %v4178_v11  ;;  %3869 = vmatprep.subr.bf16.mxu0 %v4179_v12  ;;  %v3522_v11 = vcombine.low %v2168_v7, %v2172_v8  ;;  %v3523_v12 = vcombine.high %v2168_v7, %v2172_v8 }
  0xde   :  { %3891 = vmatprep.subr.bf16.mxu1 %v4180_v13  ;;  %v3524_v13 = vcombine.low %v2169_v9, %v2173_v10 }
  0xdf   :  { %v2340_v16 = vrot.slane %v3523_v12, 2 }
  0xe0   :  { %3870 = vmatpush3.bf16.msra.mxu0 %v4181_v14  ;;  %v3525_v14 = vcombine.high %v2169_v9, %v2173_v10  ;;  %v2341_v17 = vrot.slane %v3524_v13, 2 }
  0xe1   :  { %3892 = vmatpush3.bf16.msra.mxu1 %v4182_v15  ;;  %3899 = vmatprep.subr.bf16.mxu0 %v4183_v24  ;;  %v2339_v15 = vrot.slane %v3522_v11, 2 }
  0xe2   :  { %3921 = vmatprep.subr.bf16.mxu1 %v4184_v27  ;;  %v2342_v18 = vrot.slane %v3525_v14, 2 }
  0xe3   :  { %2768 = vmatmul.mubr.bf16.vlgmr.msra.gmra.mrb[24].mxu0 %v2335_v25 }
  0xe4   :  { %2808 = vmatmul.mubr.bf16.vlgmr.msra.gmra.mrb[24].mxu1 %v2337_v29  ;;  %3900 = vmatpush3.bf16.msra.mxu0 %v4185_v28 }
  0xe5   :  { %3922 = vmatpush3.bf16.msra.mxu1 %v4186_v31  ;;  %3901 = vmatprep.subr.bf16.mxu0 %v4187_v32 }
  0xe6   :  { %3923 = vmatprep.subr.bf16.mxu1 %v4188_v33  ;;  %2847 = vmatprep.mubr.bf16.mxu0 %v2340_v16 }
  0xe7   :  { %2887 = vmatprep.mubr.bf16.mxu1 %v2342_v18 }
  0xe8   :  { %3902 = vmatpush3.bf16.msra.mxu0 %v4189_v34 }
  0xe9   :  { %3924 = vmatpush3.bf16.msra.mxu1 %v4190_v35  ;;  %3903 = vmatprep.subr.bf16.mxu0 %v4191_v36 }
  0xea   :  { %3925 = vmatprep.subr.bf16.mxu1 %v4192_v37 }
  0xec   :  { %3904 = vmatpush3.bf16.msra.mxu0 %v4193_v38 }
  0xed   :  { %3926 = vmatpush3.bf16.msra.mxu1 %v4194_v39  ;;  %3905 = vmatprep.subr.bf16.mxu0 %v4195_v40 }
  0xee   :  { %3927 = vmatprep.subr.bf16.mxu1 %v4196_v41 }
  0xf0   :  { %3906 = vmatpush3.bf16.msra.mxu0 %v4197_v42 }
  0xf1   :  { %3928 = vmatpush3.bf16.msra.mxu1 %v4198_v43  ;;  %3907 = vmatprep.subr.bf16.mxu0 %v4199_v45 }
  0xf2   :  { %3929 = vmatprep.subr.bf16.mxu1 %v4200_v47 }
  0xf4   :  { %3908 = vmatpush3.bf16.msra.mxu0 %v4201_v49 }
  0xf5   :  { %3930 = vmatpush3.bf16.msra.mxu1 %v4202_v52  ;;  %3909 = vmatprep.subr.bf16.mxu0 %v4203_v55 }
  0xf6   :  { %v3607_v44 = vpop.f32.mrb[0].mxu0  ;;  %3931 = vmatprep.subr.bf16.mxu1 %v4204_v58 }
  0xf7   :  { %v3629_v46 = vpop.f32.mrb[0].mxu1  ;;  %v3608_v48 = vpop.f32.mrb[1].mxu0 }
  0xf8   :  { %v3609_v50 = vadd.f32 %v3608_v48, %v3607_v44  ;;  %v3630_v51 = vpop.f32.mrb[1].mxu1  ;;  %v3610_v54 = vpop.f32.mrb[2].mxu0  ;;  %3910 = vmatpush3.bf16.msra.mxu0 %v4205_v60 }
  0xf9   :  { %v3631_v53 = vadd.f32 %v3630_v51, %v3629_v46  ;;  %v3632_v56 = vpop.f32.mrb[2].mxu1  ;;  %v3611_v59 = vpop.f32.mrb[3].mxu0  ;;  %3932 = vmatpush3.bf16.msra.mxu1 %v4206_v62  ;;  %3911 = vmatprep.subr.bf16.mxu0 %v4207_v63 }
  0xfa   :  { %v3633_v61 = vpop.f32.mrb[3].mxu1  ;;  %3933 = vmatprep.subr.bf16.mxu1 %v4208_v0 }
  0xfb   :  { %v640_v57 = vadd.f32 %v3631_v53, %v3609_v50 }
  0xfc   :  { %3912 = vmatpush3.bf16.msra.mxu0 %v4209_v1 }
  0xfd   :  { %3934 = vmatpush3.bf16.msra.mxu1 %v4210_v2  ;;  %3913 = vmatprep.subr.bf16.mxu0 %v4211_v3 }
  0xfe   :  { %3935 = vmatprep.subr.bf16.mxu1 %v4212_v4 }
 0x100   :  { %3914 = vmatpush3.bf16.msra.mxu0 %v4213_v5 }
 0x101   :  { %3936 = vmatpush3.bf16.msra.mxu1 %v4214_v6 }
 0x103   :  { %2848 = vmatmul.mubr.bf16.vlgmr.msra.gmra.mrb[28].mxu0 %v2339_v15 }
 0x104   :  { %2888 = vmatmul.mubr.bf16.vlgmr.msra.gmra.mrb[28].mxu1 %v2341_v17 }
 0x116   :  { %v3651_v19 = vpop.f32.mrb[4].mxu0 }
 0x117   :  { %v3673_v20 = vpop.f32.mrb[4].mxu1  ;;  %v3652_v21 = vpop.f32.mrb[5].mxu0 }
 0x118   :  { %v3674_v22 = vpop.f32.mrb[5].mxu1  ;;  %v3653_v23 = vadd.f32 %v3652_v21, %v3651_v19  ;;  %v3654_v25 = vpop.f32.mrb[6].mxu0 }
 0x119   :  { %v3675_v24 = vadd.f32 %v3674_v22, %v3673_v20  ;;  %v3676_v26 = vpop.f32.mrb[6].mxu1  ;;  %v3655_v27 = vpop.f32.mrb[7].mxu0 }
 0x11a   :  { %v3677_v28 = vpop.f32.mrb[7].mxu1  ;;  %v680_v29 = vadd.f32 %v3653_v23, %v640_v57 }
 0x11c   :  { %v720_v30 = vadd.f32 %v3675_v24, %v680_v29 }
 0x136   :  { %v3695_v31 = vpop.f32.mrb[8].mxu0 }
 0x137   :  { %v3717_v32 = vpop.f32.mrb[8].mxu1  ;;  %v3696_v33 = vpop.f32.mrb[9].mxu0 }
 0x138   :  { %v3697_v34 = vadd.f32 %v3696_v33, %v3695_v31  ;;  %v3718_v35 = vpop.f32.mrb[9].mxu1  ;;  %v3698_v36 = vpop.f32.mrb[10].mxu0 }
 0x139   :  { %v3719_v37 = vadd.f32 %v3718_v35, %v3717_v32  ;;  %v3720_v38 = vpop.f32.mrb[10].mxu1  ;;  %v3699_v39 = vpop.f32.mrb[11].mxu0 }
 0x13a   :  { %v3721_v40 = vpop.f32.mrb[11].mxu1  ;;  %v3590_v38 = vld [vmem:[%s5099_s2] ss:$0 sm:$0xff] }
 0x13b   :  { %v1370_v41 = vadd.f32 %v3719_v37, %v3697_v34 }
 0x156   :  { %v3739_v42 = vpop.f32.mrb[12].mxu0 }
 0x157   :  { %v3761_v43 = vpop.f32.mrb[12].mxu1  ;;  %v3740_v44 = vpop.f32.mrb[13].mxu0 }
 0x158   :  { %v3741_v45 = vadd.f32 %v3740_v44, %v3739_v42  ;;  %v3762_v46 = vpop.f32.mrb[13].mxu1  ;;  %v3742_v47 = vpop.f32.mrb[14].mxu0 }
 0x159   :  { %v3763_v48 = vadd.f32 %v3762_v46, %v3761_v43  ;;  %v3764_v49 = vpop.f32.mrb[14].mxu1  ;;  %v3743_v50 = vpop.f32.mrb[15].mxu0 }
 0x15a   :  { %v1410_v51 = vadd.f32 %v3741_v45, %v1370_v41  ;;  %v3765_v52 = vpop.f32.mrb[15].mxu1 }
 0x15c   :  { %v1450_v53 = vadd.f32 %v3763_v48, %v1410_v51 }
 0x15e   :  { %v1456_v54 = vadd.f32 %v1450_v53, %v720_v30 }
 0x176   :  { %v3783_v55 = vpop.f32.mrb[16].mxu0 }
 0x177   :  { %v3805_v56 = vpop.f32.mrb[16].mxu1  ;;  %v3784_v57 = vpop.f32.mrb[17].mxu0 }
 0x178   :  { %v3785_v58 = vadd.f32 %v3784_v57, %v3783_v55  ;;  %v3806_v59 = vpop.f32.mrb[17].mxu1  ;;  %v3786_v60 = vpop.f32.mrb[18].mxu0 }
 0x179   :  { %v3807_v61 = vadd.f32 %v3806_v59, %v3805_v56  ;;  %v3808_v62 = vpop.f32.mrb[18].mxu1  ;;  %v3787_v63 = vpop.f32.mrb[19].mxu0 }
 0x17a   :  { %v3809_v0 = vpop.f32.mrb[19].mxu1 }
 0x17b   :  { %v2078_v1 = vadd.f32 %v3807_v61, %v3785_v58 }
 0x196   :  { %v3827_v2 = vpop.f32.mrb[20].mxu0 }
 0x197   :  { %v3849_v3 = vpop.f32.mrb[20].mxu1  ;;  %v3828_v4 = vpop.f32.mrb[21].mxu0 }
 0x198   :  { %v3829_v5 = vadd.f32 %v3828_v4, %v3827_v2  ;;  %v3850_v6 = vpop.f32.mrb[21].mxu1  ;;  %v3830_v7 = vpop.f32.mrb[22].mxu0 }
 0x199   :  { %v3851_v8 = vadd.f32 %v3850_v6, %v3849_v3  ;;  %v3852_v9 = vpop.f32.mrb[22].mxu1  ;;  %v3831_v10 = vpop.f32.mrb[23].mxu0 }
 0x19a   :  { %v2118_v11 = vadd.f32 %v3829_v5, %v2078_v1  ;;  %v3853_v12 = vpop.f32.mrb[23].mxu1 }
 0x19c   :  { %v2158_v13 = vadd.f32 %v3851_v8, %v2118_v11 }
 0x19e   :  { %v2164_v14 = vadd.f32 %v2158_v13, %v1456_v54 }
 0x1b6   :  { %v3871_v15 = vpop.f32.mrb[24].mxu0 }
 0x1b7   :  { %v3893_v16 = vpop.f32.mrb[24].mxu1  ;;  %v3872_v17 = vpop.f32.mrb[25].mxu0 }
 0x1b8   :  { %v3873_v18 = vadd.f32 %v3872_v17, %v3871_v15  ;;  %v3894_v19 = vpop.f32.mrb[25].mxu1  ;;  %v3874_v20 = vpop.f32.mrb[26].mxu0 }
 0x1b9   :  { %v3895_v21 = vadd.f32 %v3894_v19, %v3893_v16  ;;  %v3896_v22 = vpop.f32.mrb[26].mxu1  ;;  %v3875_v23 = vpop.f32.mrb[27].mxu0 }
 0x1ba   :  { %v3897_v24 = vpop.f32.mrb[27].mxu1 }
 0x1bb   :  { %v2810_v25 = vadd.f32 %v3895_v21, %v3873_v18 }
 0x1d6   :  { %v3915_v26 = vpop.f32.mrb[28].mxu0 }
 0x1d7   :  { %v3937_v27 = vpop.f32.mrb[28].mxu1  ;;  %v3916_v28 = vpop.f32.mrb[29].mxu0 }
 0x1d8   :  { %v3938_v29 = vpop.f32.mrb[29].mxu1  ;;  %v3917_v30 = vadd.f32 %v3916_v28, %v3915_v26  ;;  %v3918_v32 = vpop.f32.mrb[30].mxu0 }
 0x1d9   :  { %v3939_v31 = vadd.f32 %v3938_v29, %v3937_v27  ;;  %v3940_v33 = vpop.f32.mrb[30].mxu1  ;;  %v3919_v34 = vpop.f32.mrb[31].mxu0 }
 0x1da   :  { %v3941_v35 = vpop.f32.mrb[31].mxu1  ;;  %v2850_v36 = vadd.f32 %v3917_v30, %v2810_v25 }
 0x1dc   :  { %v2890_v37 = vadd.f32 %v3939_v31, %v2850_v36 }
 0x1de   :  { %v2896_v39 = vadd.f32 %v2890_v37, %v2164_v14 }
 0x1e0   :  { %v2906_v40 = vadd.f32 %v3590_v38, %v2896_v39 }
 0x1e2   :  { %v2907_v41 = vsub.f32 0.0, %v2906_v40 }
 0x1e4   :  { %v2908_v42 = vmul.f32 1.442695, %v2907_v41 }
 0x1e6   :  { %4215 = vpow2.f32 %v2908_v42 }
 0x1f0   :  { %v4216_v43 = vpop.eup %4215 }
 0x1f1   :  { %v2910_v44 = vadd.f32 1.0, %v4216_v43 }
 0x1f3   :  { %4217 = vrcp.f32 %v2910_v44 }
 0x1fd   :  { %v4218_v45 = vpop.eup %4217 }
 0x1fe   :  { %2913 = vst [vmem:[%s5100_s5] sm:$0xff] %v4218_v45 }

</bundles_post_ra>
